<compile_context>
chip_gen: v7x
topology: tpu7x:2x2x1
jax: 0.10.0
libtpu: 0.0.40
codegen_flags: <defaults>
</compile_context>

<pallas_src>
import functools

import jax
import jax.numpy as jnp
from jax.experimental import pallas as pl
from jax.experimental.pallas import tpu as pltpu

LN_EPS = 1e-5


def _round_up(n, m):
    return ((n + m - 1) // m) * m


def _layernorm(h, g, b):
    mean = jnp.mean(h, axis=-1, keepdims=True)
    var = jnp.mean(jnp.square(h - mean), axis=-1, keepdims=True)
    return (h - mean) * jax.lax.rsqrt(var + LN_EPS) * g + b


def _silu(h):
    return h * jax.nn.sigmoid(h)


def _lin(h, w_ref, b_ref):
    # bf16 MXU matmul with f32 accumulation; bias add in f32.
    return jnp.dot(h.astype(jnp.bfloat16), w_ref[...],
                   preferred_element_type=jnp.float32) + b_ref[...]


def target_branch_kernel(
    # batch-tiled data
    x_ref, eps_ref,
    # encoder: HiddenBlock(input_dim, hidden, 2*latent, depth=2)
    w1_ref, b1_ref, g1_ref, be1_ref,
    w2_ref, b2_ref, g2_ref, be2_ref,
    w3_ref, b3_ref, g3_ref, be3_ref,
    wmu_ref, bmu_ref, wlv_ref, blv_ref,
    # decoder: HiddenBlock(latent, hidden, input_dim, depth=0)
    v1_ref, c1_ref, gd_ref, bed_ref,
    v2_ref, c2_ref,
    # outputs
    z_ref, recon_ref, kl_ref,
    *, true_b, tile_b,
):
    i = pl.program_id(0)
    x = x_ref[...].astype(jnp.float32)
    eps = eps_ref[...].astype(jnp.float32)

    # ---- encodings_to_z : VariationalBlock (depth=2 -> 3 hidden blocks) ----
    h = _silu(_layernorm(_lin(x, w1_ref, b1_ref), g1_ref[...], be1_ref[...]))
    h = _silu(_layernorm(_lin(h, w2_ref, b2_ref), g2_ref[...], be2_ref[...]))
    h = _silu(_layernorm(_lin(h, w3_ref, b3_ref), g3_ref[...], be3_ref[...]))

    mu = _lin(h, wmu_ref, bmu_ref)          # (TB, L)
    log_var = _lin(h, wlv_ref, blv_ref)     # (TB, L)
    scale = jax.nn.softplus(log_var)
    # Stable log(softplus(v)): for very negative v, log(softplus(v)) ~ v.
    log_scale = jnp.where(log_var < -10.0, log_var,
                          jnp.log(jnp.maximum(scale, 1e-30)))

    # reparameterize: z = mu + scale * eps   (eps ~ N(0,1) supplied by host)
    z = mu + scale * eps
    z_ref[...] = z.astype(z_ref.dtype)

    # ---- z_to_encodings : HiddenBlock (depth=0) ----
    hd = _silu(_layernorm(_lin(z, v1_ref, c1_ref), gd_ref[...], bed_ref[...]))
    x_rec = _lin(hd, v2_ref, c2_ref)        # (TB, input_dim)

    # mask batch-padding rows so the partial loss sums are exact
    row = i * tile_b + jax.lax.broadcasted_iota(jnp.int32, (tile_b, 1), 0)
    valid = (row < true_b).astype(jnp.float32)   # (TB, 1)

    # KL( N(mu, diag(scale^2)) || N(0, I) ) summed over this tile's rows
    kl_row = 0.5 * jnp.sum(scale * scale + mu * mu - 1.0 - 2.0 * log_scale,
                           axis=-1, keepdims=True)          # (TB, 1)
    kl_sum = jnp.sum(kl_row * valid)

    # F.mse_loss(x, x_rec): per-row mean, summed over this tile's rows
    diff = x - x_rec
    recon_row = jnp.mean(diff * diff, axis=-1, keepdims=True)  # (TB, 1)
    recon_sum = jnp.sum(recon_row * valid)

    # lane-aligned (1, 8, 128) partial-sum blocks; reduced in the wrapper
    recon_ref[...] = jnp.full(recon_ref.shape, recon_sum, jnp.float32)
    kl_ref[...] = jnp.full(kl_ref.shape, kl_sum, jnp.float32)


def target_branch_forward(x, eps, params, *, tile_b=128):
    """Full TargetBranch forward (compute_loss=True).

    Returns (z, loss_recon, loss_kl); losses are scalar f32.
    For large batches on v6e/v7x raise tile_b to 256-512 to fill the 256-wide MXU.
    """
    B, input_dim = x.shape
    latent_dim = eps.shape[-1]
    hidden_dim = params[0].shape[1]

    tb = min(_round_up(tile_b, 8), _round_up(B, 8))
    num_tiles = pl.cdiv(B, tb)
    b_pad = num_tiles * tb
    if b_pad != B:
        x = jnp.pad(x, ((0, b_pad - B), (0, 0)))
        eps = jnp.pad(eps, ((0, b_pad - B), (0, 0)))

    flat = list(params)

    # x / eps blocked over rows; every weight/bias gets a constant index_map
    # (DMA'd once, VMEM-resident across the grid).
    in_specs = [
        pl.BlockSpec((tb, input_dim), lambda i: (i, 0)),
        pl.BlockSpec((tb, latent_dim), lambda i: (i, 0)),
    ] + [pl.BlockSpec(p.shape, lambda i: (0, 0)) for p in flat]

    out_specs = (
        pl.BlockSpec((tb, latent_dim), lambda i: (i, 0)),      # z
        pl.BlockSpec((1, 8, 128), lambda i: (i, 0, 0)),        # recon partials
        pl.BlockSpec((1, 8, 128), lambda i: (i, 0, 0)),        # kl partials
    )
    out_shape = (
        jax.ShapeDtypeStruct((b_pad, latent_dim), jnp.float32),
        jax.ShapeDtypeStruct((num_tiles, 8, 128), jnp.float32),
        jax.ShapeDtypeStruct((num_tiles, 8, 128), jnp.float32),
    )

    # VMEM budget: resident weights + double-buffered activation tiles + headroom.
    weight_bytes = sum(int(p.size) * p.dtype.itemsize for p in flat)
    io_bytes = tb * (2 * input_dim + 2 * latent_dim) * 4
    vmem_limit = int(min(weight_bytes + 4 * io_bytes + (16 << 20), 48 << 20))

    matmul_flops = 2 * B * (input_dim * hidden_dim
                            + 2 * hidden_dim * hidden_dim
                            + 2 * hidden_dim * latent_dim
                            + latent_dim * hidden_dim
                            + hidden_dim * input_dim)
    transcendentals = B * (4 * hidden_dim + 3 * latent_dim)
    bytes_accessed = int((x.size + eps.size) * 4 + weight_bytes
                         + b_pad * latent_dim * 4 + 2 * num_tiles * 8 * 128 * 4)

    kernel = functools.partial(target_branch_kernel, true_b=B, tile_b=tb)

    z_pad, recon_part, kl_part = pl.pallas_call(
        kernel,
        out_shape=out_shape,
        grid=(num_tiles,),
        in_specs=in_specs,
        out_specs=out_specs,
        compiler_params=pltpu.CompilerParams(
            dimension_semantics=("parallel",),
            vmem_limit_bytes=vmem_limit,
        ),
        cost_estimate=pl.CostEstimate(
            flops=matmul_flops,
            transcendentals=transcendentals,
            bytes_accessed=bytes_accessed,
        ),
    )(x, eps, *flat)

    z = z_pad[:B]
    loss_recon = jnp.sum(recon_part[:, 0, 0]) / B
    loss_kl = jnp.sum(kl_part[:, 0, 0]) / B
    return z, loss_recon, loss_kl


def init_params(key, input_dim, hidden_dim, latent_dim):
    """Synthetic parameters (PyTorch-style U(-1/sqrt(fan_in), ...)); weights bf16."""
    def lin(key, fan_in, fan_out):
        kw, kb = jax.random.split(key)
        bound = 1.0 / jnp.sqrt(fan_in)
        w = jax.random.uniform(kw, (fan_in, fan_out), jnp.float32, -bound, bound)
        b = jax.random.uniform(kb, (1, fan_out), jnp.float32, -bound, bound)
        return w.astype(jnp.bfloat16), b      # bf16 matmul weights, f32 bias

    def ln(dim):
        return jnp.ones((1, dim), jnp.float32), jnp.zeros((1, dim), jnp.float32)

    keys = jax.random.split(key, 6)

    # encoder HiddenBlock(input_dim, hidden, 2*latent, depth=2): 4 linears, 3 LNs
    w1, b1 = lin(keys[0], input_dim, hidden_dim)
    g1, be1 = ln(hidden_dim)
    w2, b2 = lin(keys[1], hidden_dim, hidden_dim)
    g2, be2 = ln(hidden_dim)
    w3, b3 = lin(keys[2], hidden_dim, hidden_dim)
    g3, be3 = ln(hidden_dim)
    # final Linear(hidden, 2*latent) split column-wise into mu / log_var halves
    w4, b4 = lin(keys[3], hidden_dim, 2 * latent_dim)
    wmu, wlv = w4[:, :latent_dim], w4[:, latent_dim:]
    bmu, blv = b4[:, :latent_dim], b4[:, latent_dim:]

    # decoder HiddenBlock(latent, hidden, input_dim, depth=0): 2 linears, 1 LN
    # (the PyTorch module passes a typo'd `dpeth=2`, so depth stays 0)
    v1, c1 = lin(keys[4], latent_dim, hidden_dim)
    gd, bed = ln(hidden_dim)
    v2, c2 = lin(keys[5], hidden_dim, input_dim)

    return (
        w1, b1, g1, be1,
        w2, b2, g2, be2,
        w3, b3, g3, be3,
        wmu, bmu, wlv, blv,
        v1, c1, gd, bed,
        v2, c2,
    )


def _reference_forward(x, eps, params):
    """Pure-JAX reference mirroring the kernel math (bf16 matmul operands)."""
    (w1, b1, g1, be1, w2, b2, g2, be2, w3, b3, g3, be3,
     wmu, bmu, wlv, blv, v1, c1, gd, bed, v2, c2) = params

    def lin(h, w, b):
        return jnp.dot(h.astype(jnp.bfloat16), w,
                       preferred_element_type=jnp.float32) + b

    h = _silu(_layernorm(lin(x, w1, b1), g1, be1))
    h = _silu(_layernorm(lin(h, w2, b2), g2, be2))
    h = _silu(_layernorm(lin(h, w3, b3), g3, be3))
    mu = lin(h, wmu, bmu)
    log_var = lin(h, wlv, blv)
    scale = jax.nn.softplus(log_var)
    log_scale = jnp.where(log_var < -10.0, log_var,
                          jnp.log(jnp.maximum(scale, 1e-30)))
    z = mu + scale * eps
    kl = jnp.mean(0.5 * jnp.sum(scale * scale + mu * mu - 1.0 - 2.0 * log_scale,
                                axis=-1))
    hd = _silu(_layernorm(lin(z, v1, c1), gd, bed))
    x_rec = lin(hd, v2, c2)
    recon = jnp.mean((x - x_rec) ** 2)
    return z, recon, kl


if __name__ == "__main__":
    # Small, lane-aligned shapes consistent with the module (defaults 1024/512/1024).
    B, INPUT_DIM, HIDDEN_DIM, LATENT_DIM = 256, 256, 128, 128
    TILE_B = 128   # 2 grid tiles -> exercises the parallel batch axis

    root = jax.random.PRNGKey(0)
    k_x, k_eps, k_params = jax.random.split(root, 3)

    x = jax.random.normal(k_x, (B, INPUT_DIM), jnp.float32)
    # eps for the reparameterization trick (dist.rsample()); generated host-side.
    eps = jax.random.normal(k_eps, (B, LATENT_DIM), jnp.float32)

    params = init_params(k_params, INPUT_DIM, HIDDEN_DIM, LATENT_DIM)

    z, loss_recon, loss_kl = target_branch_forward(x, eps, params, tile_b=TILE_B)
    jax.block_until_ready((z, loss_recon, loss_kl))

    assert z.shape == (B, LATENT_DIM)
    assert bool(jnp.all(jnp.isfinite(z)))
    assert bool(jnp.isfinite(loss_recon)) and bool(jnp.isfinite(loss_kl))

    # correctness check against a pure-JAX reference of the same math
    z_ref, recon_ref_v, kl_ref_v = _reference_forward(x, eps, params)
    assert bool(jnp.allclose(z, z_ref, rtol=2e-2, atol=2e-2))
    assert bool(jnp.allclose(loss_recon, recon_ref_v, rtol=2e-2, atol=2e-2))
    assert bool(jnp.allclose(loss_kl, kl_ref_v, rtol=2e-2, atol=2e-2))

    print("KERNEL_OK")
</pallas_src>

<mosaic_0001>
module attributes {stable_mosaic.version = 11 : i64} {
  func.func @target_branch_kernel(%arg0: i32, %arg1: memref<128x256xf32, #tpu.memory_space<vmem>>, %arg2: memref<128x128xf32, #tpu.memory_space<vmem>>, %arg3: memref<256x128xbf16, #tpu.memory_space<vmem>>, %arg4: memref<1x128xf32, #tpu.memory_space<vmem>>, %arg5: memref<1x128xf32, #tpu.memory_space<vmem>>, %arg6: memref<1x128xf32, #tpu.memory_space<vmem>>, %arg7: memref<128x128xbf16, #tpu.memory_space<vmem>>, %arg8: memref<1x128xf32, #tpu.memory_space<vmem>>, %arg9: memref<1x128xf32, #tpu.memory_space<vmem>>, %arg10: memref<1x128xf32, #tpu.memory_space<vmem>>, %arg11: memref<128x128xbf16, #tpu.memory_space<vmem>>, %arg12: memref<1x128xf32, #tpu.memory_space<vmem>>, %arg13: memref<1x128xf32, #tpu.memory_space<vmem>>, %arg14: memref<1x128xf32, #tpu.memory_space<vmem>>, %arg15: memref<128x128xbf16, #tpu.memory_space<vmem>>, %arg16: memref<1x128xf32, #tpu.memory_space<vmem>>, %arg17: memref<128x128xbf16, #tpu.memory_space<vmem>>, %arg18: memref<1x128xf32, #tpu.memory_space<vmem>>, %arg19: memref<128x128xbf16, #tpu.memory_space<vmem>>, %arg20: memref<1x128xf32, #tpu.memory_space<vmem>>, %arg21: memref<1x128xf32, #tpu.memory_space<vmem>>, %arg22: memref<1x128xf32, #tpu.memory_space<vmem>>, %arg23: memref<128x256xbf16, #tpu.memory_space<vmem>>, %arg24: memref<1x256xf32, #tpu.memory_space<vmem>>, %arg25: memref<128x128xf32, #tpu.memory_space<vmem>>, %arg26: memref<1x8x128xf32, #tpu.memory_space<vmem>>, %arg27: memref<1x8x128xf32, #tpu.memory_space<vmem>>) attributes {dimension_semantics = [#tpu.dimension_semantics<parallel>], iteration_bounds = array<i64: 2>, scalar_prefetch = 0 : i64, scratch_operands = 0 : i64, tpu.core_type = #tpu.core_type<tc>, window_params = [{transform_indices = @transform_0, window_bounds = array<i64: 128, 256>}, {transform_indices = @transform_1, window_bounds = array<i64: 128, 128>}, {pipeline_mode = #tpu.pipeline_mode<synchronous>, transform_indices = @transform_2, window_bounds = array<i64: 256, 128>}, {pipeline_mode = #tpu.pipeline_mode<synchronous>, transform_indices = @transform_3, window_bounds = array<i64: 1, 128>}, {pipeline_mode = #tpu.pipeline_mode<synchronous>, transform_indices = @transform_4, window_bounds = array<i64: 1, 128>}, {pipeline_mode = #tpu.pipeline_mode<synchronous>, transform_indices = @transform_5, window_bounds = array<i64: 1, 128>}, {pipeline_mode = #tpu.pipeline_mode<synchronous>, transform_indices = @transform_6, window_bounds = array<i64: 128, 128>}, {pipeline_mode = #tpu.pipeline_mode<synchronous>, transform_indices = @transform_7, window_bounds = array<i64: 1, 128>}, {pipeline_mode = #tpu.pipeline_mode<synchronous>, transform_indices = @transform_8, window_bounds = array<i64: 1, 128>}, {pipeline_mode = #tpu.pipeline_mode<synchronous>, transform_indices = @transform_9, window_bounds = array<i64: 1, 128>}, {pipeline_mode = #tpu.pipeline_mode<synchronous>, transform_indices = @transform_10, window_bounds = array<i64: 128, 128>}, {pipeline_mode = #tpu.pipeline_mode<synchronous>, transform_indices = @transform_11, window_bounds = array<i64: 1, 128>}, {pipeline_mode = #tpu.pipeline_mode<synchronous>, transform_indices = @transform_12, window_bounds = array<i64: 1, 128>}, {pipeline_mode = #tpu.pipeline_mode<synchronous>, transform_indices = @transform_13, window_bounds = array<i64: 1, 128>}, {pipeline_mode = #tpu.pipeline_mode<synchronous>, transform_indices = @transform_14, window_bounds = array<i64: 128, 128>}, {pipeline_mode = #tpu.pipeline_mode<synchronous>, transform_indices = @transform_15, window_bounds = array<i64: 1, 128>}, {pipeline_mode = #tpu.pipeline_mode<synchronous>, transform_indices = @transform_16, window_bounds = array<i64: 128, 128>}, {pipeline_mode = #tpu.pipeline_mode<synchronous>, transform_indices = @transform_17, window_bounds = array<i64: 1, 128>}, {pipeline_mode = #tpu.pipeline_mode<synchronous>, transform_indices = @transform_18, window_bounds = array<i64: 128, 128>}, {pipeline_mode = #tpu.pipeline_mode<synchronous>, transform_indices = @transform_19, window_bounds = array<i64: 1, 128>}, {pipeline_mode = #tpu.pipeline_mode<synchronous>, transform_indices = @transform_20, window_bounds = array<i64: 1, 128>}, {pipeline_mode = #tpu.pipeline_mode<synchronous>, transform_indices = @transform_21, window_bounds = array<i64: 1, 128>}, {pipeline_mode = #tpu.pipeline_mode<synchronous>, transform_indices = @transform_22, window_bounds = array<i64: 128, 256>}, {pipeline_mode = #tpu.pipeline_mode<synchronous>, transform_indices = @transform_23, window_bounds = array<i64: 1, 256>}, {transform_indices = @transform_24, window_bounds = array<i64: 128, 128>}, {transform_indices = @transform_25, window_bounds = array<i64: 1, 8, 128>}, {transform_indices = @transform_26, window_bounds = array<i64: 1, 8, 128>}]} {
    %c0 = arith.constant 0 : index
    %c0_0 = arith.constant 0 : index
    %0 = vector.load %arg1[%c0, %c0_0] : memref<128x256xf32, #tpu.memory_space<vmem>>, vector<128x256xf32>
    %c0_1 = arith.constant 0 : index
    %c0_2 = arith.constant 0 : index
    %1 = vector.load %arg2[%c0_1, %c0_2] : memref<128x128xf32, #tpu.memory_space<vmem>>, vector<128x128xf32>
    %2 = arith.truncf %0 : vector<128x256xf32> to vector<128x256xbf16>
    %c0_3 = arith.constant 0 : index
    %c0_4 = arith.constant 0 : index
    %3 = vector.load %arg3[%c0_3, %c0_4] : memref<256x128xbf16, #tpu.memory_space<vmem>>, vector<256x128xbf16>
    %cst = arith.constant dense<0.000000e+00> : vector<128x128xf32>
    %4 = tpu.matmul %2, %3, %cst {dimension_numbers = #tpu.dot_dimension_numbers<[1], [0], [0], [1], [0, 0, 1, 1], [], []>} : vector<128x256xbf16>, vector<256x128xbf16>, vector<128x128xf32> -> vector<128x128xf32>
    %c0_5 = arith.constant 0 : index
    %c0_6 = arith.constant 0 : index
    %5 = vector.load %arg4[%c0_5, %c0_6] : memref<1x128xf32, #tpu.memory_space<vmem>>, vector<1x128xf32>
    %6 = vector.broadcast %5 : vector<1x128xf32> to vector<128x128xf32>
    %7 = arith.addf %4, %6 : vector<128x128xf32>
    %c0_7 = arith.constant 0 : index
    %c0_8 = arith.constant 0 : index
    %8 = vector.load %arg5[%c0_7, %c0_8] : memref<1x128xf32, #tpu.memory_space<vmem>>, vector<1x128xf32>
    %c0_9 = arith.constant 0 : index
    %c0_10 = arith.constant 0 : index
    %9 = vector.load %arg6[%c0_9, %c0_10] : memref<1x128xf32, #tpu.memory_space<vmem>>, vector<1x128xf32>
    %cst_11 = arith.constant dense<0.000000e+00> : vector<128xf32>
    %10 = vector.multi_reduction <add>, %7, %cst_11 [1] : vector<128x128xf32> to vector<128xf32>
    %11 = vector.shape_cast %10 : vector<128xf32> to vector<128x1xf32>
    %cst_12 = arith.constant 1.280000e+02 : f32
    %12 = vector.broadcast %cst_12 : f32 to vector<128x1xf32>
    %13 = arith.divf %11, %12 : vector<128x1xf32>
    %14 = vector.broadcast %13 : vector<128x1xf32> to vector<128x128xf32>
    %15 = arith.subf %7, %14 : vector<128x128xf32>
    %16 = arith.mulf %15, %15 : vector<128x128xf32>
    %cst_13 = arith.constant dense<0.000000e+00> : vector<128xf32>
    %17 = vector.multi_reduction <add>, %16, %cst_13 [1] : vector<128x128xf32> to vector<128xf32>
    %18 = vector.shape_cast %17 : vector<128xf32> to vector<128x1xf32>
    %cst_14 = arith.constant 1.280000e+02 : f32
    %19 = vector.broadcast %cst_14 : f32 to vector<128x1xf32>
    %20 = arith.divf %18, %19 : vector<128x1xf32>
    %21 = vector.broadcast %13 : vector<128x1xf32> to vector<128x128xf32>
    %22 = arith.subf %7, %21 : vector<128x128xf32>
    %cst_15 = arith.constant 9.99999974E-6 : f32
    %23 = vector.broadcast %cst_15 : f32 to vector<128x1xf32>
    %24 = arith.addf %20, %23 : vector<128x1xf32>
    %25 = math.rsqrt %24 : vector<128x1xf32>
    %26 = vector.broadcast %25 : vector<128x1xf32> to vector<128x128xf32>
    %27 = arith.mulf %22, %26 : vector<128x128xf32>
    %28 = vector.broadcast %8 : vector<1x128xf32> to vector<128x128xf32>
    %29 = arith.mulf %27, %28 : vector<128x128xf32>
    %30 = vector.broadcast %9 : vector<1x128xf32> to vector<128x128xf32>
    %31 = arith.addf %29, %30 : vector<128x128xf32>
    %32 = arith.negf %31 : vector<128x128xf32>
    %33 = math.exp %32 : vector<128x128xf32>
    %cst_16 = arith.constant 1.000000e+00 : f32
    %34 = vector.broadcast %cst_16 : f32 to vector<128x128xf32>
    %35 = arith.addf %34, %33 : vector<128x128xf32>
    %36 = arith.divf %34, %35 : vector<128x128xf32>
    %37 = arith.mulf %31, %36 : vector<128x128xf32>
    %38 = arith.truncf %37 : vector<128x128xf32> to vector<128x128xbf16>
    %c0_17 = arith.constant 0 : index
    %c0_18 = arith.constant 0 : index
    %39 = vector.load %arg7[%c0_17, %c0_18] : memref<128x128xbf16, #tpu.memory_space<vmem>>, vector<128x128xbf16>
    %cst_19 = arith.constant dense<0.000000e+00> : vector<128x128xf32>
    %40 = tpu.matmul %38, %39, %cst_19 {dimension_numbers = #tpu.dot_dimension_numbers<[1], [0], [0], [1], [0, 0, 1, 1], [], []>} : vector<128x128xbf16>, vector<128x128xbf16>, vector<128x128xf32> -> vector<128x128xf32>
    %c0_20 = arith.constant 0 : index
    %c0_21 = arith.constant 0 : index
    %41 = vector.load %arg8[%c0_20, %c0_21] : memref<1x128xf32, #tpu.memory_space<vmem>>, vector<1x128xf32>
    %42 = vector.broadcast %41 : vector<1x128xf32> to vector<128x128xf32>
    %43 = arith.addf %40, %42 : vector<128x128xf32>
    %c0_22 = arith.constant 0 : index
    %c0_23 = arith.constant 0 : index
    %44 = vector.load %arg9[%c0_22, %c0_23] : memref<1x128xf32, #tpu.memory_space<vmem>>, vector<1x128xf32>
    %c0_24 = arith.constant 0 : index
    %c0_25 = arith.constant 0 : index
    %45 = vector.load %arg10[%c0_24, %c0_25] : memref<1x128xf32, #tpu.memory_space<vmem>>, vector<1x128xf32>
    %cst_26 = arith.constant dense<0.000000e+00> : vector<128xf32>
    %46 = vector.multi_reduction <add>, %43, %cst_26 [1] : vector<128x128xf32> to vector<128xf32>
    %47 = vector.shape_cast %46 : vector<128xf32> to vector<128x1xf32>
    %cst_27 = arith.constant 1.280000e+02 : f32
    %48 = vector.broadcast %cst_27 : f32 to vector<128x1xf32>
    %49 = arith.divf %47, %48 : vector<128x1xf32>
    %50 = vector.broadcast %49 : vector<128x1xf32> to vector<128x128xf32>
    %51 = arith.subf %43, %50 : vector<128x128xf32>
    %52 = arith.mulf %51, %51 : vector<128x128xf32>
    %cst_28 = arith.constant dense<0.000000e+00> : vector<128xf32>
    %53 = vector.multi_reduction <add>, %52, %cst_28 [1] : vector<128x128xf32> to vector<128xf32>
    %54 = vector.shape_cast %53 : vector<128xf32> to vector<128x1xf32>
    %cst_29 = arith.constant 1.280000e+02 : f32
    %55 = vector.broadcast %cst_29 : f32 to vector<128x1xf32>
    %56 = arith.divf %54, %55 : vector<128x1xf32>
    %57 = vector.broadcast %49 : vector<128x1xf32> to vector<128x128xf32>
    %58 = arith.subf %43, %57 : vector<128x128xf32>
    %cst_30 = arith.constant 9.99999974E-6 : f32
    %59 = vector.broadcast %cst_30 : f32 to vector<128x1xf32>
    %60 = arith.addf %56, %59 : vector<128x1xf32>
    %61 = math.rsqrt %60 : vector<128x1xf32>
    %62 = vector.broadcast %61 : vector<128x1xf32> to vector<128x128xf32>
    %63 = arith.mulf %58, %62 : vector<128x128xf32>
    %64 = vector.broadcast %44 : vector<1x128xf32> to vector<128x128xf32>
    %65 = arith.mulf %63, %64 : vector<128x128xf32>
    %66 = vector.broadcast %45 : vector<1x128xf32> to vector<128x128xf32>
    %67 = arith.addf %65, %66 : vector<128x128xf32>
    %68 = arith.negf %67 : vector<128x128xf32>
    %69 = math.exp %68 : vector<128x128xf32>
    %cst_31 = arith.constant 1.000000e+00 : f32
    %70 = vector.broadcast %cst_31 : f32 to vector<128x128xf32>
    %71 = arith.addf %70, %69 : vector<128x128xf32>
    %72 = arith.divf %70, %71 : vector<128x128xf32>
    %73 = arith.mulf %67, %72 : vector<128x128xf32>
    %74 = arith.truncf %73 : vector<128x128xf32> to vector<128x128xbf16>
    %c0_32 = arith.constant 0 : index
    %c0_33 = arith.constant 0 : index
    %75 = vector.load %arg11[%c0_32, %c0_33] : memref<128x128xbf16, #tpu.memory_space<vmem>>, vector<128x128xbf16>
    %cst_34 = arith.constant dense<0.000000e+00> : vector<128x128xf32>
    %76 = tpu.matmul %74, %75, %cst_34 {dimension_numbers = #tpu.dot_dimension_numbers<[1], [0], [0], [1], [0, 0, 1, 1], [], []>} : vector<128x128xbf16>, vector<128x128xbf16>, vector<128x128xf32> -> vector<128x128xf32>
    %c0_35 = arith.constant 0 : index
    %c0_36 = arith.constant 0 : index
    %77 = vector.load %arg12[%c0_35, %c0_36] : memref<1x128xf32, #tpu.memory_space<vmem>>, vector<1x128xf32>
    %78 = vector.broadcast %77 : vector<1x128xf32> to vector<128x128xf32>
    %79 = arith.addf %76, %78 : vector<128x128xf32>
    %c0_37 = arith.constant 0 : index
    %c0_38 = arith.constant 0 : index
    %80 = vector.load %arg13[%c0_37, %c0_38] : memref<1x128xf32, #tpu.memory_space<vmem>>, vector<1x128xf32>
    %c0_39 = arith.constant 0 : index
    %c0_40 = arith.constant 0 : index
    %81 = vector.load %arg14[%c0_39, %c0_40] : memref<1x128xf32, #tpu.memory_space<vmem>>, vector<1x128xf32>
    %cst_41 = arith.constant dense<0.000000e+00> : vector<128xf32>
    %82 = vector.multi_reduction <add>, %79, %cst_41 [1] : vector<128x128xf32> to vector<128xf32>
    %83 = vector.shape_cast %82 : vector<128xf32> to vector<128x1xf32>
    %cst_42 = arith.constant 1.280000e+02 : f32
    %84 = vector.broadcast %cst_42 : f32 to vector<128x1xf32>
    %85 = arith.divf %83, %84 : vector<128x1xf32>
    %86 = vector.broadcast %85 : vector<128x1xf32> to vector<128x128xf32>
    %87 = arith.subf %79, %86 : vector<128x128xf32>
    %88 = arith.mulf %87, %87 : vector<128x128xf32>
    %cst_43 = arith.constant dense<0.000000e+00> : vector<128xf32>
    %89 = vector.multi_reduction <add>, %88, %cst_43 [1] : vector<128x128xf32> to vector<128xf32>
    %90 = vector.shape_cast %89 : vector<128xf32> to vector<128x1xf32>
    %cst_44 = arith.constant 1.280000e+02 : f32
    %91 = vector.broadcast %cst_44 : f32 to vector<128x1xf32>
    %92 = arith.divf %90, %91 : vector<128x1xf32>
    %93 = vector.broadcast %85 : vector<128x1xf32> to vector<128x128xf32>
    %94 = arith.subf %79, %93 : vector<128x128xf32>
    %cst_45 = arith.constant 9.99999974E-6 : f32
    %95 = vector.broadcast %cst_45 : f32 to vector<128x1xf32>
    %96 = arith.addf %92, %95 : vector<128x1xf32>
    %97 = math.rsqrt %96 : vector<128x1xf32>
    %98 = vector.broadcast %97 : vector<128x1xf32> to vector<128x128xf32>
    %99 = arith.mulf %94, %98 : vector<128x128xf32>
    %100 = vector.broadcast %80 : vector<1x128xf32> to vector<128x128xf32>
    %101 = arith.mulf %99, %100 : vector<128x128xf32>
    %102 = vector.broadcast %81 : vector<1x128xf32> to vector<128x128xf32>
    %103 = arith.addf %101, %102 : vector<128x128xf32>
    %104 = arith.negf %103 : vector<128x128xf32>
    %105 = math.exp %104 : vector<128x128xf32>
    %cst_46 = arith.constant 1.000000e+00 : f32
    %106 = vector.broadcast %cst_46 : f32 to vector<128x128xf32>
    %107 = arith.addf %106, %105 : vector<128x128xf32>
    %108 = arith.divf %106, %107 : vector<128x128xf32>
    %109 = arith.mulf %103, %108 : vector<128x128xf32>
    %110 = arith.truncf %109 : vector<128x128xf32> to vector<128x128xbf16>
    %c0_47 = arith.constant 0 : index
    %c0_48 = arith.constant 0 : index
    %111 = vector.load %arg15[%c0_47, %c0_48] : memref<128x128xbf16, #tpu.memory_space<vmem>>, vector<128x128xbf16>
    %cst_49 = arith.constant dense<0.000000e+00> : vector<128x128xf32>
    %112 = tpu.matmul %110, %111, %cst_49 {dimension_numbers = #tpu.dot_dimension_numbers<[1], [0], [0], [1], [0, 0, 1, 1], [], []>} : vector<128x128xbf16>, vector<128x128xbf16>, vector<128x128xf32> -> vector<128x128xf32>
    %c0_50 = arith.constant 0 : index
    %c0_51 = arith.constant 0 : index
    %113 = vector.load %arg16[%c0_50, %c0_51] : memref<1x128xf32, #tpu.memory_space<vmem>>, vector<1x128xf32>
    %114 = vector.broadcast %113 : vector<1x128xf32> to vector<128x128xf32>
    %115 = arith.addf %112, %114 : vector<128x128xf32>
    %116 = arith.truncf %109 : vector<128x128xf32> to vector<128x128xbf16>
    %c0_52 = arith.constant 0 : index
    %c0_53 = arith.constant 0 : index
    %117 = vector.load %arg17[%c0_52, %c0_53] : memref<128x128xbf16, #tpu.memory_space<vmem>>, vector<128x128xbf16>
    %cst_54 = arith.constant dense<0.000000e+00> : vector<128x128xf32>
    %118 = tpu.matmul %116, %117, %cst_54 {dimension_numbers = #tpu.dot_dimension_numbers<[1], [0], [0], [1], [0, 0, 1, 1], [], []>} : vector<128x128xbf16>, vector<128x128xbf16>, vector<128x128xf32> -> vector<128x128xf32>
    %c0_55 = arith.constant 0 : index
    %c0_56 = arith.constant 0 : index
    %119 = vector.load %arg18[%c0_55, %c0_56] : memref<1x128xf32, #tpu.memory_space<vmem>>, vector<1x128xf32>
    %120 = vector.broadcast %119 : vector<1x128xf32> to vector<128x128xf32>
    %121 = arith.addf %118, %120 : vector<128x128xf32>
    %cst_57 = arith.constant 0.000000e+00 : f32
    %122 = vector.broadcast %cst_57 : f32 to vector<128x128xf32>
    %123 = arith.maximumf %121, %122 : vector<128x128xf32>
    %124 = vector.broadcast %cst_57 : f32 to vector<128x128xf32>
    %125 = arith.subf %121, %124 : vector<128x128xf32>
    %126 = arith.cmpf one, %125, %125 : vector<128x128xf32>
    %127 = vector.broadcast %cst_57 : f32 to vector<128x128xf32>
    %128 = arith.addf %121, %127 : vector<128x128xf32>
    %129 = math.absf %125 : vector<128x128xf32>
    %cst_58 = arith.constant 0.000000e+00 : f32
    %130 = vector.broadcast %cst_58 : f32 to vector<128x128xf32>
    %131 = arith.subf %130, %129 : vector<128x128xf32>
    %132 = math.exp %131 : vector<128x128xf32>
    %133 = math.log1p %132 : vector<128x128xf32>
    %134 = arith.addf %123, %133 : vector<128x128xf32>
    %135 = arith.select %126, %128, %134 : vector<128x128xi1>, vector<128x128xf32>
    %cst_59 = arith.constant -1.000000e+01 : f32
    %136 = vector.broadcast %cst_59 : f32 to vector<128x128xf32>
    %137 = arith.cmpf olt, %121, %136 : vector<128x128xf32>
    %cst_60 = arith.constant 1.000000e-30 : f32
    %138 = vector.broadcast %cst_60 : f32 to vector<128x128xf32>
    %139 = arith.maximumf %135, %138 : vector<128x128xf32>
    %140 = math.log %139 : vector<128x128xf32>
    %141 = arith.select %137, %121, %140 : vector<128x128xi1>, vector<128x128xf32>
    %142 = arith.mulf %135, %1 : vector<128x128xf32>
    %143 = arith.addf %115, %142 : vector<128x128xf32>
    %c0_61 = arith.constant 0 : index
    %c0_62 = arith.constant 0 : index
    %144 = vector.load %arg25[%c0_61, %c0_62] : memref<128x128xf32, #tpu.memory_space<vmem>>, vector<128x128xf32>
    tpu.vector_store %arg25[%c0_61, %c0_62], %143 {strides = array<i32>} : memref<128x128xf32, #tpu.memory_space<vmem>>, vector<128x128xf32>,
    %145 = arith.truncf %143 : vector<128x128xf32> to vector<128x128xbf16>
    %c0_63 = arith.constant 0 : index
    %c0_64 = arith.constant 0 : index
    %146 = vector.load %arg19[%c0_63, %c0_64] : memref<128x128xbf16, #tpu.memory_space<vmem>>, vector<128x128xbf16>
    %cst_65 = arith.constant dense<0.000000e+00> : vector<128x128xf32>
    %147 = tpu.matmul %145, %146, %cst_65 {dimension_numbers = #tpu.dot_dimension_numbers<[1], [0], [0], [1], [0, 0, 1, 1], [], []>} : vector<128x128xbf16>, vector<128x128xbf16>, vector<128x128xf32> -> vector<128x128xf32>
    %c0_66 = arith.constant 0 : index
    %c0_67 = arith.constant 0 : index
    %148 = vector.load %arg20[%c0_66, %c0_67] : memref<1x128xf32, #tpu.memory_space<vmem>>, vector<1x128xf32>
    %149 = vector.broadcast %148 : vector<1x128xf32> to vector<128x128xf32>
    %150 = arith.addf %147, %149 : vector<128x128xf32>
    %c0_68 = arith.constant 0 : index
    %c0_69 = arith.constant 0 : index
    %151 = vector.load %arg21[%c0_68, %c0_69] : memref<1x128xf32, #tpu.memory_space<vmem>>, vector<1x128xf32>
    %c0_70 = arith.constant 0 : index
    %c0_71 = arith.constant 0 : index
    %152 = vector.load %arg22[%c0_70, %c0_71] : memref<1x128xf32, #tpu.memory_space<vmem>>, vector<1x128xf32>
    %cst_72 = arith.constant dense<0.000000e+00> : vector<128xf32>
    %153 = vector.multi_reduction <add>, %150, %cst_72 [1] : vector<128x128xf32> to vector<128xf32>
    %154 = vector.shape_cast %153 : vector<128xf32> to vector<128x1xf32>
    %cst_73 = arith.constant 1.280000e+02 : f32
    %155 = vector.broadcast %cst_73 : f32 to vector<128x1xf32>
    %156 = arith.divf %154, %155 : vector<128x1xf32>
    %157 = vector.broadcast %156 : vector<128x1xf32> to vector<128x128xf32>
    %158 = arith.subf %150, %157 : vector<128x128xf32>
    %159 = arith.mulf %158, %158 : vector<128x128xf32>
    %cst_74 = arith.constant dense<0.000000e+00> : vector<128xf32>
    %160 = vector.multi_reduction <add>, %159, %cst_74 [1] : vector<128x128xf32> to vector<128xf32>
    %161 = vector.shape_cast %160 : vector<128xf32> to vector<128x1xf32>
    %cst_75 = arith.constant 1.280000e+02 : f32
    %162 = vector.broadcast %cst_75 : f32 to vector<128x1xf32>
    %163 = arith.divf %161, %162 : vector<128x1xf32>
    %164 = vector.broadcast %156 : vector<128x1xf32> to vector<128x128xf32>
    %165 = arith.subf %150, %164 : vector<128x128xf32>
    %cst_76 = arith.constant 9.99999974E-6 : f32
    %166 = vector.broadcast %cst_76 : f32 to vector<128x1xf32>
    %167 = arith.addf %163, %166 : vector<128x1xf32>
    %168 = math.rsqrt %167 : vector<128x1xf32>
    %169 = vector.broadcast %168 : vector<128x1xf32> to vector<128x128xf32>
    %170 = arith.mulf %165, %169 : vector<128x128xf32>
    %171 = vector.broadcast %151 : vector<1x128xf32> to vector<128x128xf32>
    %172 = arith.mulf %170, %171 : vector<128x128xf32>
    %173 = vector.broadcast %152 : vector<1x128xf32> to vector<128x128xf32>
    %174 = arith.addf %172, %173 : vector<128x128xf32>
    %175 = arith.negf %174 : vector<128x128xf32>
    %176 = math.exp %175 : vector<128x128xf32>
    %cst_77 = arith.constant 1.000000e+00 : f32
    %177 = vector.broadcast %cst_77 : f32 to vector<128x128xf32>
    %178 = arith.addf %177, %176 : vector<128x128xf32>
    %179 = arith.divf %177, %178 : vector<128x128xf32>
    %180 = arith.mulf %174, %179 : vector<128x128xf32>
    %181 = arith.truncf %180 : vector<128x128xf32> to vector<128x128xbf16>
    %c0_78 = arith.constant 0 : index
    %c0_79 = arith.constant 0 : index
    %182 = vector.load %arg23[%c0_78, %c0_79] : memref<128x256xbf16, #tpu.memory_space<vmem>>, vector<128x256xbf16>
    %cst_80 = arith.constant dense<0.000000e+00> : vector<128x256xf32>
    %183 = tpu.matmul %181, %182, %cst_80 {dimension_numbers = #tpu.dot_dimension_numbers<[1], [0], [0], [1], [0, 0, 1, 1], [], []>} : vector<128x128xbf16>, vector<128x256xbf16>, vector<128x256xf32> -> vector<128x256xf32>
    %c0_81 = arith.constant 0 : index
    %c0_82 = arith.constant 0 : index
    %184 = vector.load %arg24[%c0_81, %c0_82] : memref<1x256xf32, #tpu.memory_space<vmem>>, vector<1x256xf32>
    %185 = vector.broadcast %184 : vector<1x256xf32> to vector<128x256xf32>
    %186 = arith.addf %183, %185 : vector<128x256xf32>
    %c128_i32 = arith.constant 128 : i32
    %187 = arith.muli %arg0, %c128_i32 : i32
    %188 = tpu.iota {dimensions = array<i32: 0>} : vector<128x1xi32>
    %189 = vector.broadcast %187 : i32 to vector<128x1xi32>
    %190 = arith.addi %189, %188 : vector<128x1xi32>
    %c256_i32 = arith.constant 256 : i32
    %191 = vector.broadcast %c256_i32 : i32 to vector<128x1xi32>
    %192 = arith.cmpi slt, %190, %191 : vector<128x1xi32>
    %193 = arith.extui %192 : vector<128x1xi1> to vector<128x1xi32>
    %194 = arith.sitofp %193 : vector<128x1xi32> to vector<128x1xf32>
    %195 = arith.mulf %135, %135 : vector<128x128xf32>
    %196 = arith.mulf %115, %115 : vector<128x128xf32>
    %197 = arith.addf %195, %196 : vector<128x128xf32>
    %cst_83 = arith.constant 1.000000e+00 : f32
    %198 = vector.broadcast %cst_83 : f32 to vector<128x128xf32>
    %199 = arith.subf %197, %198 : vector<128x128xf32>
    %cst_84 = arith.constant 2.000000e+00 : f32
    %200 = vector.broadcast %cst_84 : f32 to vector<128x128xf32>
    %201 = arith.mulf %200, %141 : vector<128x128xf32>
    %202 = arith.subf %199, %201 : vector<128x128xf32>
    %cst_85 = arith.constant dense<0.000000e+00> : vector<128xf32>
    %203 = vector.multi_reduction <add>, %202, %cst_85 [1] : vector<128x128xf32> to vector<128xf32>
    %204 = vector.shape_cast %203 : vector<128xf32> to vector<128x1xf32>
    %cst_86 = arith.constant 5.000000e-01 : f32
    %205 = vector.broadcast %cst_86 : f32 to vector<128x1xf32>
    %206 = arith.mulf %205, %204 : vector<128x1xf32>
    %207 = arith.mulf %206, %194 : vector<128x1xf32>
    %208 = vector.shape_cast %207 : vector<128x1xf32> to vector<1x128x1xf32>
    %cst_87 = arith.constant dense<0.000000e+00> : vector<1xf32>
    %209 = vector.multi_reduction <add>, %208, %cst_87 [1, 2] : vector<1x128x1xf32> to vector<1xf32>
    %210 = vector.shape_cast %209 : vector<1xf32> to vector<1x1x1xf32>
    %211 = vector.extract %210[0, 0, 0] : f32 from vector<1x1x1xf32>
    %212 = arith.subf %0, %186 : vector<128x256xf32>
    %213 = arith.mulf %212, %212 : vector<128x256xf32>
    %cst_88 = arith.constant dense<0.000000e+00> : vector<128xf32>
    %214 = vector.multi_reduction <add>, %213, %cst_88 [1] : vector<128x256xf32> to vector<128xf32>
    %215 = vector.shape_cast %214 : vector<128xf32> to vector<128x1xf32>
    %cst_89 = arith.constant 2.560000e+02 : f32
    %216 = vector.broadcast %cst_89 : f32 to vector<128x1xf32>
    %217 = arith.divf %215, %216 : vector<128x1xf32>
    %218 = arith.mulf %217, %194 : vector<128x1xf32>
    %219 = vector.shape_cast %218 : vector<128x1xf32> to vector<1x128x1xf32>
    %cst_90 = arith.constant dense<0.000000e+00> : vector<1xf32>
    %220 = vector.multi_reduction <add>, %219, %cst_90 [1, 2] : vector<1x128x1xf32> to vector<1xf32>
    %221 = vector.shape_cast %220 : vector<1xf32> to vector<1x1x1xf32>
    %222 = vector.extract %221[0, 0, 0] : f32 from vector<1x1x1xf32>
    %223 = vector.broadcast %222 : f32 to vector<1x8x128xf32>
    %c0_91 = arith.constant 0 : index
    %c0_92 = arith.constant 0 : index
    %c0_93 = arith.constant 0 : index
    %224 = vector.load %arg26[%c0_91, %c0_92, %c0_93] : memref<1x8x128xf32, #tpu.memory_space<vmem>>, vector<1x8x128xf32>
    tpu.vector_store %arg26[%c0_91, %c0_92, %c0_93], %223 {strides = array<i32>} : memref<1x8x128xf32, #tpu.memory_space<vmem>>, vector<1x8x128xf32>,
    %225 = vector.broadcast %211 : f32 to vector<1x8x128xf32>
    %c0_94 = arith.constant 0 : index
    %c0_95 = arith.constant 0 : index
    %c0_96 = arith.constant 0 : index
    %226 = vector.load %arg27[%c0_94, %c0_95, %c0_96] : memref<1x8x128xf32, #tpu.memory_space<vmem>>, vector<1x8x128xf32>
    tpu.vector_store %arg27[%c0_94, %c0_95, %c0_96], %225 {strides = array<i32>} : memref<1x8x128xf32, #tpu.memory_space<vmem>>, vector<1x8x128xf32>,
    return
  }
  func.func @transform_0(%arg0: i32) -> (i32, i32) {
    %c0_i32 = arith.constant 0 : i32
    %c0_i32_0 = arith.constant 0 : i32
    return %arg0, %c0_i32 : i32, i32
  }
  func.func @transform_1(%arg0: i32) -> (i32, i32) {
    %c0_i32 = arith.constant 0 : i32
    %c0_i32_0 = arith.constant 0 : i32
    return %arg0, %c0_i32 : i32, i32
  }
  func.func @transform_2(%arg0: i32) -> (i32, i32) {
    %c0_i32 = arith.constant 0 : i32
    %c0_i32_0 = arith.constant 0 : i32
    %c0_i32_1 = arith.constant 0 : i32
    return %c0_i32, %c0_i32_0 : i32, i32
  }
  func.func @transform_3(%arg0: i32) -> (i32, i32) {
    %c0_i32 = arith.constant 0 : i32
    %c0_i32_0 = arith.constant 0 : i32
    %c0_i32_1 = arith.constant 0 : i32
    return %c0_i32, %c0_i32_0 : i32, i32
  }
  func.func @transform_4(%arg0: i32) -> (i32, i32) {
    %c0_i32 = arith.constant 0 : i32
    %c0_i32_0 = arith.constant 0 : i32
    %c0_i32_1 = arith.constant 0 : i32
    return %c0_i32, %c0_i32_0 : i32, i32
  }
  func.func @transform_5(%arg0: i32) -> (i32, i32) {
    %c0_i32 = arith.constant 0 : i32
    %c0_i32_0 = arith.constant 0 : i32
    %c0_i32_1 = arith.constant 0 : i32
    return %c0_i32, %c0_i32_0 : i32, i32
  }
  func.func @transform_6(%arg0: i32) -> (i32, i32) {
    %c0_i32 = arith.constant 0 : i32
    %c0_i32_0 = arith.constant 0 : i32
    %c0_i32_1 = arith.constant 0 : i32
    return %c0_i32, %c0_i32_0 : i32, i32
  }
  func.func @transform_7(%arg0: i32) -> (i32, i32) {
    %c0_i32 = arith.constant 0 : i32
    %c0_i32_0 = arith.constant 0 : i32
    %c0_i32_1 = arith.constant 0 : i32
    return %c0_i32, %c0_i32_0 : i32, i32
  }
  func.func @transform_8(%arg0: i32) -> (i32, i32) {
    %c0_i32 = arith.constant 0 : i32
    %c0_i32_0 = arith.constant 0 : i32
    %c0_i32_1 = arith.constant 0 : i32
    return %c0_i32, %c0_i32_0 : i32, i32
  }
  func.func @transform_9(%arg0: i32) -> (i32, i32) {
    %c0_i32 = arith.constant 0 : i32
    %c0_i32_0 = arith.constant 0 : i32
    %c0_i32_1 = arith.constant 0 : i32
    return %c0_i32, %c0_i32_0 : i32, i32
  }
  func.func @transform_10(%arg0: i32) -> (i32, i32) {
    %c0_i32 = arith.constant 0 : i32
    %c0_i32_0 = arith.constant 0 : i32
    %c0_i32_1 = arith.constant 0 : i32
    return %c0_i32, %c0_i32_0 : i32, i32
  }
  func.func @transform_11(%arg0: i32) -> (i32, i32) {
    %c0_i32 = arith.constant 0 : i32
    %c0_i32_0 = arith.constant 0 : i32
    %c0_i32_1 = arith.constant 0 : i32
    return %c0_i32, %c0_i32_0 : i32, i32
  }
  func.func @transform_12(%arg0: i32) -> (i32, i32) {
    %c0_i32 = arith.constant 0 : i32
    %c0_i32_0 = arith.constant 0 : i32
    %c0_i32_1 = arith.constant 0 : i32
    return %c0_i32, %c0_i32_0 : i32, i32
  }
  func.func @transform_13(%arg0: i32) -> (i32, i32) {
    %c0_i32 = arith.constant 0 : i32
    %c0_i32_0 = arith.constant 0 : i32
    %c0_i32_1 = arith.constant 0 : i32
    return %c0_i32, %c0_i32_0 : i32, i32
  }
  func.func @transform_14(%arg0: i32) -> (i32, i32) {
    %c0_i32 = arith.constant 0 : i32
    %c0_i32_0 = arith.constant 0 : i32
    %c0_i32_1 = arith.constant 0 : i32
    return %c0_i32, %c0_i32_0 : i32, i32
  }
  func.func @transform_15(%arg0: i32) -> (i32, i32) {
    %c0_i32 = arith.constant 0 : i32
    %c0_i32_0 = arith.constant 0 : i32
    %c0_i32_1 = arith.constant 0 : i32
    return %c0_i32, %c0_i32_0 : i32, i32
  }
  func.func @transform_16(%arg0: i32) -> (i32, i32) {
    %c0_i32 = arith.constant 0 : i32
    %c0_i32_0 = arith.constant 0 : i32
    %c0_i32_1 = arith.constant 0 : i32
    return %c0_i32, %c0_i32_0 : i32, i32
  }
  func.func @transform_17(%arg0: i32) -> (i32, i32) {
    %c0_i32 = arith.constant 0 : i32
    %c0_i32_0 = arith.constant 0 : i32
    %c0_i32_1 = arith.constant 0 : i32
    return %c0_i32, %c0_i32_0 : i32, i32
  }
  func.func @transform_18(%arg0: i32) -> (i32, i32) {
    %c0_i32 = arith.constant 0 : i32
    %c0_i32_0 = arith.constant 0 : i32
    %c0_i32_1 = arith.constant 0 : i32
    return %c0_i32, %c0_i32_0 : i32, i32
  }
  func.func @transform_19(%arg0: i32) -> (i32, i32) {
    %c0_i32 = arith.constant 0 : i32
    %c0_i32_0 = arith.constant 0 : i32
    %c0_i32_1 = arith.constant 0 : i32
    return %c0_i32, %c0_i32_0 : i32, i32
  }
  func.func @transform_20(%arg0: i32) -> (i32, i32) {
    %c0_i32 = arith.constant 0 : i32
    %c0_i32_0 = arith.constant 0 : i32
    %c0_i32_1 = arith.constant 0 : i32
    return %c0_i32, %c0_i32_0 : i32, i32
  }
  func.func @transform_21(%arg0: i32) -> (i32, i32) {
    %c0_i32 = arith.constant 0 : i32
    %c0_i32_0 = arith.constant 0 : i32
    %c0_i32_1 = arith.constant 0 : i32
    return %c0_i32, %c0_i32_0 : i32, i32
  }
  func.func @transform_22(%arg0: i32) -> (i32, i32) {
    %c0_i32 = arith.constant 0 : i32
    %c0_i32_0 = arith.constant 0 : i32
    %c0_i32_1 = arith.constant 0 : i32
    return %c0_i32, %c0_i32_0 : i32, i32
  }
  func.func @transform_23(%arg0: i32) -> (i32, i32) {
    %c0_i32 = arith.constant 0 : i32
    %c0_i32_0 = arith.constant 0 : i32
    %c0_i32_1 = arith.constant 0 : i32
    return %c0_i32, %c0_i32_0 : i32, i32
  }
  func.func @transform_24(%arg0: i32) -> (i32, i32) {
    %c0_i32 = arith.constant 0 : i32
    %c0_i32_0 = arith.constant 0 : i32
    return %arg0, %c0_i32 : i32, i32
  }
  func.func @transform_25(%arg0: i32) -> (i32, i32, i32) {
    %c0_i32 = arith.constant 0 : i32
    %c0_i32_0 = arith.constant 0 : i32
    %c0_i32_1 = arith.constant 0 : i32
    return %arg0, %c0_i32, %c0_i32_0 : i32, i32, i32
  }
  func.func @transform_26(%arg0: i32) -> (i32, i32, i32) {
    %c0_i32 = arith.constant 0 : i32
    %c0_i32_0 = arith.constant 0 : i32
    %c0_i32_1 = arith.constant 0 : i32
    return %arg0, %c0_i32, %c0_i32_0 : i32, i32, i32
  }
}

</mosaic_0001>

<bundles_post_ra>
// kernel: tpu_custom_call.1
= control target key start
LH: loop header
LB: loop body
LE: loop exit
PB: predicated region body
PF: predicated region fallthrough
CT: control target
= control target key end

     0   :  { %s9963_s0 = inlined_call_operand.hbm [shape: f32[256,256], index: 0, kind: input, shape index: {}]   ;;  %s9964_s1 = inlined_call_operand.hbm [shape: f32[256,128], index: 1, kind: input, shape index: {}]   ;;  %s9965_s2 = inlined_call_operand.hbm [shape: bf16[256,128], index: 2, kind: input, shape index: {}]   ;;  %s9966_s3 = inlined_call_operand.vmem [shape: f32[1,128], index: 3, kind: input, shape index: {}]   ;;  %s9967_s4 = inlined_call_operand.vmem [shape: f32[1,128], index: 4, kind: input, shape index: {}]   ;;  %s9968_s5 = inlined_call_operand.hbm [shape: f32[1,128], index: 5, kind: input, shape index: {}]   ;;  %s9969_s6 = inlined_call_operand.hbm [shape: bf16[128,128], index: 6, kind: input, shape index: {}]   ;;  %s9970_s7 = inlined_call_operand.hbm [shape: f32[1,128], index: 7, kind: input, shape index: {}]   ;;  %s9971_s8 = inlined_call_operand.hbm [shape: f32[1,128], index: 8, kind: input, shape index: {}]   ;;  %s9972_s9 = inlined_call_operand.hbm [shape: f32[1,128], index: 9, kind: input, shape index: {}]   ;;  %s9973_s10 = inlined_call_operand.hbm [shape: bf16[128,128], index: 10, kind: input, shape index: {}]   ;;  %s9974_s11 = inlined_call_operand.hbm [shape: f32[1,128], index: 11, kind: input, shape index: {}]   ;;  %s9975_s12 = inlined_call_operand.hbm [shape: f32[1,128], index: 12, kind: input, shape index: {}]   ;;  %s9976_s13 = inlined_call_operand.hbm [shape: f32[1,128], index: 13, kind: input, shape index: {}]   ;;  %s9977_s14 = inlined_call_operand.hbm [shape: bf16[128,128], index: 14, kind: input, shape index: {}]   ;;  %s9978_s15 = inlined_call_operand.hbm [shape: f32[1,128], index: 15, kind: input, shape index: {}]   ;;  %s9979_s16 = inlined_call_operand.hbm [shape: bf16[128,128], index: 16, kind: input, shape index: {}]   ;;  %s9980_s17 = inlined_call_operand.hbm [shape: f32[1,128], index: 17, kind: input, shape index: {}]   ;;  %s9981_s18 = inlined_call_operand.vmem [shape: bf16[128,128], index: 18, kind: input, shape index: {}]   ;;  %s9982_s19 = inlined_call_operand.vmem [shape: f32[1,128], index: 19, kind: input, shape index: {}]   ;;  %s9983_s20 = inlined_call_operand.vmem [shape: f32[1,128], index: 20, kind: input, shape index: {}]   ;;  %s9984_s21 = inlined_call_operand.vmem [shape: f32[1,128], index: 21, kind: input, shape index: {}]   ;;  %s9985_s22 = inlined_call_operand.hbm [shape: bf16[128,256], index: 22, kind: input, shape index: {}]   ;;  %s9986_s23 = inlined_call_operand.vmem [shape: f32[1,256], index: 23, kind: input, shape index: {}]   ;;  %s9987_s24 = inlined_call_operand.hbm [shape: f32[256,128], index: 24, kind: output, shape index: {0}]   ;;  %s9988_s25 = inlined_call_operand.hbm [shape: f32[2,8,128], index: 25, kind: output, shape index: {1}]   ;;  %s9989_s26 = inlined_call_operand.hbm [shape: f32[2,8,128], index: 26, kind: output, shape index: {2}]  }
   0x1   :  { %10028 = sst [smem:[#allocation62_spill]] %s9963_s0 }
   0x2   :  { %10029 = sst [smem:[#allocation63_spill]] %s9964_s1 }
   0x3   :  { %10030 = sst [smem:[#allocation64_spill]] %s9965_s2 }
   0x4   :  { %10031 = sst [smem:[#allocation65_spill]] %s9966_s3 }
   0x5   :  { %10032 = sst [smem:[#allocation66_spill]] %s9967_s4 }
   0x6   :  { %10033 = sst [smem:[#allocation67_spill]] %s9968_s5 }
   0x7   :  { %10034 = sst [smem:[#allocation68_spill]] %s9969_s6 }
   0x8   :  { %10035 = sst [smem:[#allocation69_spill]] %s9970_s7 }
   0x9   :  { %10036 = sst [smem:[#allocation70_spill]] %s9971_s8 }
   0xa   :  { %10037 = sst [smem:[#allocation71_spill]] %s9972_s9 }
   0xb   :  { %10038 = sst [smem:[#allocation72_spill]] %s9973_s10 }
   0xc   :  { %10039 = sst [smem:[#allocation73_spill]] %s9974_s11 }
   0xd   :  { %10040 = sst [smem:[#allocation74_spill]] %s9975_s12 }
   0xe   :  { %10041 = sst [smem:[#allocation75_spill]] %s9976_s13 }
   0xf   :  { %10042 = sst [smem:[#allocation76_spill]] %s9977_s14 }
  0x10   :  { %10043 = sst [smem:[#allocation77_spill]] %s9978_s15 }
  0x11   :  { %10044 = sst [smem:[#allocation78_spill]] %s9979_s16 }
  0x12   :  { %10045 = sst [smem:[#allocation79_spill]] %s9980_s17 }
  0x13   :  { %10046 = sst [smem:[#allocation80_spill]] %s9981_s18 }
  0x14   :  { %10047 = sst [smem:[#allocation81_spill]] %s9982_s19 }
  0x15   :  { %10048 = sst [smem:[#allocation82_spill]] %s9983_s20 }
  0x16   :  { %10049 = sst [smem:[#allocation83_spill]] %s9984_s21 }
  0x17   :  { %10050 = sst [smem:[#allocation84_spill]] %s9986_s23 }
  0x18   :  { %10051 = sst [smem:[#allocation85_spill]] %s9987_s24 }
  0x19   :  { %10052 = sst [smem:[#allocation86_spill]] %s9988_s25 }
  0x1a   :  { %10053 = sst [smem:[#allocation87_spill]] %s9989_s26 }
  0x1b   :  { %32 = vsyncpa [#allocation3], 0 }
  0x1c   :  { %34 = vsyncpa [#allocation3 + $0x1], 0 }
  0x1d   :  { %35 = vsyncpa [#allocation6], 0 }
  0x1e   :  { %37 = vsyncpa [#allocation6 + $0x1], 0 }
  0x1f   :  { %38 = vsyncpa [#allocation9], 0 }
  0x20   :  { %39 = vsyncpa [#allocation12], 0 }
  0x21   :  { %40 = vsyncpa [#allocation15], 0 }
  0x22   :  { %41 = vsyncpa [#allocation18], 0 }
  0x23   :  { %42 = vsyncpa [#allocation21], 0 }
  0x24   :  { %43 = vsyncpa [#allocation24], 0 }
  0x25   :  { %44 = vsyncpa [#allocation27], 0 }
  0x26   :  { %45 = vsyncpa [#allocation4], 0 }
  0x27   :  { %47 = vsyncpa [#allocation4 + $0x1], 0 }
  0x28   :  { %48 = vsyncpa [#allocation31], 0 }
  0x29   :  { %50 = vsyncpa [#allocation31 + $0x1], 0  ;;  %s7233_s27 = smov 0   ;;  %s7235_s3 = smov 0  }
  0x2a   :  { %s7237_s7 = smov 0   ;;  %s7239_s28 = smov 0  }
  0x2b LB: > { %s7068_s8 = smov [#allocation7]   ;;  %s7254_s29 = sadd.s32 4294967295, %s7066_s28   ;;  %s7066_s28 = sphi %s7239_s28, %s10205_s28   ;;  %s7062_s7 = sphi %s7237_s7, %s10204_s7   ;;  %s7058_s3 = sphi %s7235_s3, %s10203_s3   ;;  %s7054_s27 = sphi %s7233_s27, %s10202_s27  }
  0x2c   : > { %s665_s4 = sshll.u32 %s7068_s8, 4  ;;  %p5045_p0 = scmp.ge.s32.totalorder %s7066_s28, 1  ;;  %s7259_s4 = int_to_ptr.vmem [resolvable:$true] %s665_s4 }
  0x2d   : > { %p10009_p1 = scmp.eq.s32.totalorder %s7254_s29, 0  ;;  %p653_p2 = scmp.lt.s32.totalorder %s7066_s28, 3 }
  0x2e   : > { %s7069_s9 = smov [#allocation8]   ;;  %s7070_s5 = smov [#allocation11]  }
  0x2f   : > { %p7261_p3 = pnand %p5045_p0, %p653_p2  ;;  %s685_s30 = sshll.u32 %s7069_s9, 4  ;;  %s7274_s30 = int_to_ptr.vmem [resolvable:$true] %s685_s30 }
  0x30   : > { %s709_s10 = sshll.u32 %s7070_s5, 4  ;;  %s10057_s8 = sld [smem:[#allocation64_spill]]  ;;  %s7276_s10 = int_to_ptr.vmem [resolvable:$true] %s709_s10 }
  0x31   : > { %s10054_s0 = scalar_select %p7261_p3, 1, 0 }
  0x32   : > { %p5680_p5 = pneg %p7261_p3 }
  0x33   : > { %10055 = sst [smem:[#allocation45_spill]] %s10054_s0 }
  0x34   : > { %p7270_p6 = pnand %p5680_p5, %p10009_p1 }
  0x36   : > { %s6424_s26 = scalar_lea.hbm %s10057_s8, 2048  ;;  %p7286_p8 = pneg %p7270_p6 }
  0x37   : > { %p6425_p7 = scmp.ne.s32.totalorder %s10057_s8, %s6424_s26  ;;  %p6431_p11 = scmp.lt.u32.totalorder %s6424_s26, %s10057_s8 }
  0x39   : > { %p6427_p9 = pnand %p7286_p8, %p6425_p7 }
  0x3b   : > { %p6428_p10 = pneg %p6427_p9 }
  0x3d   : > { %p6433_p12 = pnand %p6431_p11, %p6428_p10 }
  0x3f   : > { %6436 = shalt.err (!%p6433_p12)
}
  0x40   : > { %s6437_s24 = scalar_lea.vmem %s7259_s4, 2048  ;;  %p6445_p5 = scmp.lt.s32.totalorder %s7259_s4, %s7259_s4 }
  0x41   : > { %p6438_p13 = scmp.ne.s32.totalorder %s7259_s4, %s6437_s24  ;;  %p6446_p4 = scmp.lt.s32.totalorder %s6437_s24, %s6437_s24 }
  0x43   : > { %p6440_p0 = pnand %p6438_p13, %p7286_p8  ;;  %p6447_p7 = por %p6446_p4, %p6445_p5 }
  0x45   : > { %p6441_p2 = pneg %p6440_p0 }
  0x47   : > { %p6448_p9 = pnand %p6447_p7, %p6441_p2 }
  0x49   : > { %6451 = shalt.err (!%p6448_p9)
}
  0x4a   : > { %s10004_s25 = smov 64   ;;  %s10006_s23 = smov 4  }
  0x4b   : > { %5683 = dma.hbm_to_vmem [thread:$0]  (!%p7270_p6), %s10057_s8, 2048, %s7259_s4, [#allocation6], %s10004_s25, %s10004_s25, %s10006_s23  }
  0x4c   : > { %s10059_s21 = sld [smem:[#allocation67_spill]] }
  0x52   : > { %s6452_s24 = scalar_lea.hbm %s10059_s21, 16 }
  0x53   : > { %p6453_p4 = scmp.ne.s32.totalorder %s10059_s21, %s6452_s24  ;;  %p6459_p12 = scmp.lt.u32.totalorder %s6452_s24, %s10059_s21 }
  0x55   : > { %p6455_p10 = pnand %p6453_p4, %p7286_p8 }
  0x57   : > { %p6456_p11 = pneg %p6455_p10 }
  0x59   : > { %p6461_p13 = pnand %p6459_p12, %p6456_p11 }
  0x5b   : > { %6464 = shalt.err (!%p6461_p13)
}
  0x5c   : > { %s6465_s4 = scalar_lea.vmem %s7274_s30, 16  ;;  %s6472_s19 = scalar_lea.vmem %s7274_s30, 32 }
  0x5d   : > { %p6466_p0 = scmp.ne.s32.totalorder %s7274_s30, %s6465_s4  ;;  %p6473_p7 = scmp.lt.s32.totalorder %s7274_s30, %s7274_s30 }
  0x5e   : > { %p6474_p9 = scmp.lt.s32.totalorder %s6472_s19, %s6465_s4 }
  0x5f   : > { %p6468_p2 = pnand %p6466_p0, %p7286_p8 }
  0x60   : > { %p6475_p4 = por %p6474_p9, %p6473_p7 }
  0x61   : > { %p6469_p5 = pneg %p6468_p2 }
  0x63   : > { %p6476_p10 = pnand %p6475_p4, %p6469_p5 }
  0x65   : > { %6479 = shalt.err (!%p6476_p10)
}
  0x66   : > { %5686 = dma.hbm_to_vmem [thread:$0]  (!%p7270_p6), %s10059_s21, 16, %s7274_s30, [#allocation9]  }
  0x67   : > { %s10060_s6 = sld [smem:[#allocation69_spill]] }
  0x6d   : > { %s6480_s1 = scalar_lea.hbm %s10060_s6, 16 }
  0x6e   : > { %p6481_p11 = scmp.ne.s32.totalorder %s10060_s6, %s6480_s1  ;;  %p6487_p0 = scmp.lt.u32.totalorder %s6480_s1, %s10060_s6 }
  0x70   : > { %p6483_p12 = pnand %p6481_p11, %p7286_p8 }
  0x72   : > { %p6484_p13 = pneg %p6483_p12 }
  0x74   : > { %p6489_p2 = pnand %p6487_p0, %p6484_p13 }
  0x76   : > { %6492 = shalt.err (!%p6489_p2)
}
  0x77   : > { %s6493_s30 = scalar_lea.vmem %s7276_s10, 16  ;;  %s6500_s18 = scalar_lea.vmem %s7276_s10, 32 }
  0x78   : > { %p6494_p5 = scmp.ne.s32.totalorder %s7276_s10, %s6493_s30  ;;  %p6501_p4 = scmp.lt.s32.totalorder %s7276_s10, %s7276_s10 }
  0x79   : > { %p6502_p10 = scmp.lt.s32.totalorder %s6500_s18, %s6493_s30 }
  0x7a   : > { %p6496_p7 = pnand %p6494_p5, %p7286_p8 }
  0x7b   : > { %p6503_p11 = por %p6502_p10, %p6501_p4 }
  0x7c   : > { %p6497_p9 = pneg %p6496_p7 }
  0x7e   : > { %p6504_p12 = pnand %p6503_p11, %p6497_p9 }
  0x80   : > { %6507 = shalt.err (!%p6504_p12)
}
  0x81   : > { %5692 = dma.hbm_to_vmem [thread:$0]  (!%p7270_p6), %s10060_s6, 16, %s7276_s10, [#allocation12]  }
  0x82   : > { %s7073_s26 = smov [#allocation14]   ;;  %s7074_s5 = smov [#allocation17]  }
  0x83   : > { %s731_s1 = sshll.u32 %s7073_s26, 4  ;;  %s755_s24 = sshll.u32 %s7074_s5, 4  ;;  %s732_s1 = int_to_ptr.vmem [resolvable:$true] %s731_s1  ;;  %s756_s24 = int_to_ptr.vmem [resolvable:$true] %s755_s24 }
  0x84   : > { %s10061_s25 = sld [smem:[#allocation71_spill]] }
  0x8a   : > { %s6508_s30 = scalar_lea.hbm %s10061_s25, 16 }
  0x8b   : > { %p6509_p13 = scmp.ne.s32.totalorder %s10061_s25, %s6508_s30  ;;  %p6515_p5 = scmp.lt.u32.totalorder %s6508_s30, %s10061_s25 }
  0x8d   : > { %p6511_p0 = pnand %p6509_p13, %p7286_p8 }
  0x8f   : > { %p6512_p2 = pneg %p6511_p0 }
  0x91   : > { %p6517_p7 = pnand %p6515_p5, %p6512_p2 }
  0x93   : > { %6520 = shalt.err (!%p6517_p7)
}
  0x94   : > { %s6521_s10 = scalar_lea.vmem %s732_s1, 16  ;;  %s6528_s0 = scalar_lea.vmem %s732_s1, 32 }
  0x95   : > { %p6522_p9 = scmp.ne.s32.totalorder %s732_s1, %s6521_s10  ;;  %p6529_p11 = scmp.lt.s32.totalorder %s732_s1, %s732_s1 }
  0x96   : > { %p6530_p12 = scmp.lt.s32.totalorder %s6528_s0, %s6521_s10 }
  0x97   : > { %p6524_p4 = pnand %p6522_p9, %p7286_p8 }
  0x98   : > { %p6531_p1 = por %p6530_p12, %p6529_p11 }
  0x99   : > { %p6525_p10 = pneg %p6524_p4 }
  0x9b   : > { %p6532_p3 = pnand %p6531_p1, %p6525_p10 }
  0x9d   : > { %6535 = shalt.err (!%p6532_p3)
}
  0x9e   : > { %5698 = dma.hbm_to_vmem [thread:$0]  (!%p7270_p6), %s10061_s25, 16, %s732_s1, [#allocation15]  }
  0x9f   : > { %s10062_s11 = sld [smem:[#allocation73_spill]] }
  0xa5   : > { %s6536_s4 = scalar_lea.hbm %s10062_s11, 16 }
  0xa6   : > { %p6537_p13 = scmp.ne.s32.totalorder %s10062_s11, %s6536_s4  ;;  %p6543_p3 = scmp.lt.u32.totalorder %s6536_s4, %s10062_s11 }
  0xa8   : > { %p6539_p0 = pnand %p6537_p13, %p7286_p8 }
  0xaa   : > { %p6540_p1 = pneg %p6539_p0 }
  0xac   : > { %p6545_p2 = pnand %p6543_p3, %p6540_p1 }
  0xae   : > { %6548 = shalt.err (!%p6545_p2)
}
  0xaf   : > { %s6549_s10 = scalar_lea.vmem %s756_s24, 16  ;;  %s6556_s1 = scalar_lea.vmem %s756_s24, 32 }
  0xb0   : > { %p6550_p5 = scmp.ne.s32.totalorder %s756_s24, %s6549_s10  ;;  %p6557_p4 = scmp.lt.s32.totalorder %s756_s24, %s756_s24 }
  0xb1   : > { %p6558_p10 = scmp.lt.s32.totalorder %s6556_s1, %s6549_s10 }
  0xb2   : > { %p6552_p7 = pnand %p6550_p5, %p7286_p8 }
  0xb3   : > { %p6559_p11 = por %p6558_p10, %p6557_p4 }
  0xb4   : > { %p6553_p9 = pneg %p6552_p7 }
  0xb6   : > { %p6560_p12 = pnand %p6559_p11, %p6553_p9 }
  0xb8   : > { %6563 = shalt.err (!%p6560_p12)
}
  0xb9   : > { %5704 = dma.hbm_to_vmem [thread:$0]  (!%p7270_p6), %s10062_s11, 16, %s756_s24, [#allocation18]  }
  0xba   : > { %s7075_s26 = smov [#allocation20]   ;;  %s7076_s5 = smov [#allocation23]  }
  0xbb   : > { %s777_s8 = sshll.u32 %s7075_s26, 4  ;;  %s801_s4 = sshll.u32 %s7076_s5, 4  ;;  %s778_s8 = int_to_ptr.vmem [resolvable:$true] %s777_s8  ;;  %s802_s4 = int_to_ptr.vmem [resolvable:$true] %s801_s4 }
  0xbc   : > { %s10063_s13 = sld [smem:[#allocation75_spill]] }
  0xc2   : > { %s6564_s18 = scalar_lea.hbm %s10063_s13, 16 }
  0xc3   : > { %p6565_p13 = scmp.ne.s32.totalorder %s10063_s13, %s6564_s18  ;;  %p6571_p3 = scmp.lt.u32.totalorder %s6564_s18, %s10063_s13 }
  0xc5   : > { %p6567_p0 = pnand %p6565_p13, %p7286_p8 }
  0xc7   : > { %p6568_p1 = pneg %p6567_p0 }
  0xc9   : > { %p6573_p2 = pnand %p6571_p3, %p6568_p1 }
  0xcb   : > { %6576 = shalt.err (!%p6573_p2)
}
  0xcc   : > { %s6577_s24 = scalar_lea.vmem %s778_s8, 16  ;;  %s6584_s23 = scalar_lea.vmem %s778_s8, 32 }
  0xcd   : > { %p6578_p5 = scmp.ne.s32.totalorder %s778_s8, %s6577_s24  ;;  %p6585_p4 = scmp.lt.s32.totalorder %s778_s8, %s778_s8 }
  0xce   : > { %p6586_p10 = scmp.lt.s32.totalorder %s6584_s23, %s6577_s24 }
  0xcf   : > { %p6580_p7 = pnand %p6578_p5, %p7286_p8 }
  0xd0   : > { %p6587_p11 = por %p6586_p10, %p6585_p4 }
  0xd1   : > { %p6581_p9 = pneg %p6580_p7 }
  0xd3   : > { %p6588_p12 = pnand %p6587_p11, %p6581_p9 }
  0xd5   : > { %6591 = shalt.err (!%p6588_p12)
}
  0xd6   : > { %5710 = dma.hbm_to_vmem [thread:$0]  (!%p7270_p6), %s10063_s13, 16, %s778_s8, [#allocation21]  }
  0xd7   : > { %s10064_s15 = sld [smem:[#allocation77_spill]] }
  0xdd   : > { %s6592_s18 = scalar_lea.hbm %s10064_s15, 16 }
  0xde   : > { %p6593_p13 = scmp.ne.s32.totalorder %s10064_s15, %s6592_s18  ;;  %p6599_p3 = scmp.lt.u32.totalorder %s6592_s18, %s10064_s15 }
  0xe0   : > { %p6595_p0 = pnand %p6593_p13, %p7286_p8 }
  0xe2   : > { %p6596_p1 = pneg %p6595_p0 }
  0xe4   : > { %p6601_p2 = pnand %p6599_p3, %p6596_p1 }
  0xe6   : > { %6604 = shalt.err (!%p6601_p2)
}
  0xe7   : > { %s6605_s24 = scalar_lea.vmem %s802_s4, 16  ;;  %s6612_s8 = scalar_lea.vmem %s802_s4, 32 }
  0xe8   : > { %p6606_p5 = scmp.ne.s32.totalorder %s802_s4, %s6605_s24  ;;  %p6613_p4 = scmp.lt.s32.totalorder %s802_s4, %s802_s4 }
  0xe9   : > { %p6614_p10 = scmp.lt.s32.totalorder %s6612_s8, %s6605_s24 }
  0xea   : > { %p6608_p7 = pnand %p6606_p5, %p7286_p8 }
  0xeb   : > { %p6615_p11 = por %p6614_p10, %p6613_p4 }
  0xec   : > { %p6609_p9 = pneg %p6608_p7 }
  0xee   : > { %p6616_p12 = pnand %p6615_p11, %p6609_p9 }
  0xf0   : > { %6619 = shalt.err (!%p6616_p12)
}
  0xf1   : > { %5716 = dma.hbm_to_vmem [thread:$0]  (!%p7270_p6), %s10064_s15, 16, %s802_s4, [#allocation24]  }
  0xf2   : > { %s7077_s5 = smov [#allocation26]   ;;  %s7078_s30 = smov [#allocation10]  }
  0xf3   : > { %s825_s19 = sshll.u32 %s7077_s5, 4  ;;  %s695_s18 = sshll.u32 %s7078_s30, 4  ;;  %s826_s19 = int_to_ptr.vmem [resolvable:$true] %s825_s19  ;;  %s696_s18 = int_to_ptr.vmem [resolvable:$true] %s695_s18 }
  0xf4   : > { %s10065_s17 = sld [smem:[#allocation79_spill]] }
  0xfa   : > { %s6620_s1 = scalar_lea.hbm %s10065_s17, 16 }
  0xfb   : > { %p6621_p13 = scmp.ne.s32.totalorder %s10065_s17, %s6620_s1  ;;  %p6627_p3 = scmp.lt.u32.totalorder %s6620_s1, %s10065_s17 }
  0xfd   : > { %p6623_p0 = pnand %p6621_p13, %p7286_p8 }
  0xff   : > { %p6624_p1 = pneg %p6623_p0 }
 0x101   : > { %p6629_p2 = pnand %p6627_p3, %p6624_p1 }
 0x103   : > { %6632 = shalt.err (!%p6629_p2)
}
 0x104   : > { %s6633_s4 = scalar_lea.vmem %s826_s19, 16  ;;  %s6640_s26 = scalar_lea.vmem %s826_s19, 32 }
 0x105   : > { %p6634_p5 = scmp.ne.s32.totalorder %s826_s19, %s6633_s4  ;;  %p6641_p4 = scmp.lt.s32.totalorder %s826_s19, %s826_s19 }
 0x106   : > { %p6642_p10 = scmp.lt.s32.totalorder %s6640_s26, %s6633_s4 }
 0x107   : > { %p6636_p7 = pnand %p6634_p5, %p7286_p8 }
 0x108   : > { %p6643_p11 = por %p6642_p10, %p6641_p4 }
 0x109   : > { %p6637_p9 = pneg %p6636_p7 }
 0x10b   : > { %p6644_p12 = pnand %p6643_p11, %p6637_p9 }
 0x10d   : > { %6647 = shalt.err (!%p6644_p12)
}
 0x10e   : > { %5722 = dma.hbm_to_vmem [thread:$0]  (!%p7270_p6), %s10065_s17, 16, %s826_s19, [#allocation27]  }
 0x10f   : > { %s10066_s1 = sld [smem:[#allocation68_spill]] }
 0x115   : > { %s6648_s0 = scalar_lea.hbm %s10066_s1, 1024 }
 0x116   : > { %p6649_p13 = scmp.ne.s32.totalorder %s10066_s1, %s6648_s0  ;;  %p6655_p3 = scmp.lt.u32.totalorder %s6648_s0, %s10066_s1 }
 0x118   : > { %p6651_p0 = pnand %p6649_p13, %p7286_p8 }
 0x11a   : > { %p6652_p1 = pneg %p6651_p0 }
 0x11c   : > { %p6657_p2 = pnand %p6655_p3, %p6652_p1 }
 0x11e   : > { %6660 = shalt.err (!%p6657_p2)
}
 0x11f   : > { %s6661_s26 = scalar_lea.vmem %s696_s18, 1024  ;;  %p6669_p4 = scmp.lt.s32.totalorder %s696_s18, %s696_s18 }
 0x120   : > { %p6662_p5 = scmp.ne.s32.totalorder %s696_s18, %s6661_s26  ;;  %p6670_p10 = scmp.lt.s32.totalorder %s6661_s26, %s6661_s26 }
 0x122   : > { %p6664_p7 = pnand %p6662_p5, %p7286_p8  ;;  %p6671_p11 = por %p6670_p10, %p6669_p4 }
 0x124   : > { %p6665_p9 = pneg %p6664_p7 }
 0x126   : > { %p6672_p12 = pnand %p6671_p11, %p6665_p9 }
 0x128   : > { %6675 = shalt.err (!%p6672_p12)
}
 0x129   : > { %s10067_s19 = smov 4   ;;  %s10068_s5 = smov 64  }
 0x12a   : > { %5689 = dma.hbm_to_vmem [thread:$0]  (!%p7270_p6), %s10066_s1, 1024, %s696_s18, [#allocation9], %s10068_s5, %s10068_s5, %s10067_s19  }
 0x12b   : > { %s7079_s10 = smov [#allocation13]   ;;  %s7080_s24 = smov [#allocation16]  }
 0x12c   : > { %s720_s0 = sshll.u32 %s7079_s10, 4  ;;  %s741_s8 = sshll.u32 %s7080_s24, 4  ;;  %s721_s0 = int_to_ptr.vmem [resolvable:$true] %s720_s0  ;;  %s742_s8 = int_to_ptr.vmem [resolvable:$true] %s741_s8 }
 0x12d   : > { %s10069_s26 = sld [smem:[#allocation70_spill]] }
 0x133   : > { %s6676_s6 = scalar_lea.hbm %s10069_s26, 16 }
 0x134   : > { %p6677_p13 = scmp.ne.s32.totalorder %s10069_s26, %s6676_s6  ;;  %p6683_p3 = scmp.lt.u32.totalorder %s6676_s6, %s10069_s26 }
 0x136   : > { %p6679_p0 = pnand %p6677_p13, %p7286_p8 }
 0x138   : > { %p6680_p1 = pneg %p6679_p0 }
 0x13a   : > { %p6685_p2 = pnand %p6683_p3, %p6680_p1 }
 0x13c   : > { %6688 = shalt.err (!%p6685_p2)
}
 0x13d   : > { %s6689_s18 = scalar_lea.vmem %s721_s0, 16  ;;  %s6696_s20 = scalar_lea.vmem %s721_s0, 32 }
 0x13e   : > { %p6690_p5 = scmp.ne.s32.totalorder %s721_s0, %s6689_s18  ;;  %p6697_p4 = scmp.lt.s32.totalorder %s721_s0, %s721_s0 }
 0x13f   : > { %p6698_p10 = scmp.lt.s32.totalorder %s6696_s20, %s6689_s18 }
 0x140   : > { %p6692_p7 = pnand %p6690_p5, %p7286_p8 }
 0x141   : > { %p6699_p11 = por %p6698_p10, %p6697_p4 }
 0x142   : > { %p6693_p9 = pneg %p6692_p7 }
 0x144   : > { %p6700_p12 = pnand %p6699_p11, %p6693_p9 }
 0x146   : > { %6703 = shalt.err (!%p6700_p12)
}
 0x147   : > { %5695 = dma.hbm_to_vmem [thread:$0]  (!%p7270_p6), %s10069_s26, 16, %s721_s0, [#allocation12]  }
 0x148   : > { %s10070_s10 = sld [smem:[#allocation72_spill]] }
 0x14e   : > { %s6704_s24 = scalar_lea.hbm %s10070_s10, 1024 }
 0x14f   : > { %p6705_p13 = scmp.ne.s32.totalorder %s10070_s10, %s6704_s24  ;;  %p6711_p3 = scmp.lt.u32.totalorder %s6704_s24, %s10070_s10 }
 0x151   : > { %p6707_p0 = pnand %p6705_p13, %p7286_p8 }
 0x153   : > { %p6708_p1 = pneg %p6707_p0 }
 0x155   : > { %p6713_p2 = pnand %p6711_p3, %p6708_p1 }
 0x157   : > { %6716 = shalt.err (!%p6713_p2)
}
 0x158   : > { %s6717_s20 = scalar_lea.vmem %s742_s8, 1024  ;;  %p6725_p4 = scmp.lt.s32.totalorder %s742_s8, %s742_s8 }
 0x159   : > { %p6718_p5 = scmp.ne.s32.totalorder %s742_s8, %s6717_s20  ;;  %p6726_p10 = scmp.lt.s32.totalorder %s6717_s20, %s6717_s20 }
 0x15b   : > { %p6720_p7 = pnand %p6718_p5, %p7286_p8  ;;  %p6727_p11 = por %p6726_p10, %p6725_p4 }
 0x15d   : > { %p6721_p9 = pneg %p6720_p7 }
 0x15f   : > { %p6728_p12 = pnand %p6727_p11, %p6721_p9 }
 0x161   : > { %6731 = shalt.err (!%p6728_p12)
}
 0x162   : > { %5701 = dma.hbm_to_vmem [thread:$0]  (!%p7270_p6), %s10070_s10, 1024, %s742_s8, [#allocation15], %s10068_s5, %s10068_s5, %s10067_s19  }
 0x163   : > { %s7081_s13 = smov [#allocation19]   ;;  %s7082_s6 = smov [#allocation22]  }
 0x164   : > { %s766_s15 = sshll.u32 %s7081_s13, 4  ;;  %s787_s24 = sshll.u32 %s7082_s6, 4  ;;  %s767_s15 = int_to_ptr.vmem [resolvable:$true] %s766_s15  ;;  %s788_s24 = int_to_ptr.vmem [resolvable:$true] %s787_s24 }
 0x165   : > { %s10071_s12 = sld [smem:[#allocation74_spill]] }
 0x16b   : > { %s6732_s30 = scalar_lea.hbm %s10071_s12, 16 }
 0x16c   : > { %p6733_p13 = scmp.ne.s32.totalorder %s10071_s12, %s6732_s30  ;;  %p6739_p3 = scmp.lt.u32.totalorder %s6732_s30, %s10071_s12 }
 0x16e   : > { %p6735_p0 = pnand %p6733_p13, %p7286_p8 }
 0x170   : > { %p6736_p1 = pneg %p6735_p0 }
 0x172   : > { %p6741_p2 = pnand %p6739_p3, %p6736_p1 }
 0x174   : > { %6744 = shalt.err (!%p6741_p2)
}
 0x175   : > { %s6745_s8 = scalar_lea.vmem %s767_s15, 16  ;;  %s6752_s11 = scalar_lea.vmem %s767_s15, 32 }
 0x176   : > { %p6746_p5 = scmp.ne.s32.totalorder %s767_s15, %s6745_s8  ;;  %p6753_p4 = scmp.lt.s32.totalorder %s767_s15, %s767_s15 }
 0x177   : > { %p6754_p10 = scmp.lt.s32.totalorder %s6752_s11, %s6745_s8 }
 0x178   : > { %p6748_p7 = pnand %p6746_p5, %p7286_p8 }
 0x179   : > { %p6755_p11 = por %p6754_p10, %p6753_p4 }
 0x17a   : > { %p6749_p9 = pneg %p6748_p7 }
 0x17c   : > { %p6756_p12 = pnand %p6755_p11, %p6749_p9 }
 0x17e   : > { %6759 = shalt.err (!%p6756_p12)
}
 0x17f   : > { %5707 = dma.hbm_to_vmem [thread:$0]  (!%p7270_p6), %s10071_s12, 16, %s767_s15, [#allocation18]  }
 0x180   : > { %s10072_s14 = sld [smem:[#allocation76_spill]] }
 0x186   : > { %s6760_s4 = scalar_lea.hbm %s10072_s14, 1024 }
 0x187   : > { %p6761_p13 = scmp.ne.s32.totalorder %s10072_s14, %s6760_s4  ;;  %p6767_p3 = scmp.lt.u32.totalorder %s6760_s4, %s10072_s14 }
 0x189   : > { %p6763_p0 = pnand %p6761_p13, %p7286_p8 }
 0x18b   : > { %p6764_p1 = pneg %p6763_p0 }
 0x18d   : > { %p6769_p2 = pnand %p6767_p3, %p6764_p1 }
 0x18f   : > { %6772 = shalt.err (!%p6769_p2)
}
 0x190   : > { %s6773_s8 = scalar_lea.vmem %s788_s24, 1024  ;;  %p6781_p4 = scmp.lt.s32.totalorder %s788_s24, %s788_s24 }
 0x191   : > { %p6774_p5 = scmp.ne.s32.totalorder %s788_s24, %s6773_s8  ;;  %p6782_p10 = scmp.lt.s32.totalorder %s6773_s8, %s6773_s8 }
 0x193   : > { %p6776_p7 = pnand %p6774_p5, %p7286_p8  ;;  %p6783_p11 = por %p6782_p10, %p6781_p4 }
 0x195   : > { %p6777_p9 = pneg %p6776_p7 }
 0x197   : > { %p6784_p12 = pnand %p6783_p11, %p6777_p9 }
 0x199   : > { %6787 = shalt.err (!%p6784_p12)
}
 0x19a   : > { %5713 = dma.hbm_to_vmem [thread:$0]  (!%p7270_p6), %s10072_s14, 1024, %s788_s24, [#allocation21], %s10068_s5, %s10068_s5, %s10067_s19  }
 0x19b   : > { %s7083_s13 = smov [#allocation25]   ;;  %s7084_s1 = smov [#allocation28]  }
 0x19c   : > { %s811_s6 = sshll.u32 %s7083_s13, 4  ;;  %s847_s23 = sshll.u32 %s7084_s1, 4  ;;  %s812_s6 = int_to_ptr.vmem [resolvable:$true] %s811_s6  ;;  %s848_s23 = int_to_ptr.vmem [resolvable:$true] %s847_s23 }
 0x19d   : > { %s10073_s16 = sld [smem:[#allocation78_spill]] }
 0x1a3   : > { %s6788_s18 = scalar_lea.hbm %s10073_s16, 1024 }
 0x1a4   : > { %p6789_p13 = scmp.ne.s32.totalorder %s10073_s16, %s6788_s18  ;;  %p6795_p3 = scmp.lt.u32.totalorder %s6788_s18, %s10073_s16 }
 0x1a6   : > { %p6791_p0 = pnand %p6789_p13, %p7286_p8 }
 0x1a8   : > { %p6792_p1 = pneg %p6791_p0 }
 0x1aa   : > { %p6797_p2 = pnand %p6795_p3, %p6792_p1 }
 0x1ac   : > { %6800 = shalt.err (!%p6797_p2)
}
 0x1ad   : > { %s6801_s24 = scalar_lea.vmem %s812_s6, 1024  ;;  %p6809_p4 = scmp.lt.s32.totalorder %s812_s6, %s812_s6 }
 0x1ae   : > { %p6802_p5 = scmp.ne.s32.totalorder %s812_s6, %s6801_s24  ;;  %p6810_p10 = scmp.lt.s32.totalorder %s6801_s24, %s6801_s24 }
 0x1b0   : > { %p6804_p7 = pnand %p6802_p5, %p7286_p8  ;;  %p6811_p11 = por %p6810_p10, %p6809_p4 }
 0x1b2   : > { %p6805_p9 = pneg %p6804_p7 }
 0x1b4   : > { %p6812_p12 = pnand %p6811_p11, %p6805_p9 }
 0x1b6   : > { %6815 = shalt.err (!%p6812_p12)
}
 0x1b7   : > { %5719 = dma.hbm_to_vmem [thread:$0]  (!%p7270_p6), %s10073_s16, 1024, %s812_s6, [#allocation24], %s10068_s5, %s10068_s5, %s10067_s19  }
 0x1b8   : > { %s6816_s30 = scalar_lea.hbm %s9985_s22, 2048 }
 0x1b9   : > { %p6817_p13 = scmp.ne.s32.totalorder %s9985_s22, %s6816_s30  ;;  %p6823_p3 = scmp.lt.u32.totalorder %s6816_s30, %s9985_s22 }
 0x1bb   : > { %p6819_p0 = pnand %p6817_p13, %p7286_p8 }
 0x1bd   : > { %p6820_p1 = pneg %p6819_p0 }
 0x1bf   : > { %p6825_p2 = pnand %p6823_p3, %p6820_p1 }
 0x1c1   : > { %6828 = shalt.err (!%p6825_p2)
}
 0x1c2   : > { %s6829_s15 = scalar_lea.vmem %s848_s23, 2048  ;;  %p6837_p4 = scmp.lt.s32.totalorder %s848_s23, %s848_s23 }
 0x1c3   : > { %p6830_p5 = scmp.ne.s32.totalorder %s848_s23, %s6829_s15  ;;  %p6838_p10 = scmp.lt.s32.totalorder %s6829_s15, %s6829_s15 }
 0x1c5   : > { %p6832_p7 = pnand %p6830_p5, %p7286_p8  ;;  %p6839_p11 = por %p6838_p10, %p6837_p4 }
 0x1c7   : > { %p6833_p9 = pneg %p6832_p7 }
 0x1c9   : > { %p6840_p12 = pnand %p6839_p11, %p6833_p9 }
 0x1cb   : > { %6843 = shalt.err (!%p6840_p12)
}
 0x1cc   : > { %s10014_s19 = smov 128   ;;  %s10015_s9 = smov 8  }
 0x1cd   : > { %5725 = dma.hbm_to_vmem [thread:$0]  (!%p7270_p6), %s9985_s22, 2048, %s848_s23, [#allocation27], %s10014_s19, %s10014_s19, %s10015_s9  }
 0x1ce   : > { %s10013_s24 = sadd.s32 4294967294, %s7066_s28   ;;  %s7591_s11 = sadd.s32 1, %s7066_s28  }
 0x1cf   : > { %s63_s13 = sadd.s32 1, %s7062_s7  ;;  %s60_s1 = ssub.s32 %s7066_s28, %s7591_s11 }
 0x1d0   : > { %p70_p8 = scmp.ne.s32.totalorder %s7062_s7, %s7058_s3  ;;  %p61_p13 = scmp.eq.s32.totalorder %s60_s1, 0 }
 0x1d1   : > { %p71_p0 = scmp.eq.s32.totalorder %s7066_s28, 0  ;;  %p76_p1 = scmp.ne.s32.totalorder %s7058_s3, %s7054_s27 }
 0x1d2   : > { %p588_p3 = scmp.eq.s32.totalorder %s7254_s29, 1  ;;  %p10074_p5 = scmp.eq.s32.totalorder %s7254_s29, 0 }
 0x1d3   : > { %s7603_s2 = scalar_select %p61_p13, %s7062_s7, %s63_s13  }
 0x1d4   : > { %p72_p2 = por %p71_p0, %p70_p8  ;;  %p7607_p7 = por %p10074_p5, %p76_p1 }
 0x1d5   : > { %p7611_p6 = por %p588_p3, %p70_p8  ;;  %p594_p9 = scmp.eq.s32.totalorder %s10013_s24, 1 }
 0x1d6   : > { %p5758_p4 = scmp.lt.s32.totalorder %s7066_s28, 2  ;;  %s7619_s30 = sand.u32 1, %s7062_s7  }
 0x1d7   : > { %s10076_s23 = scalar_select %p7611_p6, 1, 0 }
 0x1d8   : > { %p7621_p10 = por %p594_p9, %p76_p1  ;;  %s5062_s20 = sshll.u32 %s7619_s30, 8 }
 0x1d9   : > { %s5283_s0 = sshll.u32 %s7066_s28, 12  ;;  %s10078_s5 = sld [smem:[#allocation62_spill]] }
 0x1da   : > { %s10077_s18 = scalar_select %p7621_p10, 1, 0 }
 0x1db   : > { %s868_s13 = scalar_lea.vmem [#allocation2], %s5062_s20  ;;  %p7632_p11 = pnand %p5758_p4, %p72_p2 }
 0x1dc   : > { %s876_s1 = sshll.u32 %s868_s13, 4  ;;  %s7636_s1 = int_to_ptr.vmem [resolvable:$true] %s876_s1 }
 0x1dd   : > { %p6846_p8 = pneg %p7632_p11 }
 0x1df   : > { %s7630_s6 = scalar_lea.hbm %s10078_s5, %s5283_s0  ;;  %s6849_s8 = scalar_lea.hbm %s10078_s5, 8192 }
 0x1e0   : > { %s6844_s9 = scalar_lea.hbm %s7630_s6, 4096  ;;  %p6850_p1 = scmp.lt.u32.totalorder %s7630_s6, %s10078_s5 }
 0x1e1   : > { %p6845_p12 = scmp.ne.s32.totalorder %s7630_s6, %s6844_s9  ;;  %p6851_p3 = scmp.lt.u32.totalorder %s6849_s8, %s6844_s9 }
 0x1e2   : > { %p6853_p5 = scmp.lt.u32.totalorder %s6844_s9, %s7630_s6 }
 0x1e3   : > { %p6847_p13 = pnand %p6846_p8, %p6845_p12  ;;  %p6852_p2 = por %p6851_p3, %p6850_p1 }
 0x1e5   : > { %p6848_p0 = pneg %p6847_p13  ;;  %p6854_p9 = por %p6853_p5, %p6852_p2 }
 0x1e7   : > { %p6855_p4 = pnand %p6854_p9, %p6848_p0 }
 0x1e9   : > { %6858 = shalt.err (!%p6855_p4)
}
 0x1ea   : > { %s6859_s19 = scalar_lea.vmem %s7636_s1, 4096  ;;  %s7087_s0 = smov [#allocation2]  }
 0x1eb   : > { %p6860_p12 = scmp.ne.s32.totalorder %s7636_s1, %s6859_s19  ;;  %s6864_s20 = sshll.u32 %s7087_s0, 4  ;;  %s6865_s20 = int_to_ptr.vmem [resolvable:$false] %s6864_s20 }
 0x1ec   : > { %s6866_s15 = scalar_lea.vmem %s6865_s20, 8192  ;;  %p6867_p6 = scmp.lt.s32.totalorder %s7636_s1, %s6865_s20 }
 0x1ed   : > { %p6862_p13 = pnand %p6860_p12, %p6846_p8  ;;  %p6868_p1 = scmp.lt.s32.totalorder %s6866_s15, %s6859_s19 }
 0x1ef   : > { %p6863_p10 = pneg %p6862_p13  ;;  %p6869_p3 = por %p6868_p1, %p6867_p6 }
 0x1f1   : > { %p6870_p2 = pnand %p6869_p3, %p6863_p10 }
 0x1f3   : > { %6873 = shalt.err (!%p6870_p2)
}
 0x1f4   : > { %s7088_s9 = smov 256   ;;  %s7089_s8 = smov 16  }
 0x1f5   : > { %s10080_s13 = scalar_lea.sflag [#allocation3], %s7619_s30  ;;  %s886_s0 = sand.u32 1, %s7066_s28  }
 0x1f6   : > { %5729 = dma.hbm_to_vmem [thread:$0]  (!%p7632_p11), %s7630_s6, 4096, %s7636_s1, %s10080_s13, %s7088_s9, %s7088_s9, %s7089_s8  }
 0x1f7   : > { %s5066_s5 = sshll.u32 %s7619_s30, 7  ;;  %s5284_s20 = sshll.u32 %s7066_s28, 11 }
 0x1f8   : > { %s890_s19 = scalar_lea.vmem [#allocation5], %s5066_s5  ;;  %s10081_s14 = sld [smem:[#allocation63_spill]] }
 0x1f9   : > { %s897_s15 = sshll.u32 %s890_s19, 4  ;;  %s7676_s17 = scalar_lea.sflag [#allocation6], %s886_s0  ;;  %s7674_s15 = int_to_ptr.vmem [resolvable:$true] %s897_s15 }
 0x1fe   : > { %s7672_s16 = scalar_lea.hbm %s10081_s14, %s5284_s20  ;;  %s6879_s12 = scalar_lea.hbm %s10081_s14, 4096 }
 0x1ff   : > { %s6874_s21 = scalar_lea.hbm %s7672_s16, 2048  ;;  %p6880_p5 = scmp.lt.u32.totalorder %s7672_s16, %s10081_s14 }
 0x200   : > { %p6875_p6 = scmp.ne.s32.totalorder %s7672_s16, %s6874_s21  ;;  %p6881_p9 = scmp.lt.u32.totalorder %s6879_s12, %s6874_s21 }
 0x201   : > { %p6883_p12 = scmp.lt.u32.totalorder %s6874_s21, %s7672_s16 }
 0x202   : > { %p6877_p10 = pnand %p6875_p6, %p6846_p8  ;;  %p6882_p4 = por %p6881_p9, %p6880_p5 }
 0x204   : > { %p6878_p0 = pneg %p6877_p10  ;;  %p6884_p13 = por %p6883_p12, %p6882_p4 }
 0x206   : > { %p6885_p1 = pnand %p6884_p13, %p6878_p0 }
 0x208   : > { %6888 = shalt.err (!%p6885_p1)
}
 0x209   : > { %s6889_s1 = scalar_lea.vmem %s7674_s15, 2048  ;;  %s7090_s9 = smov [#allocation5]  }
 0x20a   : > { %p6890_p3 = scmp.ne.s32.totalorder %s7674_s15, %s6889_s1  ;;  %s6894_s8 = sshll.u32 %s7090_s9, 4  ;;  %s6895_s8 = int_to_ptr.vmem [resolvable:$false] %s6894_s8 }
 0x20b   : > { %s6896_s13 = scalar_lea.vmem %s6895_s8, 4096  ;;  %p6897_p10 = scmp.lt.s32.totalorder %s7674_s15, %s6895_s8 }
 0x20c   : > { %p6892_p2 = pnand %p6890_p3, %p6846_p8  ;;  %p6898_p5 = scmp.lt.s32.totalorder %s6896_s13, %s6889_s1 }
 0x20e   : > { %p6893_p6 = pneg %p6892_p2  ;;  %p6899_p9 = por %p6898_p5, %p6897_p10 }
 0x210   : > { %p6900_p4 = pnand %p6899_p9, %p6893_p6 }
 0x212   : > { %6903 = shalt.err (!%p6900_p4)
}
 0x213   : > { %s10082_s21 = smov 8   ;;  %s10083_s0 = smov 128  }
 0x214   : > { %5732 = dma.hbm_to_vmem [thread:$0]  (!%p7632_p11), %s7672_s16, 2048, %s7674_s15, %s7676_s17, %s10083_s0, %s10083_s0, %s10082_s21  }
 0x215   : > { %s10084_s20 = sld [smem:[#allocation45_spill]] }
 0x21b   : > { %p10085_p8 = scmp.ne.s32.totalorder %s10084_s20, 0 }
 0x21d   : > { %909 = sbr.rel (%p10085_p8) target bundleno = 3843 (0xf03), region = 116 }
 0x224   : > { %s7708_s19 = sand.u32 1, %s7058_s3  }
 0x225   : > { %s5070_s30 = sshll.u32 %s7708_s19, 8  ;;  %s912_s5 = scalar_lea.sflag [#allocation3], %s7708_s19 }
 0x226   : > { %s7712_s12 = scalar_lea.vmem [#allocation2], %s5070_s30 }
 0x227   : > { %7005 = dma.done.wait (%p7607_p7), %s912_s5, 4096  }
 0x228   : > { %7007 = vsyncadd (%p7607_p7), %s912_s5, 4294963200  ;;  %s920_s16 = sand.u32 1, %s7254_s29   ;;  %s5071_s17 = sshll.u32 %s7708_s19, 7 }
 0x229   : > { %s921_s24 = scalar_lea.sflag [#allocation6], %s920_s16  ;;  %s7724_s15 = scalar_lea.vmem [#allocation5], %s5071_s17 }
 0x22a   : > { %7009 = dma.done.wait (%p7607_p7), %s921_s24, 2048  }
 0x22b   : > { %7011 = vsyncadd (%p7607_p7), %s921_s24, 4294965248  ;;  %p10086_p11 = scmp.eq.s32.totalorder %s7254_s29, 0 }
 0x22d   : > { %7013 = dma.done.wait (%p10086_p11), [#allocation6], 2048   ;;  %p10087_p0 = pmov %p10086_p11 }
 0x22f   : > { %7015 = vsyncadd (%p10087_p0), [#allocation6], 4294965248  ;;  %p10088_p12 = pmov %p10087_p0 }
 0x230   : > { %p10089_p13 = pmov %p10087_p0 }
 0x231   : > { %7017 = dma.done.wait (%p10088_p12), [#allocation9], 1040  }
 0x232   : > { %7019 = vsyncadd (%p10089_p13), [#allocation9], 4294966256  ;;  %p10090_p1 = pmov %p10087_p0 }
 0x233   : > { %p10091_p3 = pmov %p10087_p0 }
 0x234   : > { %7021 = dma.done.wait (%p10090_p1), [#allocation12], 32  }
 0x235   : > { %7023 = vsyncadd (%p10091_p3), [#allocation12], 4294967264  ;;  %p10092_p7 = pmov %p10087_p0 }
 0x236   : > { %p10093_p2 = pmov %p10087_p0 }
 0x237   : > { %7025 = dma.done.wait (%p10092_p7), [#allocation15], 1040  }
 0x238   : > { %7027 = vsyncadd (%p10093_p2), [#allocation15], 4294966256  ;;  %p10094_p6 = pmov %p10087_p0 }
 0x239   : > { %p10095_p10 = pmov %p10087_p0 }
 0x23a   : > { %7029 = dma.done.wait (%p10094_p6), [#allocation18], 32  }
 0x23b   : > { %7031 = vsyncadd (%p10095_p10), [#allocation18], 4294967264  ;;  %p10096_p5 = pmov %p10087_p0 }
 0x23c   : > { %p10097_p9 = pmov %p10087_p0 }
 0x23d   : > { %7033 = dma.done.wait (%p10096_p5), [#allocation21], 1040  }
 0x23e   : > { %7035 = vsyncadd (%p10097_p9), [#allocation21], 4294966256  ;;  %p10098_p4 = pmov %p10087_p0 }
 0x23f   : > { %p10099_p8 = pmov %p10087_p0 }
 0x240   : > { %7037 = dma.done.wait (%p10098_p4), [#allocation24], 1040  }
 0x241   : > { %7039 = vsyncadd (%p10099_p8), [#allocation24], 4294966256  ;;  %p10100_p11 = pmov %p10087_p0 }
 0x243   : > { %7041 = dma.done.wait (%p10100_p11), [#allocation27], 2064  }
 0x244   : > { %7043 = vsyncadd (%p10087_p0), [#allocation27], 4294965232  ;;  %v5832_v0 = vld [vmem:[#allocation7 + $0x40] sm:$0xff]   ;;  %v5834_v2 = vld [vmem:[#allocation7 + $0x48] sm:$0xff]   ;;  %s10101_s6 = sld [smem:[#allocation65_spill]]  ;;  %s10102_s8 = sld [smem:[#allocation66_spill]] }
 0x245   : > { %v5833_v1 = vld [vmem:[#allocation7] sm:$0xff]   ;;  %5286 = vmatprep.subr.bf16.mxu0 %v5832_v0  ;;  %v5835_v3 = vld [vmem:[#allocation7 + $0x8] sm:$0xff]   ;;  %v5836_v4 = vld [vmem:[#allocation7 + $0x50] sm:$0xff]   ;;  %s10103_s0 = sld [smem:[#allocation80_spill]]  ;;  %s8701_s5 = scalar_lea.vmem [#allocation29], %s5071_s17 }
 0x246   : > { %5287 = vmatpush3.bf16.msra.mxu0 %v5833_v1  ;;  %v5837_v5 = vld [vmem:[#allocation7 + $0x10] sm:$0xff]   ;;  %v5838_v6 = vld [vmem:[#allocation7 + $0x58] sm:$0xff]   ;;  %v5840_v8 = vld [vmem:[#allocation7 + $0x60] sm:$0xff]   ;;  %s10177_s24 = sld [smem:[#allocation81_spill]]  ;;  %s10187_s20 = sld [smem:[#allocation84_spill]] }
 0x247   : > { %5288 = vmatprep.subr.bf16.mxu0 %v5834_v2  ;;  %v5839_v7 = vld [vmem:[#allocation7 + $0x18] sm:$0xff]   ;;  %v5841_v9 = vld [vmem:[#allocation7 + $0x20] sm:$0xff]   ;;  %v5842_v10 = vld [vmem:[#allocation7 + $0x68] sm:$0xff]   ;;  %s9686_s30 = sshll.u32 %s7254_s29, 7  ;;  %s4719_s10 = sshll.u32 %s8701_s5, 4  ;;  %s9852_s10 = int_to_ptr.vmem [resolvable:$true] %s4719_s10 }
 0x248   : > { %v1073_v11 = vld [vmem:[%s7712_s12 + $0x8] sm:$0xff]  ;;  %v1075_v12 = vld [vmem:[%s7712_s12 + $0x18] sm:$0xff]  ;;  %v5844_v15 = vld [vmem:[#allocation7 + $0x70] sm:$0xff]   ;;  %s6904_s1 = scalar_lea.vmem %s9852_s10, 2048  ;;  %p10196_p13 = scmp.ne.s32.totalorder %s10076_s23, 0 }
 0x249   : > { %v1121_v13 = vpack.c.bf16 %v1075_v12, %v1073_v11  ;;  %v5843_v14 = vld [vmem:[#allocation7 + $0x28] sm:$0xff]   ;;  %v5845_v16 = vld [vmem:[#allocation7 + $0x30] sm:$0xff]   ;;  %v5846_v17 = vld [vmem:[#allocation7 + $0x78] sm:$0xff]   ;;  %p6905_p12 = scmp.ne.s32.totalorder %s9852_s10, %s6904_s1  ;;  %s7093_s9 = smov [#allocation29]  }
 0x24a   : > { %5289 = vmatpush3.bf16.msra.mxu0 %v5835_v3  ;;  %v5847_v18 = vld [vmem:[#allocation7 + $0x38] sm:$0xff]   ;;  %v1072_v19 = vld [vmem:[%s7712_s12] sm:$0xff]  ;;  %v1074_v20 = vld [vmem:[%s7712_s12 + $0x10] sm:$0xff] }
 0x24b   : > { %5290 = vmatprep.subr.bf16.mxu0 %v5836_v4  ;;  %1303 = vmatprep.mubr.bf16.mxu0 %v1121_v13  ;;  %v1077_v21 = vld [vmem:[%s7712_s12 + $0x28] sm:$0xff]  ;;  %v1079_v22 = vld [vmem:[%s7712_s12 + $0x38] sm:$0xff]  ;;  %v1120_v23 = vpack.c.bf16 %v1074_v20, %v1072_v19  ;;  %v1076_v25 = vld [vmem:[%s7712_s12 + $0x20] sm:$0xff]  ;;  %p6906_p1 = pnand %p6905_p12, %p10196_p13 }
 0x24c   : > { %v1123_v24 = vpack.c.bf16 %v1079_v22, %v1077_v21  ;;  %v1078_v26 = vld [vmem:[%s7712_s12 + $0x30] sm:$0xff]  ;;  %v1081_v27 = vld [vmem:[%s7712_s12 + $0x48] sm:$0xff]  ;;  %v1083_v28 = vld [vmem:[%s7712_s12 + $0x58] sm:$0xff] }
 0x24d   : > { %v1122_v29 = vpack.c.bf16 %v1078_v26, %v1076_v25  ;;  %v1125_v30 = vpack.c.bf16 %v1083_v28, %v1081_v27  ;;  %v1080_v31 = vld [vmem:[%s7712_s12 + $0x40] sm:$0xff]  ;;  %v1082_v32 = vld [vmem:[%s7712_s12 + $0x50] sm:$0xff]  ;;  %v1085_v33 = vld [vmem:[%s7712_s12 + $0x68] sm:$0xff]  ;;  %p6907_p3 = pneg %p6906_p1 }
 0x24e   : > { %5291 = vmatpush3.bf16.msra.mxu0 %v5837_v5  ;;  %v1087_v34 = vld [vmem:[%s7712_s12 + $0x78] sm:$0xff]  ;;  %v1124_v35 = vpack.c.bf16 %v1082_v32, %v1080_v31  ;;  %v1084_v37 = vld [vmem:[%s7712_s12 + $0x60] sm:$0xff]  ;;  %v1086_v38 = vld [vmem:[%s7712_s12 + $0x70] sm:$0xff] }
 0x24f   : > { %5292 = vmatprep.subr.bf16.mxu0 %v5838_v6  ;;  %v1127_v36 = vpack.c.bf16 %v1087_v34, %v1085_v33  ;;  %v1089_v39 = vld [vmem:[%s7712_s12 + $0x88] sm:$0xff]  ;;  %v1091_v40 = vld [vmem:[%s7712_s12 + $0x98] sm:$0xff]  ;;  %v1126_v41 = vpack.c.bf16 %v1086_v38, %v1084_v37  ;;  %v1088_v43 = vld [vmem:[%s7712_s12 + $0x80] sm:$0xff] }
 0x250   : > { %v1129_v42 = vpack.c.bf16 %v1091_v40, %v1089_v39  ;;  %v1090_v44 = vld [vmem:[%s7712_s12 + $0x90] sm:$0xff]  ;;  %v1093_v45 = vld [vmem:[%s7712_s12 + $0xa8] sm:$0xff]  ;;  %v1095_v46 = vld [vmem:[%s7712_s12 + $0xb8] sm:$0xff] }
 0x251   : > { %v1128_v47 = vpack.c.bf16 %v1090_v44, %v1088_v43  ;;  %v1131_v48 = vpack.c.bf16 %v1095_v46, %v1093_v45  ;;  %v1092_v49 = vld [vmem:[%s7712_s12 + $0xa0] sm:$0xff]  ;;  %v1094_v50 = vld [vmem:[%s7712_s12 + $0xb0] sm:$0xff]  ;;  %v1097_v51 = vld [vmem:[%s7712_s12 + $0xc8] sm:$0xff] }
 0x252   : > { %5293 = vmatpush3.bf16.msra.mxu0 %v5839_v7  ;;  %v1099_v52 = vld [vmem:[%s7712_s12 + $0xd8] sm:$0xff]  ;;  %v1130_v53 = vpack.c.bf16 %v1094_v50, %v1092_v49  ;;  %v1096_v55 = vld [vmem:[%s7712_s12 + $0xc0] sm:$0xff]  ;;  %v1098_v56 = vld [vmem:[%s7712_s12 + $0xd0] sm:$0xff] }
 0x253   : > { %5294 = vmatprep.subr.bf16.mxu0 %v5840_v8  ;;  %v1133_v54 = vpack.c.bf16 %v1099_v52, %v1097_v51  ;;  %v1101_v57 = vld [vmem:[%s7712_s12 + $0xe8] sm:$0xff]  ;;  %v1103_v58 = vld [vmem:[%s7712_s12 + $0xf8] sm:$0xff]  ;;  %v1132_v59 = vpack.c.bf16 %v1098_v56, %v1096_v55  ;;  %v1100_v61 = vld [vmem:[%s7712_s12 + $0xe0] sm:$0xff] }
 0x254   : > { %v1135_v60 = vpack.c.bf16 %v1103_v58, %v1101_v57  ;;  %v1102_v62 = vld [vmem:[%s7712_s12 + $0xf0] sm:$0xff]  ;;  %v7797_v2 = vld [vmem:[%s10101_s6] ss:$0 sm:$0xff]  ;;  %s10185_s6 = sld [smem:[#allocation82_spill]] }
 0x255   : > { %v1134_v63 = vpack.c.bf16 %v1102_v62, %v1100_v61 }
 0x256   : > { %5295 = vmatpush3.bf16.msra.mxu0 %v5841_v9 }
 0x257   : > { %5296 = vmatprep.subr.bf16.mxu0 %v5842_v10 }
 0x25a   : > { %5297 = vmatpush3.bf16.msra.mxu0 %v5843_v14 }
 0x25b   : > { %5298 = vmatprep.subr.bf16.mxu0 %v5844_v15 }
 0x25e   : > { %5299 = vmatpush3.bf16.msra.mxu0 %v5845_v16 }
 0x25f   : > { %5300 = vmatprep.subr.bf16.mxu0 %v5846_v17 }
 0x262   : > { %5301 = vmatpush3.bf16.msra.mxu0 %v5847_v18 }
 0x265   : > { %1304 = vmatmul.mubr.bf16.vlgmr.msra.gmra.mrb[0].mxu0 %v1120_v23 }
 0x266   : > { %1311 = vmatprep.mubr.bf16.mxu0 %v1123_v24 }
 0x26d   : > { %1312 = vmatmul.mubr.bf16.gmra.mrb[4].mxu0 %v1122_v29 }
 0x26e   : > { %1319 = vmatprep.mubr.bf16.mxu0 %v1125_v30 }
 0x275   : > { %1320 = vmatmul.mubr.bf16.gmra.mrb[8].mxu0 %v1124_v35 }
 0x276   : > { %1327 = vmatprep.mubr.bf16.mxu0 %v1127_v36 }
 0x27d   : > { %1328 = vmatmul.mubr.bf16.gmra.mrb[12].mxu0 %v1126_v41 }
 0x27e   : > { %1335 = vmatprep.mubr.bf16.mxu0 %v1129_v42 }
 0x285   : > { %1336 = vmatmul.mubr.bf16.gmra.mrb[16].mxu0 %v1128_v47 }
 0x286   : > { %1343 = vmatprep.mubr.bf16.mxu0 %v1131_v48 }
 0x28d   : > { %1344 = vmatmul.mubr.bf16.gmra.mrb[20].mxu0 %v1130_v53 }
 0x28e   : > { %1351 = vmatprep.mubr.bf16.mxu0 %v1133_v54 }
 0x295   : > { %1352 = vmatmul.mubr.bf16.gmra.mrb[24].mxu0 %v1132_v59 }
 0x296   : > { %1359 = vmatprep.mubr.bf16.mxu0 %v1135_v60 }
 0x29d   : > { %1360 = vmatmul.mubr.bf16.gmra.mrb[28].mxu0 %v1134_v63 }
 0x338   : > { %v5302_v0 = vpop.f32.mrb[0].mxu0 }
 0x339   : > { %v5303_v1 = vpop.f32.mrb[1].mxu0 }
 0x33a   : > { %v5304_v3 = vadd.f32 %v5303_v1, %v5302_v0  ;;  %v5305_v4 = vpop.f32.mrb[2].mxu0 }
 0x33b   : > { %v5306_v5 = vpop.f32.mrb[3].mxu0 }
 0x33c   : > { %v5307_v6 = vadd.f32 %v5306_v5, %v5305_v4  ;;  %v7800_v7 = vadd.f32 %v5304_v3, %v7797_v2 }
 0x33e   : > { %1370 = vadd.xlane.f32.xlu0 %v7800_v7  ;;  %v7804_v9 = vadd.f32 %v5307_v6, %v7797_v2 }
 0x340   : > { %v5308_v8 = vpop.f32.mrb[4].mxu0 }
 0x341   : > { %v5309_v10 = vpop.f32.mrb[5].mxu0 }
 0x342   : > { %v5310_v11 = vadd.f32 %v5309_v10, %v5308_v8  ;;  %v5311_v12 = vpop.f32.mrb[6].mxu0  ;;  %1372 = vadd.xlane.f32.xlu0 %v7804_v9 }
 0x343   : > { %v5312_v13 = vpop.f32.mrb[7].mxu0 }
 0x344   : > { %v5313_v14 = vadd.f32 %v5312_v13, %v5311_v12  ;;  %v7808_v15 = vadd.f32 %v5310_v11, %v7797_v2 }
 0x346   : > { %1374 = vadd.xlane.f32.xlu1 %v7808_v15  ;;  %v7812_v17 = vadd.f32 %v5313_v14, %v7797_v2 }
 0x348   : > { %v5314_v16 = vpop.f32.mrb[8].mxu0 }
 0x349   : > { %v5315_v18 = vpop.f32.mrb[9].mxu0 }
 0x34a   : > { %v5316_v19 = vadd.f32 %v5315_v18, %v5314_v16  ;;  %v5317_v20 = vpop.f32.mrb[10].mxu0  ;;  %1376 = vadd.xlane.f32.xlu1 %v7812_v17 }
 0x34b   : > { %v5318_v21 = vpop.f32.mrb[11].mxu0 }
 0x34c   : > { %v5319_v22 = vadd.f32 %v5318_v21, %v5317_v20  ;;  %v7816_v23 = vadd.f32 %v5316_v19, %v7797_v2 }
 0x34e   : > { %1378 = vadd.xlane.f32.xlu0 %v7816_v23  ;;  %v7820_v24 = vadd.f32 %v5319_v22, %v7797_v2 }
 0x350   : > { %v5320_v25 = vpop.f32.mrb[12].mxu0  ;;  %1380 = vadd.xlane.f32.xlu1 %v7820_v24 }
 0x351   : > { %v5321_v26 = vpop.f32.mrb[13].mxu0 }
 0x352   : > { %v5322_v27 = vadd.f32 %v5321_v26, %v5320_v25  ;;  %v5323_v28 = vpop.f32.mrb[14].mxu0 }
 0x353   : > { %v5324_v29 = vpop.f32.mrb[15].mxu0 }
 0x354   : > { %v5325_v30 = vadd.f32 %v5324_v29, %v5323_v28  ;;  %v7824_v31 = vadd.f32 %v5322_v27, %v7797_v2 }
 0x356   : > { %1382 = vadd.xlane.f32.xlu0 %v7824_v31  ;;  %v7828_v32 = vadd.f32 %v5325_v30, %v7797_v2 }
 0x358   : > { %v5326_v33 = vpop.f32.mrb[16].mxu0  ;;  %1384 = vadd.xlane.f32.xlu1 %v7828_v32 }
 0x359   : > { %v5327_v34 = vpop.f32.mrb[17].mxu0 }
 0x35a   : > { %v5328_v35 = vadd.f32 %v5327_v34, %v5326_v33  ;;  %v5329_v36 = vpop.f32.mrb[18].mxu0 }
 0x35b   : > { %v5330_v37 = vpop.f32.mrb[19].mxu0 }
 0x35c   : > { %v5331_v38 = vadd.f32 %v5330_v37, %v5329_v36  ;;  %v7832_v39 = vadd.f32 %v5328_v35, %v7797_v2 }
 0x35e   : > { %1386 = vadd.xlane.f32.xlu0 %v7832_v39  ;;  %v7836_v40 = vadd.f32 %v5331_v38, %v7797_v2 }
 0x360   : > { %v5332_v41 = vpop.f32.mrb[20].mxu0  ;;  %1388 = vadd.xlane.f32.xlu1 %v7836_v40 }
 0x361   : > { %v5333_v42 = vpop.f32.mrb[21].mxu0 }
 0x362   : > { %v5334_v43 = vadd.f32 %v5333_v42, %v5332_v41  ;;  %v5335_v44 = vpop.f32.mrb[22].mxu0 }
 0x363   : > { %v5336_v45 = vpop.f32.mrb[23].mxu0 }
 0x364   : > { %v5337_v46 = vadd.f32 %v5336_v45, %v5335_v44  ;;  %v7840_v47 = vadd.f32 %v5334_v43, %v7797_v2 }
 0x366   : > { %1390 = vadd.xlane.f32.xlu0 %v7840_v47  ;;  %v7844_v48 = vadd.f32 %v5337_v46, %v7797_v2 }
 0x368   : > { %v5338_v49 = vpop.f32.mrb[24].mxu0  ;;  %1392 = vadd.xlane.f32.xlu1 %v7844_v48 }
 0x369   : > { %v5339_v50 = vpop.f32.mrb[25].mxu0 }
 0x36a   : > { %v5340_v51 = vadd.f32 %v5339_v50, %v5338_v49  ;;  %v5341_v52 = vpop.f32.mrb[26].mxu0 }
 0x36b   : > { %v5342_v53 = vpop.f32.mrb[27].mxu0 }
 0x36c   : > { %v5343_v54 = vadd.f32 %v5342_v53, %v5341_v52  ;;  %v7848_v55 = vadd.f32 %v5340_v51, %v7797_v2 }
 0x36e   : > { %1394 = vadd.xlane.f32.xlu0 %v7848_v55  ;;  %v7852_v56 = vadd.f32 %v5343_v54, %v7797_v2  ;;  %v5848_v54 = vld [vmem:[#allocation10] sm:$0xff]  }
 0x36f   : > { %5430 = vmatprep.subr.bf16.mxu1 %v5848_v54 }
 0x370   : > { %v5344_v57 = vpop.f32.mrb[28].mxu0  ;;  %1396 = vadd.xlane.f32.xlu1 %v7852_v56  ;;  %5431 = vmatpush3.bf16.msra.mxu1 %v5848_v54 }
 0x371   : > { %v5345_v58 = vpop.f32.mrb[29].mxu0 }
 0x372   : > { %v5346_v59 = vadd.f32 %v5345_v58, %v5344_v57  ;;  %v5347_v60 = vpop.f32.mrb[30].mxu0 }
 0x373   : > { %v5348_v61 = vpop.f32.mrb[31].mxu0 }
 0x374   : > { %v5349_v62 = vadd.f32 %v5348_v61, %v5347_v60  ;;  %v7856_v63 = vadd.f32 %v5346_v59, %v7797_v2  ;;  %v5849_v59 = vld [vmem:[#allocation10 + $0x8] sm:$0xff]  }
 0x375   : > { %5432 = vmatprep.subr.bf16.mxu1 %v5849_v59 }
 0x376   : > { %1398 = vadd.xlane.f32.xlu0 %v7856_v63  ;;  %v7860_v0 = vadd.f32 %v5349_v62, %v7797_v2  ;;  %5433 = vmatpush3.bf16.msra.mxu1 %v5849_v59 }
 0x378   : > { %1400 = vadd.xlane.f32.xlu1 %v7860_v0 }
 0x3cb   : > { %v1371_v1 = vpop.xlane.xlu0 %1370 }
 0x3cc   : > { %v1403_v3 = vmul.f32 0.0078125, %v1371_v1  ;;  %v5850_v1 = vld [vmem:[#allocation10 + $0x10] sm:$0xff]  }
 0x3cd   : > { %5434 = vmatprep.subr.bf16.mxu1 %v5850_v1 }
 0x3ce   : > { %v7864_v4 = vsub.f32 %v7800_v7, %v1403_v3  ;;  %5435 = vmatpush3.bf16.msra.mxu1 %v5850_v1 }
 0x3cf   : > { %v1373_v5 = vpop.xlane.xlu0 %1372 }
 0x3d0   : > { %v1404_v6 = vmul.f32 0.0078125, %v1373_v5  ;;  %v1435_v8 = vmul.f32 %v7864_v4, %v7864_v4 }
 0x3d2   : > { %1451 = vadd.xlane.f32.xlu0 %v1435_v8  ;;  %v7869_v10 = vsub.f32 %v7804_v9, %v1404_v6  ;;  %v5851_v8 = vld [vmem:[#allocation10 + $0x18] sm:$0xff]  }
 0x3d3   : > { %v1375_v11 = vpop.xlane.xlu1 %1374  ;;  %5436 = vmatprep.subr.bf16.mxu1 %v5851_v8 }
 0x3d4   : > { %v1405_v12 = vmul.f32 0.0078125, %v1375_v11  ;;  %v1436_v2 = vmul.f32 %v7869_v10, %v7869_v10  ;;  %5437 = vmatpush3.bf16.msra.mxu1 %v5851_v8 }
 0x3d6   : > { %1453 = vadd.xlane.f32.xlu1 %v1436_v2  ;;  %v7874_v13 = vsub.f32 %v7808_v15, %v1405_v12  ;;  %v5852_v12 = vld [vmem:[#allocation10 + $0x20] sm:$0xff]   ;;  %v5854_v2 = vld [vmem:[#allocation10 + $0x30] sm:$0xff]  }
 0x3d7   : > { %v1377_v7 = vpop.xlane.xlu1 %1376  ;;  %5438 = vmatprep.subr.bf16.mxu1 %v5852_v12 }
 0x3d8   : > { %v1406_v14 = vmul.f32 0.0078125, %v1377_v7  ;;  %v1437_v16 = vmul.f32 %v7874_v13, %v7874_v13  ;;  %5439 = vmatpush3.bf16.msra.mxu1 %v5852_v12 }
 0x3da   : > { %1455 = vadd.xlane.f32.xlu0 %v1437_v16  ;;  %v7879_v18 = vsub.f32 %v7812_v17, %v1406_v14 }
 0x3db   : > { %v1379_v9 = vpop.xlane.xlu0 %1378 }
 0x3dc   : > { %v1407_v19 = vmul.f32 0.0078125, %v1379_v9  ;;  %v1438_v20 = vmul.f32 %v7879_v18, %v7879_v18 }
 0x3dd   : > { %v1381_v21 = vpop.xlane.xlu1 %1380 }
 0x3de   : > { %v1408_v22 = vmul.f32 0.0078125, %v1381_v21  ;;  %1457 = vadd.xlane.f32.xlu1 %v1438_v20  ;;  %v7884_v15 = vsub.f32 %v7816_v23, %v1407_v19 }
 0x3e0   : > { %v1439_v25 = vmul.f32 %v7884_v15, %v7884_v15  ;;  %v7889_v26 = vsub.f32 %v7820_v24, %v1408_v22 }
 0x3e2   : > { %1459 = vadd.xlane.f32.xlu0 %v1439_v25  ;;  %v1440_v17 = vmul.f32 %v7889_v26, %v7889_v26 }
 0x3e3   : > { %v1383_v27 = vpop.xlane.xlu0 %1382 }
 0x3e4   : > { %v1409_v28 = vmul.f32 0.0078125, %v1383_v27  ;;  %1461 = vadd.xlane.f32.xlu1 %v1440_v17 }
 0x3e5   : > { %v1385_v29 = vpop.xlane.xlu1 %1384 }
 0x3e6   : > { %v1410_v30 = vmul.f32 0.0078125, %v1385_v29  ;;  %v7894_v33 = vsub.f32 %v7824_v31, %v1409_v28 }
 0x3e8   : > { %v1441_v23 = vmul.f32 %v7894_v33, %v7894_v33  ;;  %v7899_v34 = vsub.f32 %v7828_v32, %v1410_v30  ;;  %v7946_v30 = vld [vmem:[%s10102_s8] ss:$0 sm:$0xff]  ;;  %s10186_s8 = sld [smem:[#allocation83_spill]] }
 0x3ea   : > { %1463 = vadd.xlane.f32.xlu0 %v1441_v23  ;;  %v1442_v24 = vmul.f32 %v7899_v34, %v7899_v34 }
 0x3eb   : > { %v1387_v35 = vpop.xlane.xlu0 %1386 }
 0x3ec   : > { %v1411_v36 = vmul.f32 0.0078125, %v1387_v35  ;;  %1465 = vadd.xlane.f32.xlu1 %v1442_v24 }
 0x3ed   : > { %v1389_v37 = vpop.xlane.xlu1 %1388 }
 0x3ee   : > { %v1412_v38 = vmul.f32 0.0078125, %v1389_v37  ;;  %v7904_v41 = vsub.f32 %v7832_v39, %v1411_v36  ;;  %v7949_v36 = vld [vmem:[#allocation8] ss:$0 sm:$0xff] }
 0x3f0   : > { %v1443_v31 = vmul.f32 %v7904_v41, %v7904_v41  ;;  %v7909_v42 = vsub.f32 %v7836_v40, %v1412_v38 }
 0x3f2   : > { %1467 = vadd.xlane.f32.xlu0 %v1443_v31  ;;  %v1444_v32 = vmul.f32 %v7909_v42, %v7909_v42 }
 0x3f3   : > { %v1391_v43 = vpop.xlane.xlu0 %1390 }
 0x3f4   : > { %v1413_v44 = vmul.f32 0.0078125, %v1391_v43  ;;  %1469 = vadd.xlane.f32.xlu1 %v1444_v32 }
 0x3f5   : > { %v1393_v45 = vpop.xlane.xlu1 %1392 }
 0x3f6   : > { %v1414_v46 = vmul.f32 0.0078125, %v1393_v45  ;;  %v7914_v49 = vsub.f32 %v7840_v47, %v1413_v44 }
 0x3f8   : > { %v1445_v39 = vmul.f32 %v7914_v49, %v7914_v49  ;;  %v7919_v50 = vsub.f32 %v7844_v48, %v1414_v46 }
 0x3fa   : > { %1471 = vadd.xlane.f32.xlu0 %v1445_v39  ;;  %v1446_v40 = vmul.f32 %v7919_v50, %v7919_v50 }
 0x3fb   : > { %v1395_v51 = vpop.xlane.xlu0 %1394 }
 0x3fc   : > { %v1415_v52 = vmul.f32 0.0078125, %v1395_v51  ;;  %1473 = vadd.xlane.f32.xlu1 %v1446_v40 }
 0x3fd   : > { %v1397_v53 = vpop.xlane.xlu1 %1396 }
 0x3fe   : > { %v1416_v57 = vmul.f32 0.0078125, %v1397_v53  ;;  %v7924_v58 = vsub.f32 %v7848_v55, %v1415_v52 }
 0x400   : > { %v1447_v47 = vmul.f32 %v7924_v58, %v7924_v58  ;;  %v7929_v48 = vsub.f32 %v7852_v56, %v1416_v57 }
 0x402   : > { %1475 = vadd.xlane.f32.xlu0 %v1447_v47  ;;  %v1448_v60 = vmul.f32 %v7929_v48, %v7929_v48 }
 0x403   : > { %v1399_v61 = vpop.xlane.xlu0 %1398 }
 0x404   : > { %v1417_v62 = vmul.f32 0.0078125, %v1399_v61  ;;  %1477 = vadd.xlane.f32.xlu1 %v1448_v60 }
 0x405   : > { %v1401_v55 = vpop.xlane.xlu1 %1400 }
 0x406   : > { %v1418_v3 = vmul.f32 0.0078125, %v1401_v55  ;;  %v7934_v5 = vsub.f32 %v7856_v63, %v1417_v62  ;;  %v5853_v63 = vld [vmem:[#allocation10 + $0x28] sm:$0xff]  }
 0x407   : > { %5440 = vmatprep.subr.bf16.mxu1 %v5853_v63 }
 0x408   : > { %v1449_v56 = vmul.f32 %v7934_v5, %v7934_v5  ;;  %v7939_v6 = vsub.f32 %v7860_v0, %v1418_v3  ;;  %5441 = vmatpush3.bf16.msra.mxu1 %v5853_v63  ;;  %v5855_v0 = vld [vmem:[#allocation10 + $0x38] sm:$0xff]  }
 0x409   : > { %5442 = vmatprep.subr.bf16.mxu1 %v5854_v2 }
 0x40a   : > { %1479 = vadd.xlane.f32.xlu0 %v1449_v56  ;;  %v1450_v11 = vmul.f32 %v7939_v6, %v7939_v6 }
 0x40c   : > { %1481 = vadd.xlane.f32.xlu1 %v1450_v11  ;;  %5443 = vmatpush3.bf16.msra.mxu1 %v5854_v2 }
 0x40d   : > { %5444 = vmatprep.subr.bf16.mxu1 %v5855_v0 }
 0x410   : > { %5445 = vmatpush3.bf16.msra.mxu1 %v5855_v0 }
 0x45f   : > { %v1452_v7 = vpop.xlane.xlu0 %1451 }
 0x460   : > { %v1483_v14 = vmul.f32 0.0078125, %v1452_v7 }
 0x462   : > { %v1499_v16 = vadd.f32 1e-05, %v1483_v14 }
 0x463   : > { %v1454_v9 = vpop.xlane.xlu1 %1453 }
 0x464   : > { %5912 = vrsqrt.f32 %v1499_v16  ;;  %v1484_v19 = vmul.f32 0.0078125, %v1454_v9 }
 0x466   : > { %v1500_v20 = vadd.f32 1e-05, %v1484_v19 }
 0x467   : > { %v1456_v21 = vpop.xlane.xlu0 %1455 }
 0x468   : > { %5914 = vrsqrt.f32 %v1500_v20  ;;  %v1485_v22 = vmul.f32 0.0078125, %v1456_v21 }
 0x46a   : > { %v1501_v25 = vadd.f32 1e-05, %v1485_v22 }
 0x46b   : > { %v1458_v17 = vpop.xlane.xlu1 %1457 }
 0x46c   : > { %5916 = vrsqrt.f32 %v1501_v25  ;;  %v1486_v27 = vmul.f32 0.0078125, %v1458_v17 }
 0x46e   : > { %v5913_v28 = vpop.eup %5912  ;;  %v1502_v29 = vadd.f32 1e-05, %v1486_v27 }
 0x46f   : > { %v1460_v23 = vpop.xlane.xlu0 %1459  ;;  %v1531_v24 = vmul.f32 %v5913_v28, %v7864_v4 }
 0x470   : > { %5918 = vrsqrt.f32 %v1502_v29  ;;  %v1487_v35 = vmul.f32 0.0078125, %v1460_v23 }
 0x471   : > { %v1462_v37 = vpop.xlane.xlu1 %1461  ;;  %v1553_v38 = vmul.f32 %v7946_v30, %v1531_v24 }
 0x472   : > { %v5915_v31 = vpop.eup %5914  ;;  %v1503_v32 = vadd.f32 1e-05, %v1487_v35  ;;  %v1488_v43 = vmul.f32 0.0078125, %v1462_v37 }
 0x473   : > { %v1532_v44 = vmul.f32 %v5915_v31, %v7869_v10  ;;  %v7954_v45 = vadd.f32 %v7949_v36, %v1553_v38 }
 0x474   : > { %5920 = vrsqrt.f32 %v1503_v32  ;;  %v1504_v46 = vadd.f32 1e-05, %v1488_v43 }
 0x475   : > { %v1554_v39 = vmul.f32 %v7946_v30, %v1532_v44  ;;  %v5109_v4 = vmul.f32 -1.442695, %v7954_v45 }
 0x476   : > { %v5917_v40 = vpop.eup %5916  ;;  %5922 = vrsqrt.f32 %v1504_v46 }
 0x477   : > { %v1464_v51 = vpop.xlane.xlu0 %1463  ;;  %v7959_v52 = vadd.f32 %v7949_v36, %v1554_v39  ;;  %5924 = vpow2.f32 %v5109_v4  ;;  %v1533_v53 = vmul.f32 %v5917_v40, %v7874_v13 }
 0x478   : > { %v1489_v54 = vmul.f32 0.0078125, %v1464_v51 }
 0x479   : > { %v1466_v10 = vpop.xlane.xlu1 %1465  ;;  %v5110_v57 = vmul.f32 -1.442695, %v7959_v52  ;;  %v1555_v47 = vmul.f32 %v7946_v30, %v1533_v53 }
 0x47a   : > { %v5919_v59 = vpop.eup %5918  ;;  %v1505_v60 = vadd.f32 1e-05, %v1489_v54  ;;  %v1490_v61 = vmul.f32 0.0078125, %v1466_v10 }
 0x47b   : > { %5926 = vpow2.f32 %v5110_v57  ;;  %v1534_v62 = vmul.f32 %v5919_v59, %v7879_v18  ;;  %v7966_v55 = vadd.f32 %v7949_v36, %v1555_v47 }
 0x47c   : > { %5928 = vrsqrt.f32 %v1505_v60  ;;  %v1506_v1 = vadd.f32 1e-05, %v1490_v61 }
 0x47d   : > { %v1556_v3 = vmul.f32 %v7946_v30, %v1534_v62  ;;  %v5111_v13 = vmul.f32 -1.442695, %v7966_v55 }
 0x47e   : > { %v5921_v56 = vpop.eup %5920  ;;  %5930 = vrsqrt.f32 %v1506_v1 }
 0x47f   : > { %v1468_v8 = vpop.xlane.xlu0 %1467  ;;  %v7971_v11 = vadd.f32 %v7949_v36, %v1556_v3  ;;  %5932 = vpow2.f32 %v5111_v13  ;;  %v1535_v12 = vmul.f32 %v5921_v56, %v7884_v15 }
 0x480   : > { %v5923_v63 = vpop.eup %5922  ;;  %v1491_v18 = vmul.f32 0.0078125, %v1468_v8 }
 0x481   : > { %v5925_v2 = vpop.eup %5924  ;;  %v1470_v0 = vpop.xlane.xlu1 %1469  ;;  %v5112_v7 = vmul.f32 -1.442695, %v7971_v11  ;;  %v1536_v14 = vmul.f32 %v5923_v63, %v7889_v26  ;;  %v1557_v16 = vmul.f32 %v7946_v30, %v1535_v12 }
 0x482   : > { %v1507_v9 = vadd.f32 1e-05, %v1491_v18  ;;  %v1492_v19 = vmul.f32 0.0078125, %v1470_v0  ;;  %v1639_v20 = vadd.f32 1.0, %v5925_v2 }
 0x483   : > { %5934 = vpow2.f32 %v5112_v7  ;;  %v1558_v21 = vmul.f32 %v7946_v30, %v1536_v14  ;;  %v7979_v22 = vadd.f32 %v7949_v36, %v1557_v16 }
 0x484   : > { %5936 = vrsqrt.f32 %v1507_v9  ;;  %v1508_v15 = vadd.f32 1e-05, %v1492_v19 }
 0x485   : > { %v5927_v25 = vpop.eup %5926  ;;  %5938 = vrcp.f32 %v1639_v20  ;;  %v7982_v17 = vadd.f32 %v7949_v36, %v1558_v21  ;;  %v5113_v26 = vmul.f32 -1.442695, %v7979_v22 }
 0x486   : > { %v5929_v27 = vpop.eup %5928  ;;  %5940 = vrsqrt.f32 %v1508_v15  ;;  %v1640_v28 = vadd.f32 1.0, %v5927_v25 }
 0x487   : > { %v1472_v29 = vpop.xlane.xlu0 %1471  ;;  %5942 = vpow2.f32 %v5113_v26  ;;  %v5114_v23 = vmul.f32 -1.442695, %v7982_v17  ;;  %v1537_v24 = vmul.f32 %v5929_v27, %v7894_v33 }
 0x488   : > { %v5931_v35 = vpop.eup %5930  ;;  %v1493_v37 = vmul.f32 0.0078125, %v1472_v29  ;;  %5944 = vrcp.f32 %v1640_v28 }
 0x489   : > { %v5933_v38 = vpop.eup %5932  ;;  %v1474_v31 = vpop.xlane.xlu1 %1473  ;;  %5946 = vpow2.f32 %v5114_v23  ;;  %v1538_v32 = vmul.f32 %v5931_v35, %v7899_v34  ;;  %v1559_v43 = vmul.f32 %v7946_v30, %v1537_v24 }
 0x48a   : > { %v1509_v44 = vadd.f32 1e-05, %v1493_v37  ;;  %v1494_v46 = vmul.f32 0.0078125, %v1474_v31  ;;  %v1641_v39 = vadd.f32 1.0, %v5933_v38 }
 0x48b   : > { %v1560_v4 = vmul.f32 %v7946_v30, %v1538_v32  ;;  %v7991_v40 = vadd.f32 %v7949_v36, %v1559_v43 }
 0x48c   : > { %5948 = vrsqrt.f32 %v1509_v44  ;;  %v1510_v33 = vadd.f32 1e-05, %v1494_v46 }
 0x48d   : > { %v5935_v51 = vpop.eup %5934  ;;  %5950 = vrcp.f32 %v1641_v39  ;;  %v7994_v53 = vadd.f32 %v7949_v36, %v1560_v4  ;;  %v5115_v54 = vmul.f32 -1.442695, %v7991_v40 }
 0x48e   : > { %v5937_v34 = vpop.eup %5936  ;;  %5952 = vrsqrt.f32 %v1510_v33  ;;  %v1642_v10 = vadd.f32 1.0, %v5935_v51 }
 0x48f   : > { %v5939_v57 = vpop.eup %5938  ;;  %v1476_v47 = vpop.xlane.xlu0 %1475  ;;  %5954 = vpow2.f32 %v5115_v54  ;;  %v5116_v59 = vmul.f32 -1.442695, %v7994_v53  ;;  %v1539_v60 = vmul.f32 %v5937_v34, %v7904_v41 }
 0x490   : > { %v5941_v61 = vpop.eup %5940  ;;  %v1495_v62 = vmul.f32 0.0078125, %v1476_v47  ;;  %5956 = vrcp.f32 %v1642_v10  ;;  %v1687_v0 = vmul.f32 %v5939_v57, %v7954_v45 }
 0x491   : > { %v5943_v1 = vpop.eup %5942  ;;  %v1478_v3 = vpop.xlane.xlu1 %1477  ;;  %5958 = vpow2.f32 %v5116_v59  ;;  %v1540_v13 = vmul.f32 %v5941_v61, %v7909_v42  ;;  %v1561_v56 = vmul.f32 %v7946_v30, %v1539_v60 }
 0x492   : > { %v5945_v8 = vpop.eup %5944  ;;  %v1511_v12 = vadd.f32 1e-05, %v1495_v62  ;;  %v1496_v63 = vmul.f32 0.0078125, %v1478_v3  ;;  %v1643_v18 = vadd.f32 1.0, %v5943_v1 }
 0x493   : > { %v5947_v2 = vpop.eup %5946  ;;  %v1688_v7 = vmul.f32 %v5945_v8, %v7959_v52  ;;  %v1562_v41 = vmul.f32 %v7946_v30, %v1540_v13  ;;  %v8005_v14 = vadd.f32 %v7949_v36, %v1561_v56 }
 0x494   : > { %5960 = vrsqrt.f32 %v1511_v12  ;;  %v1512_v16 = vadd.f32 1e-05, %v1496_v63  ;;  %v1644_v9 = vadd.f32 1.0, %v5947_v2 }
 0x495   : > { %v1703_v42 = vpack.c.bf16 %v1688_v7, %v1687_v0  ;;  %5962 = vrcp.f32 %v1643_v18  ;;  %v8008_v19 = vadd.f32 %v7949_v36, %v1562_v41  ;;  %v5117_v20 = vmul.f32 -1.442695, %v8005_v14 }
 0x496   : > { %v5949_v21 = vpop.eup %5948  ;;  %5964 = vrsqrt.f32 %v1512_v16 }
 0x497   : > { %v5951_v45 = vpop.eup %5950  ;;  %5446 = vmatprep.mubr.bf16.mxu1 %v1703_v42  ;;  %v1480_v52 = vpop.xlane.xlu0 %1479  ;;  %5966 = vrcp.f32 %v1644_v9  ;;  %v5118_v15 = vmul.f32 -1.442695, %v8008_v19  ;;  %v1541_v25 = vmul.f32 %v5949_v21, %v7914_v49 }
 0x498   : > { %v5953_v26 = vpop.eup %5952  ;;  %v1497_v27 = vmul.f32 0.0078125, %v1480_v52  ;;  %5968 = vpow2.f32 %v5117_v20  ;;  %v1689_v43 = vmul.f32 %v5951_v45, %v7966_v55 }
 0x499   : > { %v5955_v28 = vpop.eup %5954  ;;  %v1482_v29 = vpop.xlane.xlu1 %1481  ;;  %5970 = vpow2.f32 %v5118_v15  ;;  %v1542_v23 = vmul.f32 %v5953_v26, %v7919_v50  ;;  %v1563_v24 = vmul.f32 %v7946_v30, %v1541_v25 }
 0x49a   : > { %v5957_v35 = vpop.eup %5956  ;;  %v1513_v37 = vadd.f32 1e-05, %v1497_v27  ;;  %v1498_v38 = vmul.f32 0.0078125, %v1482_v29  ;;  %v1645_v31 = vadd.f32 1.0, %v5955_v28 }
 0x49b   : > { %v5959_v32 = vpop.eup %5958  ;;  %v1690_v44 = vmul.f32 %v5957_v35, %v7971_v11  ;;  %v1564_v49 = vmul.f32 %v7946_v30, %v1542_v23  ;;  %v8019_v46 = vadd.f32 %v7949_v36, %v1563_v24 }
 0x49c   : > { %5972 = vrsqrt.f32 %v1513_v37  ;;  %v1514_v39 = vadd.f32 1e-05, %v1498_v38  ;;  %v1646_v4 = vadd.f32 1.0, %v5959_v32 }
 0x49d   : > { %v1704_v50 = vpack.c.bf16 %v1690_v44, %v1689_v43  ;;  %5974 = vrcp.f32 %v1645_v31  ;;  %v8022_v33 = vadd.f32 %v7949_v36, %v1564_v49  ;;  %v5119_v51 = vmul.f32 -1.442695, %v8019_v46 }
 0x49e   : > { %v5961_v54 = vpop.eup %5960  ;;  %5976 = vrsqrt.f32 %v1514_v39 }
 0x49f   : > { %v5963_v55 = vpop.eup %5962  ;;  %5447 = vmatmul.mubr.bf16.vlgmr.msra.gmra.mrb[0].mxu1 %v1704_v50  ;;  %5978 = vrcp.f32 %v1646_v4  ;;  %v5120_v11 = vmul.f32 -1.442695, %v8022_v33  ;;  %v1543_v34 = vmul.f32 %v5961_v54, %v7924_v58 }
 0x4a0   : > { %v5965_v10 = vpop.eup %5964  ;;  %5980 = vpow2.f32 %v5119_v51  ;;  %v1691_v61 = vmul.f32 %v5963_v55, %v7979_v22 }
 0x4a1   : > { %v5967_v57 = vpop.eup %5966  ;;  %5982 = vpow2.f32 %v5120_v11  ;;  %v1544_v47 = vmul.f32 %v5965_v10, %v7929_v48  ;;  %v1565_v59 = vmul.f32 %v7946_v30, %v1543_v34 }
 0x4a2   : > { %v5969_v60 = vpop.eup %5968  ;;  %v1692_v62 = vmul.f32 %v5967_v57, %v7982_v17 }
 0x4a3   : > { %v5971_v1 = vpop.eup %5970  ;;  %v1647_v3 = vadd.f32 1.0, %v5969_v60  ;;  %v1566_v13 = vmul.f32 %v7946_v30, %v1544_v47  ;;  %v1587_v56 = vadd.f32 %v7949_v36, %v1565_v59 }
 0x4a4   : > { %v1705_v58 = vpack.c.bf16 %v1692_v62, %v1691_v61  ;;  %v1648_v8 = vadd.f32 1.0, %v5971_v1 }
 0x4a5   : > { %5984 = vrcp.f32 %v1647_v3  ;;  %v1588_v12 = vadd.f32 %v7949_v36, %v1566_v13  ;;  %v5121_v63 = vmul.f32 -1.442695, %v1587_v56 }
 0x4a6   : > { %v5973_v48 = vpop.eup %5972  ;;  %5450 = vmatprep.mubr.bf16.mxu1 %v1705_v58  ;;  %5986 = vrcp.f32 %v1648_v8 }
 0x4a7   : > { %v5975_v18 = vpop.eup %5974  ;;  %5988 = vpow2.f32 %v5121_v63  ;;  %v5122_v22 = vmul.f32 -1.442695, %v1588_v12  ;;  %v1545_v17 = vmul.f32 %v5973_v48, %v7934_v5 }
 0x4a8   : > { %v5977_v2 = vpop.eup %5976  ;;  %v1693_v9 = vmul.f32 %v5975_v18, %v7991_v40 }
 0x4a9   : > { %v5979_v0 = vpop.eup %5978  ;;  %5990 = vpow2.f32 %v5122_v22  ;;  %v1546_v7 = vmul.f32 %v5977_v2, %v7939_v6  ;;  %v1567_v41 = vmul.f32 %v7946_v30, %v1545_v17 }
 0x4aa   : > { %v5981_v16 = vpop.eup %5980  ;;  %v1694_v42 = vmul.f32 %v5979_v0, %v7994_v53 }
 0x4ab   : > { %v5983_v20 = vpop.eup %5982  ;;  %v1649_v21 = vadd.f32 1.0, %v5981_v16  ;;  %v1568_v45 = vmul.f32 %v7946_v30, %v1546_v7  ;;  %v1589_v52 = vadd.f32 %v7949_v36, %v1567_v41 }
 0x4ac   : > { %v1706_v15 = vpack.c.bf16 %v1694_v42, %v1693_v9  ;;  %v1650_v5 = vadd.f32 1.0, %v5983_v20 }
 0x4ad   : > { %5992 = vrcp.f32 %v1649_v21  ;;  %v1590_v25 = vadd.f32 %v7949_v36, %v1568_v45  ;;  %v5123_v26 = vmul.f32 -1.442695, %v1589_v52 }
 0x4ae   : > { %5451 = vmatmul.mubr.bf16.gmra.mrb[4].mxu1 %v1706_v15  ;;  %5994 = vrcp.f32 %v1650_v5 }
 0x4af   : > { %v5985_v6 = vpop.eup %5984  ;;  %5996 = vpow2.f32 %v5123_v26  ;;  %v5124_v27 = vmul.f32 -1.442695, %v1590_v25 }
 0x4b0   : > { %v5987_v40 = vpop.eup %5986  ;;  %v1695_v53 = vmul.f32 %v5985_v6, %v8005_v14 }
 0x4b1   : > { %v5989_v28 = vpop.eup %5988  ;;  %v1696_v29 = vmul.f32 %v5987_v40, %v8008_v19  ;;  %5998 = vpow2.f32 %v5124_v27 }
 0x4b2   : > { %v1651_v30 = vadd.f32 1.0, %v5989_v28 }
 0x4b3   : > { %v5991_v23 = vpop.eup %5990  ;;  %v1707_v24 = vpack.c.bf16 %v1696_v29, %v1695_v53 }
 0x4b4   : > { %v1652_v35 = vadd.f32 1.0, %v5991_v23  ;;  %6000 = vrcp.f32 %v1651_v30 }
 0x4b5   : > { %5454 = vmatprep.mubr.bf16.mxu1 %v1707_v24 }
 0x4b6   : > { %6002 = vrcp.f32 %v1652_v35 }
 0x4b7   : > { %v5993_v36 = vpop.eup %5992 }
 0x4b8   : > { %v5995_v37 = vpop.eup %5994  ;;  %v1697_v31 = vmul.f32 %v5993_v36, %v8019_v46 }
 0x4b9   : > { %v5997_v38 = vpop.eup %5996  ;;  %v1698_v32 = vmul.f32 %v5995_v37, %v8022_v33  ;;  %v5125_v33 = vld [vmem:[#allocation11] ss:$0 sm:$0xff] }
 0x4ba   : > { %v1653_v43 = vadd.f32 1.0, %v5997_v38 }
 0x4bb   : > { %v5999_v44 = vpop.eup %5998  ;;  %v1708_v14 = vpack.c.bf16 %v1698_v32, %v1697_v31 }
 0x4bc   : > { %v1654_v49 = vadd.f32 1.0, %v5999_v44  ;;  %6004 = vrcp.f32 %v1653_v43 }
 0x4bd   : > { %5455 = vmatmul.mubr.bf16.gmra.mrb[8].mxu1 %v1708_v14 }
 0x4be   : > { %v6001_v19 = vpop.eup %6000  ;;  %6006 = vrcp.f32 %v1654_v49 }
 0x4bf   : > { %v1699_v4 = vmul.f32 %v6001_v19, %v1587_v56 }
 0x4c0   : > { %v6003_v39 = vpop.eup %6002 }
 0x4c1   : > { %v1700_v50 = vmul.f32 %v6003_v39, %v1588_v12 }
 0x4c3   : > { %v1709_v51 = vpack.c.bf16 %v1700_v50, %v1699_v4 }
 0x4c5   : > { %5458 = vmatprep.mubr.bf16.mxu1 %v1709_v51 }
 0x4c6   : > { %v6005_v54 = vpop.eup %6004 }
 0x4c7   : > { %v1701_v11 = vmul.f32 %v6005_v54, %v1589_v52 }
 0x4c8   : > { %v6007_v55 = vpop.eup %6006 }
 0x4c9   : > { %v1702_v34 = vmul.f32 %v6007_v55, %v1590_v25 }
 0x4cb   : > { %v1710_v46 = vpack.c.bf16 %v1702_v34, %v1701_v11 }
 0x4cd   : > { %5459 = vmatmul.mubr.bf16.gmra.mrb[12].mxu1 %v1710_v46 }
 0x572   : > { %v5448_v10 = vpop.f32.mrb[0].mxu1 }
 0x573   : > { %v1816_v57 = vpop.f32.mrb[1].mxu1  ;;  %v1825_v62 = vadd.f32 %v5448_v10, %v5125_v33 }
 0x574   : > { %v1817_v47 = vadd.f32 %v5125_v33, %v1816_v57  ;;  %v5449_v59 = vpop.f32.mrb[2].mxu1 }
 0x575   : > { %v1819_v60 = vpop.f32.mrb[3].mxu1  ;;  %v1828_v1 = vadd.f32 %v5449_v59, %v5125_v33 }
 0x576   : > { %v1820_v61 = vadd.f32 %v5125_v33, %v1819_v60  ;;  %1881 = vadd.xlane.f32.xlu0 %v1817_v47 }
 0x578   : > { %1883 = vadd.xlane.f32.xlu1 %v1820_v61 }
 0x57a   : > { %1885 = vadd.xlane.f32.xlu0 %v1825_v62 }
 0x57c   : > { %1887 = vadd.xlane.f32.xlu1 %v1828_v1 }
 0x581   : > { %v5452_v3 = vpop.f32.mrb[4].mxu1 }
 0x582   : > { %v1832_v13 = vpop.f32.mrb[5].mxu1  ;;  %v1841_v63 = vadd.f32 %v5452_v3, %v5125_v33 }
 0x583   : > { %v1833_v56 = vadd.f32 %v5125_v33, %v1832_v13  ;;  %v5453_v58 = vpop.f32.mrb[6].mxu1 }
 0x584   : > { %v1835_v8 = vpop.f32.mrb[7].mxu1  ;;  %v8046_v48 = vadd.f32 %v5453_v58, %v5125_v33 }
 0x585   : > { %v1836_v12 = vadd.f32 %v5125_v33, %v1835_v8  ;;  %1889 = vadd.xlane.f32.xlu0 %v1833_v56 }
 0x587   : > { %1891 = vadd.xlane.f32.xlu1 %v1836_v12 }
 0x589   : > { %1893 = vadd.xlane.f32.xlu0 %v1841_v63 }
 0x58b   : > { %1895 = vadd.xlane.f32.xlu1 %v8046_v48 }
 0x590   : > { %v5456_v18 = vpop.f32.mrb[8].mxu1 }
 0x591   : > { %v1848_v22 = vpop.f32.mrb[9].mxu1  ;;  %v8054_v41 = vadd.f32 %v5456_v18, %v5125_v33 }
 0x592   : > { %v8049_v17 = vadd.f32 %v5125_v33, %v1848_v22  ;;  %v5457_v2 = vpop.f32.mrb[10].mxu1  ;;  %v5856_v22 = vld [vmem:[#allocation16] sm:$0xff]  }
 0x593   : > { %v1851_v0 = vpop.f32.mrb[11].mxu1  ;;  %v8057_v16 = vadd.f32 %v5457_v2, %v5125_v33  ;;  %v5857_v2 = vld [vmem:[#allocation16 + $0x8] sm:$0xff]   ;;  %5462 = vmatprep.subr.bf16.mxu1 %v5856_v22 }
 0x594   : > { %v8051_v7 = vadd.f32 %v5125_v33, %v1851_v0  ;;  %1897 = vadd.xlane.f32.xlu0 %v8049_v17  ;;  %5463 = vmatpush3.bf16.msra.mxu1 %v5856_v22 }
 0x595   : > { %5464 = vmatprep.subr.bf16.mxu1 %v5857_v2 }
 0x596   : > { %1899 = vadd.xlane.f32.xlu1 %v8051_v7 }
 0x598   : > { %1901 = vadd.xlane.f32.xlu0 %v8054_v41  ;;  %5465 = vmatpush3.bf16.msra.mxu1 %v5857_v2 }
 0x59a   : > { %1903 = vadd.xlane.f32.xlu1 %v8057_v16 }
 0x5a0   : > { %v5460_v9 = vpop.f32.mrb[12].mxu1 }
 0x5a1   : > { %v1864_v42 = vpop.f32.mrb[13].mxu1  ;;  %v8066_v15 = vadd.f32 %v5460_v9, %v5125_v33 }
 0x5a2   : > { %v8061_v20 = vadd.f32 %v5125_v33, %v1864_v42  ;;  %v5461_v21 = vpop.f32.mrb[14].mxu1 }
 0x5a3   : > { %v1867_v45 = vpop.f32.mrb[15].mxu1  ;;  %v8069_v5 = vadd.f32 %v5461_v21, %v5125_v33 }
 0x5a4   : > { %v8063_v52 = vadd.f32 %v5125_v33, %v1867_v45  ;;  %1905 = vadd.xlane.f32.xlu0 %v8061_v20 }
 0x5a6   : > { %1907 = vadd.xlane.f32.xlu1 %v8063_v52 }
 0x5a8   : > { %1909 = vadd.xlane.f32.xlu0 %v8066_v15 }
 0x5aa   : > { %1911 = vadd.xlane.f32.xlu1 %v8069_v5 }
 0x603   : > { %v1882_v25 = vpop.xlane.xlu0 %1881 }
 0x604   : > { %v1913_v26 = vmul.f32 0.0078125, %v1882_v25 }
 0x605   : > { %v1884_v6 = vpop.xlane.xlu1 %1883 }
 0x606   : > { %v1914_v27 = vmul.f32 0.0078125, %v1884_v6  ;;  %v8073_v40 = vsub.f32 %v1817_v47, %v1913_v26 }
 0x607   : > { %v1886_v28 = vpop.xlane.xlu0 %1885 }
 0x608   : > { %v1915_v53 = vmul.f32 0.0078125, %v1886_v28  ;;  %v1945_v29 = vmul.f32 %v8073_v40, %v8073_v40  ;;  %v8077_v30 = vsub.f32 %v1820_v61, %v1914_v27 }
 0x609   : > { %v1888_v23 = vpop.xlane.xlu1 %1887 }
 0x60a   : > { %v1916_v24 = vmul.f32 0.0078125, %v1888_v23  ;;  %1961 = vadd.xlane.f32.xlu0 %v1945_v29  ;;  %v1946_v35 = vmul.f32 %v8077_v30, %v8077_v30  ;;  %v8081_v36 = vsub.f32 %v1825_v62, %v1915_v53  ;;  %v5859_v53 = vld [vmem:[#allocation16 + $0x18] sm:$0xff]   ;;  %v5861_v29 = vld [vmem:[#allocation16 + $0x28] sm:$0xff]   ;;  %v5862_v23 = vld [vmem:[#allocation16 + $0x30] sm:$0xff]  }
 0x60c   : > { %1963 = vadd.xlane.f32.xlu1 %v1946_v35  ;;  %v1947_v37 = vmul.f32 %v8081_v36, %v8081_v36  ;;  %v8085_v38 = vsub.f32 %v1828_v1, %v1916_v24 }
 0x60e   : > { %1965 = vadd.xlane.f32.xlu0 %v1947_v37  ;;  %v1948_v31 = vmul.f32 %v8085_v38, %v8085_v38 }
 0x610   : > { %1967 = vadd.xlane.f32.xlu1 %v1948_v31 }
 0x612   : > { %v1890_v32 = vpop.xlane.xlu0 %1889 }
 0x613   : > { %v1917_v43 = vmul.f32 0.0078125, %v1890_v32 }
 0x614   : > { %v1892_v44 = vpop.xlane.xlu1 %1891 }
 0x615   : > { %v1918_v14 = vmul.f32 0.0078125, %v1892_v44  ;;  %v8089_v49 = vsub.f32 %v1833_v56, %v1917_v43 }
 0x616   : > { %v1894_v19 = vpop.xlane.xlu0 %1893 }
 0x617   : > { %v1919_v39 = vmul.f32 0.0078125, %v1894_v19  ;;  %v1949_v4 = vmul.f32 %v8089_v49, %v8089_v49  ;;  %v8093_v50 = vsub.f32 %v1836_v12, %v1918_v14 }
 0x618   : > { %v1896_v51 = vpop.xlane.xlu1 %1895 }
 0x619   : > { %v1920_v54 = vmul.f32 0.0078125, %v1896_v51  ;;  %1969 = vadd.xlane.f32.xlu0 %v1949_v4  ;;  %v1950_v55 = vmul.f32 %v8093_v50, %v8093_v50  ;;  %v8097_v11 = vsub.f32 %v1841_v63, %v1919_v39 }
 0x61b   : > { %1971 = vadd.xlane.f32.xlu1 %v1950_v55  ;;  %v1951_v34 = vmul.f32 %v8097_v11, %v8097_v11  ;;  %v8102_v46 = vsub.f32 %v8046_v48, %v1920_v54  ;;  %v8146_v55 = vld [vmem:[#allocation13] ss:$0 sm:$0xff] }
 0x61d   : > { %1973 = vadd.xlane.f32.xlu0 %v1951_v34  ;;  %v1952_v33 = vmul.f32 %v8102_v46, %v8102_v46 }
 0x61f   : > { %1975 = vadd.xlane.f32.xlu1 %v1952_v33 }
 0x621   : > { %v1898_v10 = vpop.xlane.xlu0 %1897 }
 0x622   : > { %v1921_v57 = vmul.f32 0.0078125, %v1898_v10 }
 0x623   : > { %v1900_v47 = vpop.xlane.xlu1 %1899 }
 0x624   : > { %v1922_v59 = vmul.f32 0.0078125, %v1900_v47  ;;  %v8107_v60 = vsub.f32 %v8049_v17, %v1921_v57 }
 0x625   : > { %v1902_v61 = vpop.xlane.xlu0 %1901 }
 0x626   : > { %v1923_v62 = vmul.f32 0.0078125, %v1902_v61  ;;  %v1953_v1 = vmul.f32 %v8107_v60, %v8107_v60  ;;  %v8112_v3 = vsub.f32 %v8051_v7, %v1922_v59 }
 0x627   : > { %v1904_v13 = vpop.xlane.xlu1 %1903 }
 0x628   : > { %v1924_v56 = vmul.f32 0.0078125, %v1904_v13  ;;  %1977 = vadd.xlane.f32.xlu0 %v1953_v1  ;;  %v1954_v58 = vmul.f32 %v8112_v3, %v8112_v3  ;;  %v8117_v8 = vsub.f32 %v8054_v41, %v1923_v62  ;;  %v8149_v62 = vld [vmem:[#allocation14] ss:$0 sm:$0xff] }
 0x62a   : > { %1979 = vadd.xlane.f32.xlu1 %v1954_v58  ;;  %v1955_v12 = vmul.f32 %v8117_v8, %v8117_v8  ;;  %v8122_v63 = vsub.f32 %v8057_v16, %v1924_v56 }
 0x62c   : > { %1981 = vadd.xlane.f32.xlu0 %v1955_v12  ;;  %v1956_v48 = vmul.f32 %v8122_v63, %v8122_v63 }
 0x62e   : > { %1983 = vadd.xlane.f32.xlu1 %v1956_v48 }
 0x631   : > { %v1906_v18 = vpop.xlane.xlu0 %1905 }
 0x632   : > { %v1925_v17 = vmul.f32 0.0078125, %v1906_v18 }
 0x633   : > { %v1908_v0 = vpop.xlane.xlu1 %1907 }
 0x634   : > { %v1926_v7 = vmul.f32 0.0078125, %v1908_v0  ;;  %v8127_v41 = vsub.f32 %v8061_v20, %v1925_v17  ;;  %v5858_v20 = vld [vmem:[#allocation16 + $0x10] sm:$0xff]  }
 0x635   : > { %v1910_v9 = vpop.xlane.xlu0 %1909  ;;  %5466 = vmatprep.subr.bf16.mxu1 %v5858_v20 }
 0x636   : > { %v1927_v16 = vmul.f32 0.0078125, %v1910_v9  ;;  %v1957_v42 = vmul.f32 %v8127_v41, %v8127_v41  ;;  %v8132_v21 = vsub.f32 %v8063_v52, %v1926_v7  ;;  %5467 = vmatpush3.bf16.msra.mxu1 %v5858_v20 }
 0x637   : > { %v1912_v45 = vpop.xlane.xlu1 %1911  ;;  %5468 = vmatprep.subr.bf16.mxu1 %v5859_v53 }
 0x638   : > { %v1928_v25 = vmul.f32 0.0078125, %v1912_v45  ;;  %1985 = vadd.xlane.f32.xlu0 %v1957_v42  ;;  %v1958_v26 = vmul.f32 %v8132_v21, %v8132_v21  ;;  %v8137_v6 = vsub.f32 %v8066_v15, %v1927_v16  ;;  %v5860_v15 = vld [vmem:[#allocation16 + $0x20] sm:$0xff]  }
 0x63a   : > { %1987 = vadd.xlane.f32.xlu1 %v1958_v26  ;;  %v1959_v27 = vmul.f32 %v8137_v6, %v8137_v6  ;;  %v8142_v28 = vsub.f32 %v8069_v5, %v1928_v25  ;;  %5469 = vmatpush3.bf16.msra.mxu1 %v5859_v53  ;;  %v5863_v5 = vld [vmem:[#allocation16 + $0x38] sm:$0xff]  }
 0x63b   : > { %5470 = vmatprep.subr.bf16.mxu1 %v5860_v15 }
 0x63c   : > { %1989 = vadd.xlane.f32.xlu0 %v1959_v27  ;;  %v1960_v52 = vmul.f32 %v8142_v28, %v8142_v28 }
 0x63e   : > { %1991 = vadd.xlane.f32.xlu1 %v1960_v52  ;;  %5471 = vmatpush3.bf16.msra.mxu1 %v5860_v15 }
 0x63f   : > { %5472 = vmatprep.subr.bf16.mxu1 %v5861_v29 }
 0x642   : > { %5473 = vmatpush3.bf16.msra.mxu1 %v5861_v29 }
 0x643   : > { %5474 = vmatprep.subr.bf16.mxu1 %v5862_v23 }
 0x646   : > { %5475 = vmatpush3.bf16.msra.mxu1 %v5862_v23 }
 0x647   : > { %5476 = vmatprep.subr.bf16.mxu1 %v5863_v5 }
 0x64a   : > { %5477 = vmatpush3.bf16.msra.mxu1 %v5863_v5 }
 0x697   : > { %v1962_v24 = vpop.xlane.xlu0 %1961 }
 0x698   : > { %v1993_v35 = vmul.f32 0.0078125, %v1962_v24 }
 0x699   : > { %v1964_v37 = vpop.xlane.xlu1 %1963 }
 0x69a   : > { %v2009_v31 = vadd.f32 1e-05, %v1993_v35  ;;  %v1994_v32 = vmul.f32 0.0078125, %v1964_v37 }
 0x69b   : > { %v1966_v43 = vpop.xlane.xlu0 %1965 }
 0x69c   : > { %6008 = vrsqrt.f32 %v2009_v31  ;;  %v2010_v44 = vadd.f32 1e-05, %v1994_v32  ;;  %v1995_v14 = vmul.f32 0.0078125, %v1966_v43 }
 0x69d   : > { %v1968_v19 = vpop.xlane.xlu1 %1967 }
 0x69e   : > { %6010 = vrsqrt.f32 %v2010_v44  ;;  %v2011_v39 = vadd.f32 1e-05, %v1995_v14  ;;  %v1996_v4 = vmul.f32 0.0078125, %v1968_v19 }
 0x6a0   : > { %6012 = vrsqrt.f32 %v2011_v39  ;;  %v2012_v51 = vadd.f32 1e-05, %v1996_v4 }
 0x6a2   : > { %6014 = vrsqrt.f32 %v2012_v51 }
 0x6a6   : > { %v6009_v54 = vpop.eup %6008  ;;  %v1970_v34 = vpop.xlane.xlu0 %1969 }
 0x6a7   : > { %v1997_v33 = vmul.f32 0.0078125, %v1970_v34  ;;  %v2041_v10 = vmul.f32 %v6009_v54, %v8073_v40 }
 0x6a8   : > { %v6011_v57 = vpop.eup %6010  ;;  %v1972_v47 = vpop.xlane.xlu1 %1971 }
 0x6a9   : > { %v2013_v59 = vadd.f32 1e-05, %v1997_v33  ;;  %v1998_v61 = vmul.f32 0.0078125, %v1972_v47  ;;  %v2042_v1 = vmul.f32 %v6011_v57, %v8077_v30  ;;  %v2063_v13 = vmul.f32 %v8146_v55, %v2041_v10 }
 0x6aa   : > { %v6013_v56 = vpop.eup %6012  ;;  %v1974_v58 = vpop.xlane.xlu0 %1973 }
 0x6ab   : > { %v2043_v12 = vmul.f32 %v6013_v56, %v8081_v36  ;;  %6016 = vrsqrt.f32 %v2013_v59  ;;  %v2014_v48 = vadd.f32 1e-05, %v1998_v61  ;;  %v1999_v18 = vmul.f32 0.0078125, %v1974_v58 }
 0x6ac   : > { %v6015_v22 = vpop.eup %6014  ;;  %v1976_v17 = vpop.xlane.xlu1 %1975  ;;  %v2064_v40 = vmul.f32 %v8146_v55, %v2042_v1  ;;  %v8156_v2 = vadd.f32 %v8149_v62, %v2063_v13 }
 0x6ad   : > { %v2065_v0 = vmul.f32 %v8146_v55, %v2043_v12  ;;  %v2044_v30 = vmul.f32 %v6015_v22, %v8085_v38  ;;  %6018 = vrsqrt.f32 %v2014_v48  ;;  %v2015_v7 = vadd.f32 1e-05, %v1999_v18 }
 0x6ae   : > { %v2000_v9 = vmul.f32 0.0078125, %v1976_v17  ;;  %v8161_v16 = vadd.f32 %v8149_v62, %v2064_v40  ;;  %v5136_v36 = vmul.f32 -1.442695, %v8156_v2 }
 0x6af   : > { %v2066_v42 = vmul.f32 %v8146_v55, %v2044_v30  ;;  %6020 = vrsqrt.f32 %v2015_v7  ;;  %v8166_v45 = vadd.f32 %v8149_v62, %v2065_v0 }
 0x6b0   : > { %v2016_v25 = vadd.f32 1e-05, %v2000_v9  ;;  %6022 = vpow2.f32 %v5136_v36  ;;  %v5137_v26 = vmul.f32 -1.442695, %v8161_v16 }
 0x6b1   : > { %v8170_v38 = vadd.f32 %v8149_v62, %v2066_v42  ;;  %v5138_v20 = vmul.f32 -1.442695, %v8166_v45 }
 0x6b2   : > { %6024 = vrsqrt.f32 %v2016_v25 }
 0x6b3   : > { %6026 = vpow2.f32 %v5137_v26  ;;  %v5139_v27 = vmul.f32 -1.442695, %v8170_v38 }
 0x6b4   : > { %6028 = vpow2.f32 %v5138_v20 }
 0x6b5   : > { %v6017_v52 = vpop.eup %6016  ;;  %v1978_v53 = vpop.xlane.xlu0 %1977  ;;  %6030 = vpow2.f32 %v5139_v27 }
 0x6b6   : > { %v2001_v15 = vmul.f32 0.0078125, %v1978_v53  ;;  %v2045_v29 = vmul.f32 %v6017_v52, %v8089_v49 }
 0x6b7   : > { %v6019_v23 = vpop.eup %6018  ;;  %v1980_v5 = vpop.xlane.xlu1 %1979 }
 0x6b8   : > { %v2017_v24 = vadd.f32 1e-05, %v2001_v15  ;;  %v2002_v35 = vmul.f32 0.0078125, %v1980_v5  ;;  %v2046_v37 = vmul.f32 %v6019_v23, %v8093_v50  ;;  %v2067_v31 = vmul.f32 %v8146_v55, %v2045_v29 }
 0x6b9   : > { %v6021_v32 = vpop.eup %6020  ;;  %v1982_v43 = vpop.xlane.xlu0 %1981 }
 0x6ba   : > { %v6023_v44 = vpop.eup %6022  ;;  %6032 = vrsqrt.f32 %v2017_v24  ;;  %v2018_v14 = vadd.f32 1e-05, %v2002_v35  ;;  %v2003_v19 = vmul.f32 0.0078125, %v1982_v43  ;;  %v2068_v39 = vmul.f32 %v8146_v55, %v2046_v37 }
 0x6bb   : > { %v1984_v4 = vpop.xlane.xlu1 %1983  ;;  %v2149_v51 = vadd.f32 1.0, %v6023_v44  ;;  %v8179_v49 = vadd.f32 %v8149_v62, %v2067_v31  ;;  %v2047_v54 = vmul.f32 %v6021_v32, %v8097_v11 }
 0x6bc   : > { %v6025_v34 = vpop.eup %6024  ;;  %6034 = vrsqrt.f32 %v2018_v14  ;;  %v2019_v50 = vadd.f32 1e-05, %v2003_v19  ;;  %v2004_v33 = vmul.f32 0.0078125, %v1984_v4  ;;  %v8183_v10 = vadd.f32 %v8149_v62, %v2068_v39 }
 0x6bd   : > { %v6027_v57 = vpop.eup %6026  ;;  %6036 = vrcp.f32 %v2149_v51  ;;  %v5140_v47 = vmul.f32 -1.442695, %v8179_v49  ;;  %v2048_v59 = vmul.f32 %v6025_v34, %v8102_v46  ;;  %v2069_v61 = vmul.f32 %v8146_v55, %v2047_v54 }
 0x6be   : > { %v6029_v1 = vpop.eup %6028  ;;  %6038 = vrsqrt.f32 %v2019_v50  ;;  %v2020_v13 = vadd.f32 1e-05, %v2004_v33  ;;  %v2150_v56 = vadd.f32 1.0, %v6027_v57  ;;  %v5141_v22 = vmul.f32 -1.442695, %v8183_v10 }
 0x6bf   : > { %v6031_v11 = vpop.eup %6030  ;;  %v2151_v58 = vadd.f32 1.0, %v6029_v1  ;;  %6040 = vpow2.f32 %v5140_v47  ;;  %v2070_v12 = vmul.f32 %v8146_v55, %v2048_v59  ;;  %v8190_v48 = vadd.f32 %v8149_v62, %v2069_v61 }
 0x6c0   : > { %6042 = vrsqrt.f32 %v2020_v13  ;;  %v2152_v18 = vadd.f32 1.0, %v6031_v11 }
 0x6c1   : > { %6044 = vrcp.f32 %v2150_v56  ;;  %v8194_v46 = vadd.f32 %v8149_v62, %v2070_v12  ;;  %v5142_v17 = vmul.f32 -1.442695, %v8190_v48 }
 0x6c2   : > { %6046 = vrcp.f32 %v2151_v58 }
 0x6c3   : > { %6048 = vrcp.f32 %v2152_v18  ;;  %v5143_v40 = vmul.f32 -1.442695, %v8194_v46 }
 0x6c4   : > { %v6033_v0 = vpop.eup %6032  ;;  %6050 = vpow2.f32 %v5141_v22 }
 0x6c5   : > { %v1986_v30 = vpop.xlane.xlu0 %1985  ;;  %6052 = vpow2.f32 %v5142_v17  ;;  %v2049_v7 = vmul.f32 %v6033_v0, %v8107_v60 }
 0x6c6   : > { %v6035_v9 = vpop.eup %6034  ;;  %v2005_v36 = vmul.f32 0.0078125, %v1986_v30  ;;  %6054 = vpow2.f32 %v5143_v40 }
 0x6c7   : > { %v6037_v42 = vpop.eup %6036  ;;  %v1988_v25 = vpop.xlane.xlu1 %1987  ;;  %v2050_v26 = vmul.f32 %v6035_v9, %v8112_v3  ;;  %v2071_v20 = vmul.f32 %v8146_v55, %v2049_v7 }
 0x6c8   : > { %v6039_v27 = vpop.eup %6038  ;;  %v2021_v52 = vadd.f32 1e-05, %v2005_v36  ;;  %v2006_v53 = vmul.f32 0.0078125, %v1988_v25  ;;  %v2197_v23 = vmul.f32 %v6037_v42, %v8156_v2 }
 0x6c9   : > { %v6041_v15 = vpop.eup %6040  ;;  %v1990_v29 = vpop.xlane.xlu0 %1989  ;;  %v2072_v5 = vmul.f32 %v8146_v55, %v2050_v26  ;;  %v8204_v60 = vadd.f32 %v8149_v62, %v2071_v20  ;;  %v2051_v24 = vmul.f32 %v6039_v27, %v8117_v8 }
 0x6ca   : > { %v6043_v35 = vpop.eup %6042  ;;  %6056 = vrsqrt.f32 %v2021_v52  ;;  %v2022_v37 = vadd.f32 1e-05, %v2006_v53  ;;  %v2007_v3 = vmul.f32 0.0078125, %v1990_v29  ;;  %v2153_v31 = vadd.f32 1.0, %v6041_v15 }
 0x6cb   : > { %v6045_v32 = vpop.eup %6044  ;;  %v1992_v43 = vpop.xlane.xlu1 %1991  ;;  %v8208_v44 = vadd.f32 %v8149_v62, %v2072_v5  ;;  %v5144_v14 = vmul.f32 -1.442695, %v8204_v60  ;;  %v2052_v2 = vmul.f32 %v6043_v35, %v8122_v63  ;;  %v2073_v19 = vmul.f32 %v8146_v55, %v2051_v24 }
 0x6cc   : > { %v6047_v39 = vpop.eup %6046  ;;  %6058 = vrsqrt.f32 %v2022_v37  ;;  %v2023_v4 = vadd.f32 1e-05, %v2007_v3  ;;  %v2008_v8 = vmul.f32 0.0078125, %v1992_v43  ;;  %v2198_v51 = vmul.f32 %v6045_v32, %v8161_v16 }
 0x6cd   : > { %v6049_v54 = vpop.eup %6048  ;;  %v2199_v34 = vmul.f32 %v6047_v39, %v8166_v45  ;;  %6060 = vrcp.f32 %v2153_v31  ;;  %v2074_v50 = vmul.f32 %v8146_v55, %v2052_v2  ;;  %v8218_v1 = vadd.f32 %v8149_v62, %v2073_v19 }
 0x6ce   : > { %v6051_v33 = vpop.eup %6050  ;;  %6062 = vrsqrt.f32 %v2023_v4  ;;  %v2024_v57 = vadd.f32 1e-05, %v2008_v8  ;;  %v2213_v47 = vpack.c.bf16 %v2198_v51, %v2197_v23  ;;  %v2200_v63 = vmul.f32 %v6049_v54, %v8170_v38 }
 0x6cf   : > { %v6053_v59 = vpop.eup %6052  ;;  %v2154_v61 = vadd.f32 1.0, %v6051_v33  ;;  %6064 = vpow2.f32 %v5144_v14  ;;  %v8221_v16 = vadd.f32 %v8149_v62, %v2074_v50  ;;  %v5145_v11 = vmul.f32 -1.442695, %v8208_v44 }
 0x6d0   : > { %v6055_v13 = vpop.eup %6054  ;;  %6066 = vrsqrt.f32 %v2024_v57  ;;  %5478 = vmatprep.mubr.bf16.mxu1 %v2213_v47  ;;  %v2214_v45 = vpack.c.bf16 %v2200_v63, %v2199_v34  ;;  %v2155_v56 = vadd.f32 1.0, %v6053_v59  ;;  %v5146_v38 = vmul.f32 -1.442695, %v8218_v1 }
 0x6d1   : > { %6068 = vrcp.f32 %v2154_v61  ;;  %v2156_v58 = vadd.f32 1.0, %v6055_v13  ;;  %v5147_v12 = vmul.f32 -1.442695, %v8221_v16 }
 0x6d2   : > { %5479 = vmatmul.mubr.bf16.vlgmr.msra.gmra.mrb[16].mxu1 %v2214_v45  ;;  %6070 = vrcp.f32 %v2155_v56 }
 0x6d3   : > { %6072 = vrcp.f32 %v2156_v58 }
 0x6d4   : > { %v6057_v18 = vpop.eup %6056  ;;  %6074 = vpow2.f32 %v5145_v11 }
 0x6d5   : > { %6076 = vpow2.f32 %v5146_v38  ;;  %v2053_v22 = vmul.f32 %v6057_v18, %v8127_v41 }
 0x6d6   : > { %v6059_v17 = vpop.eup %6058  ;;  %6078 = vpow2.f32 %v5147_v12 }
 0x6d7   : > { %v6061_v40 = vpop.eup %6060  ;;  %v2054_v0 = vmul.f32 %v6059_v17, %v8132_v21  ;;  %v2075_v30 = vmul.f32 %v8146_v55, %v2053_v22  ;;  %v5152_v17 = vld [vmem:[#allocation17] ss:$0 sm:$0xff] }
 0x6d8   : > { %v6063_v7 = vpop.eup %6062  ;;  %v2201_v29 = vmul.f32 %v6061_v40, %v8179_v49 }
 0x6d9   : > { %v6065_v9 = vpop.eup %6064  ;;  %v2076_v36 = vmul.f32 %v8146_v55, %v2054_v0  ;;  %v8231_v42 = vadd.f32 %v8149_v62, %v2075_v30  ;;  %v2055_v25 = vmul.f32 %v6063_v7, %v8137_v6 }
 0x6da   : > { %v6067_v26 = vpop.eup %6066  ;;  %v2157_v20 = vadd.f32 1.0, %v6065_v9 }
 0x6db   : > { %v6069_v27 = vpop.eup %6068  ;;  %v2098_v41 = vadd.f32 %v8149_v62, %v2076_v36  ;;  %v5148_v52 = vmul.f32 -1.442695, %v8231_v42  ;;  %v2056_v21 = vmul.f32 %v6067_v26, %v8142_v28  ;;  %v2077_v53 = vmul.f32 %v8146_v55, %v2055_v25 }
 0x6dc   : > { %v6071_v15 = vpop.eup %6070  ;;  %v2202_v23 = vmul.f32 %v6069_v27, %v8183_v10  ;;  %6080 = vrcp.f32 %v2157_v20 }
 0x6dd   : > { %v6073_v5 = vpop.eup %6072  ;;  %6082 = vpow2.f32 %v5148_v52  ;;  %v5149_v6 = vmul.f32 -1.442695, %v2098_v41  ;;  %v2078_v24 = vmul.f32 %v8146_v55, %v2056_v21  ;;  %v2203_v3 = vmul.f32 %v6071_v15, %v8190_v48 }
 0x6de   : > { %v6075_v35 = vpop.eup %6074  ;;  %v2215_v37 = vpack.c.bf16 %v2202_v23, %v2201_v29  ;;  %v2204_v31 = vmul.f32 %v6073_v5, %v8194_v46  ;;  %v2099_v28 = vadd.f32 %v8149_v62, %v2077_v53 }
 0x6df   : > { %v6077_v32 = vpop.eup %6076  ;;  %v2158_v43 = vadd.f32 1.0, %v6075_v35  ;;  %6084 = vpow2.f32 %v5149_v6  ;;  %v2100_v49 = vadd.f32 %v8149_v62, %v2078_v24 }
 0x6e0   : > { %v6079_v10 = vpop.eup %6078  ;;  %5482 = vmatprep.mubr.bf16.mxu1 %v2215_v37  ;;  %v2216_v14 = vpack.c.bf16 %v2204_v31, %v2203_v3  ;;  %v2159_v2 = vadd.f32 1.0, %v6077_v32  ;;  %v5150_v19 = vmul.f32 -1.442695, %v2099_v28 }
 0x6e1   : > { %6086 = vrcp.f32 %v2158_v43  ;;  %v2160_v55 = vadd.f32 1.0, %v6079_v10  ;;  %v5151_v39 = vmul.f32 -1.442695, %v2100_v49 }
 0x6e2   : > { %5483 = vmatmul.mubr.bf16.gmra.mrb[20].mxu1 %v2216_v14  ;;  %6088 = vrcp.f32 %v2159_v2 }
 0x6e3   : > { %6090 = vrcp.f32 %v2160_v55 }
 0x6e4   : > { %6092 = vpow2.f32 %v5150_v19 }
 0x6e5   : > { %6094 = vpow2.f32 %v5151_v39 }
 0x6e6   : > { %v6081_v48 = vpop.eup %6080 }
 0x6e7   : > { %v6083_v46 = vpop.eup %6082  ;;  %v2205_v34 = vmul.f32 %v6081_v48, %v8204_v60 }
 0x6e8   : > { %v2161_v4 = vadd.f32 1.0, %v6083_v46 }
 0x6e9   : > { %v6085_v8 = vpop.eup %6084 }
 0x6ea   : > { %v2162_v51 = vadd.f32 1.0, %v6085_v8  ;;  %6096 = vrcp.f32 %v2161_v4 }
 0x6eb   : > { %v6087_v62 = vpop.eup %6086 }
 0x6ec   : > { %v6089_v54 = vpop.eup %6088  ;;  %v2206_v50 = vmul.f32 %v6087_v62, %v8208_v44  ;;  %6098 = vrcp.f32 %v2162_v51 }
 0x6ed   : > { %v6091_v33 = vpop.eup %6090  ;;  %v2207_v63 = vmul.f32 %v6089_v54, %v8218_v1 }
 0x6ee   : > { %v6093_v57 = vpop.eup %6092  ;;  %v2217_v47 = vpack.c.bf16 %v2206_v50, %v2205_v34  ;;  %v2208_v59 = vmul.f32 %v6091_v33, %v8221_v16 }
 0x6ef   : > { %v6095_v61 = vpop.eup %6094  ;;  %v2163_v13 = vadd.f32 1.0, %v6093_v57 }
 0x6f0   : > { %5486 = vmatprep.mubr.bf16.mxu1 %v2217_v47  ;;  %v2218_v45 = vpack.c.bf16 %v2208_v59, %v2207_v63  ;;  %v2164_v56 = vadd.f32 1.0, %v6095_v61 }
 0x6f1   : > { %6100 = vrcp.f32 %v2163_v13 }
 0x6f2   : > { %5487 = vmatmul.mubr.bf16.gmra.mrb[24].mxu1 %v2218_v45  ;;  %6102 = vrcp.f32 %v2164_v56 }
 0x6f4   : > { %v6097_v11 = vpop.eup %6096 }
 0x6f5   : > { %v2209_v44 = vmul.f32 %v6097_v11, %v8231_v42 }
 0x6f6   : > { %v6099_v60 = vpop.eup %6098 }
 0x6f7   : > { %v2210_v58 = vmul.f32 %v6099_v60, %v2098_v41 }
 0x6f9   : > { %v2219_v38 = vpack.c.bf16 %v2210_v58, %v2209_v44 }
 0x6fb   : > { %v6101_v12 = vpop.eup %6100  ;;  %5490 = vmatprep.mubr.bf16.mxu1 %v2219_v38 }
 0x6fc   : > { %v6103_v18 = vpop.eup %6102  ;;  %v2211_v1 = vmul.f32 %v6101_v12, %v2099_v28 }
 0x6fd   : > { %v2212_v22 = vmul.f32 %v6103_v18, %v2100_v49 }
 0x6ff   : > { %v2220_v16 = vpack.c.bf16 %v2212_v22, %v2211_v1 }
 0x701   : > { %5491 = vmatmul.mubr.bf16.gmra.mrb[28].mxu1 %v2220_v16 }
 0x7a5   : > { %v5480_v40 = vpop.f32.mrb[16].mxu1 }
 0x7a6   : > { %v2326_v0 = vpop.f32.mrb[17].mxu1  ;;  %v2335_v25 = vadd.f32 %v5480_v40, %v5152_v17 }
 0x7a7   : > { %v2327_v30 = vadd.f32 %v5152_v17, %v2326_v0  ;;  %v5481_v7 = vpop.f32.mrb[18].mxu1 }
 0x7a8   : > { %v2329_v9 = vpop.f32.mrb[19].mxu1  ;;  %v2338_v42 = vadd.f32 %v5481_v7, %v5152_v17 }
 0x7a9   : > { %v2330_v36 = vadd.f32 %v5152_v17, %v2329_v9  ;;  %2391 = vadd.xlane.f32.xlu0 %v2327_v30 }
 0x7ab   : > { %2393 = vadd.xlane.f32.xlu1 %v2330_v36 }
 0x7ad   : > { %2395 = vadd.xlane.f32.xlu0 %v2335_v25 }
 0x7af   : > { %2397 = vadd.xlane.f32.xlu1 %v2338_v42 }
 0x7b5   : > { %v5484_v26 = vpop.f32.mrb[20].mxu1 }
 0x7b6   : > { %v2342_v20 = vpop.f32.mrb[21].mxu1  ;;  %v2351_v53 = vadd.f32 %v5484_v26, %v5152_v17 }
 0x7b7   : > { %v2343_v27 = vadd.f32 %v5152_v17, %v2342_v20  ;;  %v5485_v41 = vpop.f32.mrb[22].mxu1 }
 0x7b8   : > { %v2345_v52 = vpop.f32.mrb[23].mxu1  ;;  %v2354_v15 = vadd.f32 %v5485_v41, %v5152_v17 }
 0x7b9   : > { %v2346_v21 = vadd.f32 %v5152_v17, %v2345_v52  ;;  %2399 = vadd.xlane.f32.xlu0 %v2343_v27 }
 0x7bb   : > { %2401 = vadd.xlane.f32.xlu1 %v2346_v21 }
 0x7bd   : > { %2403 = vadd.xlane.f32.xlu0 %v2351_v53 }
 0x7bf   : > { %2405 = vadd.xlane.f32.xlu1 %v2354_v15 }
 0x7c5   : > { %v5488_v29 = vpop.f32.mrb[24].mxu1 }
 0x7c6   : > { %v2358_v23 = vpop.f32.mrb[25].mxu1  ;;  %v8255_v37 = vadd.f32 %v5488_v29, %v5152_v17 }
 0x7c7   : > { %v8250_v5 = vadd.f32 %v5152_v17, %v2358_v23  ;;  %v5489_v6 = vpop.f32.mrb[26].mxu1  ;;  %v5864_v23 = vld [vmem:[#allocation22] sm:$0xff]  }
 0x7c8   : > { %v2361_v24 = vpop.f32.mrb[27].mxu1  ;;  %v8258_v3 = vadd.f32 %v5489_v6, %v5152_v17  ;;  %v5866_v6 = vld [vmem:[#allocation22 + $0x8] sm:$0xff]   ;;  %5494 = vmatprep.subr.bf16.mxu0 %v5864_v23 }
 0x7c9   : > { %v8252_v35 = vadd.f32 %v5152_v17, %v2361_v24  ;;  %2407 = vadd.xlane.f32.xlu0 %v8250_v5  ;;  %5495 = vmatpush3.bf16.msra.mxu0 %v5864_v23 }
 0x7ca   : > { %5496 = vmatprep.subr.bf16.mxu0 %v5866_v6 }
 0x7cb   : > { %2409 = vadd.xlane.f32.xlu1 %v8252_v35 }
 0x7cd   : > { %2411 = vadd.xlane.f32.xlu0 %v8255_v37  ;;  %5497 = vmatpush3.bf16.msra.mxu0 %v5866_v6 }
 0x7cf   : > { %2413 = vadd.xlane.f32.xlu1 %v8258_v3 }
 0x7d4   : > { %v5492_v31 = vpop.f32.mrb[28].mxu1 }
 0x7d5   : > { %v2374_v28 = vpop.f32.mrb[29].mxu1  ;;  %v8267_v14 = vadd.f32 %v5492_v31, %v5152_v17 }
 0x7d6   : > { %v8262_v32 = vadd.f32 %v5152_v17, %v2374_v28  ;;  %v5493_v43 = vpop.f32.mrb[30].mxu1 }
 0x7d7   : > { %v2377_v49 = vpop.f32.mrb[31].mxu1  ;;  %v8270_v2 = vadd.f32 %v5493_v43, %v5152_v17 }
 0x7d8   : > { %v8264_v10 = vadd.f32 %v5152_v17, %v2377_v49  ;;  %2415 = vadd.xlane.f32.xlu0 %v8262_v32 }
 0x7da   : > { %2417 = vadd.xlane.f32.xlu1 %v8264_v10 }
 0x7dc   : > { %2419 = vadd.xlane.f32.xlu0 %v8267_v14 }
 0x7de   : > { %2421 = vadd.xlane.f32.xlu1 %v8270_v2 }
 0x836   : > { %v2392_v19 = vpop.xlane.xlu0 %2391 }
 0x837   : > { %v2423_v55 = vmul.f32 0.0078125, %v2392_v19 }
 0x838   : > { %v2394_v39 = vpop.xlane.xlu1 %2393 }
 0x839   : > { %v8274_v48 = vsub.f32 %v2327_v30, %v2423_v55  ;;  %v2424_v46 = vmul.f32 0.0078125, %v2394_v39 }
 0x83a   : > { %v2396_v4 = vpop.xlane.xlu0 %2395 }
 0x83b   : > { %v8276_v8 = vsub.f32 %v2330_v36, %v2424_v46  ;;  %v2425_v51 = vmul.f32 0.0078125, %v2396_v4  ;;  %v2455_v62 = vmul.f32 %v8274_v48, %v8274_v48 }
 0x83c   : > { %v2398_v54 = vpop.xlane.xlu1 %2397 }
 0x83d   : > { %v8280_v34 = vsub.f32 %v2335_v25, %v2425_v51  ;;  %v2426_v50 = vmul.f32 0.0078125, %v2398_v54  ;;  %2471 = vadd.xlane.f32.xlu0 %v2455_v62  ;;  %v2456_v33 = vmul.f32 %v8276_v8, %v8276_v8  ;;  %v5868_v51 = vld [vmem:[#allocation22 + $0x10] sm:$0xff]   ;;  %v5870_v54 = vld [vmem:[#allocation22 + $0x18] sm:$0xff]  }
 0x83e   : > { %v5869_v62 = vld [vmem:[#allocation25 + $0x10] sm:$0xff]   ;;  %5498 = vmatprep.subr.bf16.mxu0 %v5868_v51 }
 0x83f   : > { %v8284_v57 = vsub.f32 %v2338_v42, %v2426_v50  ;;  %2473 = vadd.xlane.f32.xlu1 %v2456_v33  ;;  %v2457_v47 = vmul.f32 %v8280_v34, %v8280_v34  ;;  %5499 = vmatpush3.bf16.msra.mxu0 %v5868_v51  ;;  %v5871_v50 = vld [vmem:[#allocation25 + $0x18] sm:$0xff]   ;;  %v5873_v33 = vld [vmem:[#allocation25 + $0x20] sm:$0xff]  }
 0x840   : > { %5500 = vmatprep.subr.bf16.mxu0 %v5870_v54 }
 0x841   : > { %2475 = vadd.xlane.f32.xlu0 %v2457_v47  ;;  %v2458_v63 = vmul.f32 %v8284_v57, %v8284_v57  ;;  %v5874_v47 = vld [vmem:[#allocation22 + $0x28] sm:$0xff]  }
 0x843   : > { %2477 = vadd.xlane.f32.xlu1 %v2458_v63  ;;  %5501 = vmatpush3.bf16.msra.mxu0 %v5870_v54  ;;  %v5875_v63 = vld [vmem:[#allocation25 + $0x28] sm:$0xff]  }
 0x846   : > { %v2400_v59 = vpop.xlane.xlu0 %2399 }
 0x847   : > { %v2427_v61 = vmul.f32 0.0078125, %v2400_v59  ;;  %v5876_v59 = vld [vmem:[#allocation22 + $0x30] sm:$0xff]  }
 0x848   : > { %v2402_v13 = vpop.xlane.xlu1 %2401 }
 0x849   : > { %v8290_v45 = vsub.f32 %v2343_v27, %v2427_v61  ;;  %v2428_v56 = vmul.f32 0.0078125, %v2402_v13  ;;  %v5877_v61 = vld [vmem:[#allocation25 + $0x30] sm:$0xff]  }
 0x84a   : > { %v2404_v11 = vpop.xlane.xlu0 %2403  ;;  %v5878_v13 = vld [vmem:[#allocation22 + $0x38] sm:$0xff]  }
 0x84b   : > { %v8292_v60 = vsub.f32 %v2346_v21, %v2428_v56  ;;  %v2429_v44 = vmul.f32 0.0078125, %v2404_v11  ;;  %v2459_v58 = vmul.f32 %v8290_v45, %v8290_v45  ;;  %v5879_v56 = vld [vmem:[#allocation25 + $0x38] sm:$0xff]  }
 0x84c   : > { %v2406_v38 = vpop.xlane.xlu1 %2405 }
 0x84d   : > { %v8296_v12 = vsub.f32 %v2351_v53, %v2429_v44  ;;  %v2430_v18 = vmul.f32 0.0078125, %v2406_v38  ;;  %2479 = vadd.xlane.f32.xlu0 %v2459_v58  ;;  %v2460_v1 = vmul.f32 %v8292_v60, %v8292_v60 }
 0x84f   : > { %v8300_v22 = vsub.f32 %v2354_v15, %v2430_v18  ;;  %2481 = vadd.xlane.f32.xlu1 %v2460_v1  ;;  %v2461_v16 = vmul.f32 %v8296_v12, %v8296_v12 }
 0x851   : > { %2483 = vadd.xlane.f32.xlu0 %v2461_v16  ;;  %v2462_v17 = vmul.f32 %v8300_v22, %v8300_v22 }
 0x853   : > { %2485 = vadd.xlane.f32.xlu1 %v2462_v17 }
 0x856   : > { %v2408_v40 = vpop.xlane.xlu0 %2407 }
 0x857   : > { %v2431_v0 = vmul.f32 0.0078125, %v2408_v40 }
 0x858   : > { %v2410_v30 = vpop.xlane.xlu1 %2409 }
 0x859   : > { %v8307_v7 = vsub.f32 %v8250_v5, %v2431_v0  ;;  %v2432_v9 = vmul.f32 0.0078125, %v2410_v30  ;;  %v5865_v5 = vld [vmem:[#allocation25] sm:$0xff]  }
 0x85a   : > { %v2412_v36 = vpop.xlane.xlu0 %2411  ;;  %5526 = vmatprep.subr.bf16.mxu1 %v5865_v5 }
 0x85b   : > { %v8310_v25 = vsub.f32 %v8252_v35, %v2432_v9  ;;  %v2433_v42 = vmul.f32 0.0078125, %v2412_v36  ;;  %v2463_v26 = vmul.f32 %v8307_v7, %v8307_v7  ;;  %v5867_v35 = vld [vmem:[#allocation25 + $0x8] sm:$0xff]   ;;  %5527 = vmatpush3.bf16.msra.mxu1 %v5865_v5 }
 0x85c   : > { %v2414_v20 = vpop.xlane.xlu1 %2413  ;;  %5528 = vmatprep.subr.bf16.mxu1 %v5867_v35 }
 0x85d   : > { %v8315_v27 = vsub.f32 %v8255_v37, %v2433_v42  ;;  %v2434_v41 = vmul.f32 0.0078125, %v2414_v20  ;;  %2487 = vadd.xlane.f32.xlu0 %v2463_v26  ;;  %v2464_v52 = vmul.f32 %v8310_v25, %v8310_v25  ;;  %v8346_v42 = vld [vmem:[#allocation19] ss:$0 sm:$0xff] }
 0x85f   : > { %v8320_v21 = vsub.f32 %v8258_v3, %v2434_v41  ;;  %2489 = vadd.xlane.f32.xlu1 %v2464_v52  ;;  %v2465_v53 = vmul.f32 %v8315_v27, %v8315_v27  ;;  %5529 = vmatpush3.bf16.msra.mxu1 %v5867_v35 }
 0x860   : > { %5530 = vmatprep.subr.bf16.mxu1 %v5869_v62 }
 0x861   : > { %2491 = vadd.xlane.f32.xlu0 %v2465_v53  ;;  %v2466_v15 = vmul.f32 %v8320_v21, %v8320_v21  ;;  %v8349_v53 = vld [vmem:[#allocation20] ss:$0 sm:$0xff] }
 0x863   : > { %2493 = vadd.xlane.f32.xlu1 %v2466_v15  ;;  %5531 = vmatpush3.bf16.msra.mxu1 %v5869_v62 }
 0x864   : > { %5532 = vmatprep.subr.bf16.mxu1 %v5871_v50 }
 0x865   : > { %v2416_v29 = vpop.xlane.xlu0 %2415 }
 0x866   : > { %v2435_v24 = vmul.f32 0.0078125, %v2416_v29 }
 0x867   : > { %v2418_v37 = vpop.xlane.xlu1 %2417  ;;  %5533 = vmatpush3.bf16.msra.mxu1 %v5871_v50 }
 0x868   : > { %v8327_v3 = vsub.f32 %v8262_v32, %v2435_v24  ;;  %v2436_v31 = vmul.f32 0.0078125, %v2418_v37  ;;  %5534 = vmatprep.subr.bf16.mxu1 %v5873_v33 }
 0x869   : > { %v2420_v28 = vpop.xlane.xlu0 %2419 }
 0x86a   : > { %v8330_v43 = vsub.f32 %v8264_v10, %v2436_v31  ;;  %v2437_v49 = vmul.f32 0.0078125, %v2420_v28  ;;  %v2467_v19 = vmul.f32 %v8327_v3, %v8327_v3 }
 0x86b   : > { %v2422_v55 = vpop.xlane.xlu1 %2421  ;;  %5535 = vmatpush3.bf16.msra.mxu1 %v5873_v33 }
 0x86c   : > { %v8335_v39 = vsub.f32 %v8267_v14, %v2437_v49  ;;  %v2438_v46 = vmul.f32 0.0078125, %v2422_v55  ;;  %2495 = vadd.xlane.f32.xlu0 %v2467_v19  ;;  %v2468_v32 = vmul.f32 %v8330_v43, %v8330_v43  ;;  %5536 = vmatprep.subr.bf16.mxu1 %v5875_v63 }
 0x86e   : > { %v8340_v4 = vsub.f32 %v8270_v2, %v2438_v46  ;;  %2497 = vadd.xlane.f32.xlu1 %v2468_v32  ;;  %v2469_v10 = vmul.f32 %v8335_v39, %v8335_v39  ;;  %v5872_v2 = vld [vmem:[#allocation22 + $0x20] sm:$0xff]  }
 0x86f   : > { %5502 = vmatprep.subr.bf16.mxu0 %v5872_v2  ;;  %5537 = vmatpush3.bf16.msra.mxu1 %v5875_v63 }
 0x870   : > { %2499 = vadd.xlane.f32.xlu0 %v2469_v10  ;;  %v2470_v14 = vmul.f32 %v8340_v4, %v8340_v4  ;;  %5503 = vmatpush3.bf16.msra.mxu0 %v5872_v2 }
 0x871   : > { %5504 = vmatprep.subr.bf16.mxu0 %v5874_v47  ;;  %5538 = vmatprep.subr.bf16.mxu1 %v5877_v61 }
 0x872   : > { %2501 = vadd.xlane.f32.xlu1 %v2470_v14 }
 0x873   : > { %5539 = vmatpush3.bf16.msra.mxu1 %v5877_v61 }
 0x874   : > { %5505 = vmatpush3.bf16.msra.mxu0 %v5874_v47  ;;  %5540 = vmatprep.subr.bf16.mxu1 %v5879_v56 }
 0x875   : > { %5506 = vmatprep.subr.bf16.mxu0 %v5876_v59 }
 0x877   : > { %5541 = vmatpush3.bf16.msra.mxu1 %v5879_v56 }
 0x878   : > { %5507 = vmatpush3.bf16.msra.mxu0 %v5876_v59 }
 0x879   : > { %5508 = vmatprep.subr.bf16.mxu0 %v5878_v13 }
 0x87c   : > { %5509 = vmatpush3.bf16.msra.mxu0 %v5878_v13 }
 0x8ca   : > { %v2472_v11 = vpop.xlane.xlu0 %2471 }
 0x8cb   : > { %v2503_v44 = vmul.f32 0.0078125, %v2472_v11 }
 0x8cc   : > { %v2474_v58 = vpop.xlane.xlu1 %2473 }
 0x8cd   : > { %v2519_v38 = vadd.f32 1e-05, %v2503_v44  ;;  %v2504_v18 = vmul.f32 0.0078125, %v2474_v58 }
 0x8ce   : > { %v2476_v1 = vpop.xlane.xlu0 %2475 }
 0x8cf   : > { %6104 = vrsqrt.f32 %v2519_v38  ;;  %v2520_v16 = vadd.f32 1e-05, %v2504_v18  ;;  %v2505_v17 = vmul.f32 0.0078125, %v2476_v1 }
 0x8d0   : > { %v2478_v40 = vpop.xlane.xlu1 %2477 }
 0x8d1   : > { %6106 = vrsqrt.f32 %v2520_v16  ;;  %v2521_v0 = vadd.f32 1e-05, %v2505_v17  ;;  %v2506_v30 = vmul.f32 0.0078125, %v2478_v40 }
 0x8d3   : > { %6108 = vrsqrt.f32 %v2521_v0  ;;  %v2522_v9 = vadd.f32 1e-05, %v2506_v30 }
 0x8d5   : > { %6110 = vrsqrt.f32 %v2522_v9 }
 0x8d9   : > { %v6105_v36 = vpop.eup %6104 }
 0x8da   : > { %v2480_v26 = vpop.xlane.xlu0 %2479  ;;  %v2551_v20 = vmul.f32 %v6105_v36, %v8274_v48 }
 0x8db   : > { %v6107_v41 = vpop.eup %6106  ;;  %v2507_v52 = vmul.f32 0.0078125, %v2480_v26 }
 0x8dc   : > { %v2482_v15 = vpop.xlane.xlu1 %2481  ;;  %v2552_v29 = vmul.f32 %v6107_v41, %v8276_v8  ;;  %v2573_v23 = vmul.f32 %v8346_v42, %v2551_v20 }
 0x8dd   : > { %v6109_v5 = vpop.eup %6108  ;;  %v2523_v6 = vadd.f32 1e-05, %v2507_v52  ;;  %v2508_v24 = vmul.f32 0.0078125, %v2482_v15 }
 0x8de   : > { %v2553_v35 = vmul.f32 %v6109_v5, %v8280_v34  ;;  %v2484_v37 = vpop.xlane.xlu0 %2483  ;;  %v2574_v31 = vmul.f32 %v8346_v42, %v2552_v29  ;;  %v8356_v28 = vadd.f32 %v8349_v53, %v2573_v23 }
 0x8df   : > { %v6111_v48 = vpop.eup %6110  ;;  %6112 = vrsqrt.f32 %v2523_v6  ;;  %v2524_v49 = vadd.f32 1e-05, %v2508_v24  ;;  %v2509_v19 = vmul.f32 0.0078125, %v2484_v37 }
 0x8e0   : > { %v2575_v55 = vmul.f32 %v8346_v42, %v2553_v35  ;;  %v2554_v8 = vmul.f32 %v6111_v48, %v8284_v57  ;;  %v2486_v46 = vpop.xlane.xlu1 %2485  ;;  %v8361_v32 = vadd.f32 %v8349_v53, %v2574_v31  ;;  %v5163_v34 = vmul.f32 -1.442695, %v8356_v28 }
 0x8e1   : > { %6114 = vrsqrt.f32 %v2524_v49  ;;  %v2525_v10 = vadd.f32 1e-05, %v2509_v19  ;;  %v2510_v51 = vmul.f32 0.0078125, %v2486_v46 }
 0x8e2   : > { %v2576_v62 = vmul.f32 %v8346_v42, %v2554_v8  ;;  %6116 = vpow2.f32 %v5163_v34  ;;  %v5164_v14 = vmul.f32 -1.442695, %v8361_v32  ;;  %v8367_v54 = vadd.f32 %v8349_v53, %v2575_v55 }
 0x8e3   : > { %6118 = vrsqrt.f32 %v2525_v10  ;;  %v2526_v50 = vadd.f32 1e-05, %v2510_v51 }
 0x8e4   : > { %6120 = vpow2.f32 %v5164_v14  ;;  %v8370_v57 = vadd.f32 %v8349_v53, %v2576_v62  ;;  %v5165_v2 = vmul.f32 -1.442695, %v8367_v54 }
 0x8e5   : > { %6122 = vrsqrt.f32 %v2526_v50 }
 0x8e6   : > { %6124 = vpow2.f32 %v5165_v2  ;;  %v5166_v33 = vmul.f32 -1.442695, %v8370_v57 }
 0x8e8   : > { %6126 = vpow2.f32 %v5166_v33 }
 0x8e9   : > { %v6113_v47 = vpop.eup %6112 }
 0x8ea   : > { %v2488_v63 = vpop.xlane.xlu0 %2487  ;;  %v2555_v59 = vmul.f32 %v6113_v47, %v8290_v45 }
 0x8eb   : > { %v6115_v61 = vpop.eup %6114  ;;  %v2511_v13 = vmul.f32 0.0078125, %v2488_v63 }
 0x8ec   : > { %v6117_v56 = vpop.eup %6116  ;;  %v2490_v11 = vpop.xlane.xlu1 %2489  ;;  %v2556_v44 = vmul.f32 %v6115_v61, %v8292_v60  ;;  %v2577_v58 = vmul.f32 %v8346_v42, %v2555_v59 }
 0x8ed   : > { %v6119_v38 = vpop.eup %6118  ;;  %v2527_v18 = vadd.f32 1e-05, %v2511_v13  ;;  %v2512_v1 = vmul.f32 0.0078125, %v2490_v11  ;;  %v2659_v16 = vadd.f32 1.0, %v6117_v56 }
 0x8ee   : > { %v6121_v17 = vpop.eup %6120  ;;  %v2492_v40 = vpop.xlane.xlu0 %2491  ;;  %v2578_v0 = vmul.f32 %v8346_v42, %v2556_v44  ;;  %v8379_v30 = vadd.f32 %v8349_v53, %v2577_v58  ;;  %v2557_v45 = vmul.f32 %v6119_v38, %v8296_v12 }
 0x8ef   : > { %v6123_v9 = vpop.eup %6122  ;;  %6128 = vrsqrt.f32 %v2527_v18  ;;  %v2528_v36 = vadd.f32 1e-05, %v2512_v1  ;;  %v2513_v26 = vmul.f32 0.0078125, %v2492_v40  ;;  %v2660_v60 = vadd.f32 1.0, %v6121_v17 }
 0x8f0   : > { %v6125_v20 = vpop.eup %6124  ;;  %v2494_v41 = vpop.xlane.xlu1 %2493  ;;  %6130 = vrcp.f32 %v2659_v16  ;;  %v8383_v52 = vadd.f32 %v8349_v53, %v2578_v0  ;;  %v2558_v15 = vmul.f32 %v6123_v9, %v8300_v22  ;;  %v2579_v12 = vmul.f32 %v8346_v42, %v2557_v45 }
 0x8f1   : > { %6132 = vrsqrt.f32 %v2528_v36  ;;  %v2529_v29 = vadd.f32 1e-05, %v2513_v26  ;;  %v2514_v23 = vmul.f32 0.0078125, %v2494_v41  ;;  %v2661_v5 = vadd.f32 1.0, %v6125_v20 }
 0x8f2   : > { %v6127_v6 = vpop.eup %6126  ;;  %6134 = vrcp.f32 %v2660_v60  ;;  %v2580_v24 = vmul.f32 %v8346_v42, %v2558_v15  ;;  %v5167_v31 = vmul.f32 -1.442695, %v8379_v30  ;;  %v5168_v48 = vmul.f32 -1.442695, %v8383_v52 }
 0x8f3   : > { %6136 = vrsqrt.f32 %v2529_v29  ;;  %v2530_v35 = vadd.f32 1e-05, %v2514_v23  ;;  %v2662_v37 = vadd.f32 1.0, %v6127_v6  ;;  %v8391_v22 = vadd.f32 %v8349_v53, %v2579_v12 }
 0x8f4   : > { %6138 = vrcp.f32 %v2661_v5  ;;  %v8394_v49 = vadd.f32 %v8349_v53, %v2580_v24 }
 0x8f5   : > { %6140 = vrsqrt.f32 %v2530_v35  ;;  %v5169_v19 = vmul.f32 -1.442695, %v8391_v22 }
 0x8f6   : > { %6142 = vrcp.f32 %v2662_v37  ;;  %v5170_v55 = vmul.f32 -1.442695, %v8394_v49 }
 0x8f7   : > { %6144 = vpow2.f32 %v5167_v31 }
 0x8f8   : > { %6146 = vpow2.f32 %v5168_v48 }
 0x8f9   : > { %v6129_v8 = vpop.eup %6128  ;;  %v2496_v46 = vpop.xlane.xlu0 %2495  ;;  %6148 = vpow2.f32 %v5169_v19 }
 0x8fa   : > { %v6131_v34 = vpop.eup %6130  ;;  %v2515_v10 = vmul.f32 0.0078125, %v2496_v46  ;;  %6150 = vpow2.f32 %v5170_v55  ;;  %v2559_v51 = vmul.f32 %v6129_v8, %v8307_v7 }
 0x8fb   : > { %v6133_v62 = vpop.eup %6132  ;;  %v2498_v14 = vpop.xlane.xlu1 %2497  ;;  %v2707_v13 = vmul.f32 %v6131_v34, %v8356_v28 }
 0x8fc   : > { %v6135_v50 = vpop.eup %6134  ;;  %v2531_v2 = vadd.f32 1e-05, %v2515_v10  ;;  %v2516_v33 = vmul.f32 0.0078125, %v2498_v14  ;;  %v2560_v47 = vmul.f32 %v6133_v62, %v8310_v25  ;;  %v2581_v63 = vmul.f32 %v8346_v42, %v2559_v51 }
 0x8fd   : > { %v6137_v59 = vpop.eup %6136  ;;  %v2500_v61 = vpop.xlane.xlu0 %2499  ;;  %v2708_v56 = vmul.f32 %v6135_v50, %v8361_v32 }
 0x8fe   : > { %v6139_v11 = vpop.eup %6138  ;;  %6152 = vrsqrt.f32 %v2531_v2  ;;  %v2532_v44 = vadd.f32 1e-05, %v2516_v33  ;;  %v2517_v58 = vmul.f32 0.0078125, %v2500_v61  ;;  %v2582_v7 = vmul.f32 %v8346_v42, %v2560_v47 }
 0x8ff   : > { %v6141_v38 = vpop.eup %6140  ;;  %v2502_v18 = vpop.xlane.xlu1 %2501  ;;  %v2723_v1 = vpack.c.bf16 %v2708_v56, %v2707_v13  ;;  %v2709_v16 = vmul.f32 %v6139_v11, %v8367_v54  ;;  %v8406_v25 = vadd.f32 %v8349_v53, %v2581_v63  ;;  %v2561_v17 = vmul.f32 %v6137_v59, %v8315_v27 }
 0x900   : > { %v6143_v40 = vpop.eup %6142  ;;  %6154 = vrsqrt.f32 %v2532_v44  ;;  %v2533_v28 = vadd.f32 1e-05, %v2517_v58  ;;  %v2518_v32 = vmul.f32 0.0078125, %v2502_v18  ;;  %v8410_v0 = vadd.f32 %v8349_v53, %v2582_v7 }
 0x901   : > { %v6145_v45 = vpop.eup %6144  ;;  %5510 = vmatprep.mubr.bf16.mxu0 %v2723_v1  ;;  %5542 = vmatprep.mubr.bf16.mxu1 %v2723_v1  ;;  %v2710_v9 = vmul.f32 %v6143_v40, %v8370_v57  ;;  %v5171_v36 = vmul.f32 -1.442695, %v8406_v25  ;;  %v2562_v54 = vmul.f32 %v6141_v38, %v8320_v21  ;;  %v2583_v26 = vmul.f32 %v8346_v42, %v2561_v17 }
 0x902   : > { %v6147_v60 = vpop.eup %6146  ;;  %6156 = vrsqrt.f32 %v2533_v28  ;;  %v2534_v27 = vadd.f32 1e-05, %v2518_v32  ;;  %v2663_v20 = vadd.f32 1.0, %v6145_v45  ;;  %v5172_v12 = vmul.f32 -1.442695, %v8410_v0 }
 0x903   : > { %v6149_v41 = vpop.eup %6148  ;;  %v2724_v15 = vpack.c.bf16 %v2710_v9, %v2709_v16  ;;  %v2664_v29 = vadd.f32 1.0, %v6147_v60  ;;  %6158 = vpow2.f32 %v5171_v36  ;;  %v2584_v23 = vmul.f32 %v8346_v42, %v2562_v54 }
 0x904   : > { %v6151_v5 = vpop.eup %6150  ;;  %6160 = vrsqrt.f32 %v2534_v27  ;;  %v2665_v6 = vadd.f32 1.0, %v6149_v41  ;;  %v8418_v57 = vadd.f32 %v8349_v53, %v2583_v26 }
 0x905   : > { %5511 = vmatmul.mubr.bf16.vlgmr.msra.gmra.mrb[32].mxu0 %v2724_v15  ;;  %5543 = vmatmul.mubr.bf16.vlgmr.msra.gmra.mrb[32].mxu1 %v2724_v15  ;;  %6162 = vrcp.f32 %v2663_v20  ;;  %v2666_v21 = vadd.f32 1.0, %v6151_v5  ;;  %v8422_v24 = vadd.f32 %v8349_v53, %v2584_v23 }
 0x906   : > { %6164 = vrcp.f32 %v2664_v29  ;;  %v5173_v35 = vmul.f32 -1.442695, %v8418_v57 }
 0x907   : > { %6166 = vrcp.f32 %v2665_v6  ;;  %v5174_v37 = vmul.f32 -1.442695, %v8422_v24 }
 0x908   : > { %v6153_v31 = vpop.eup %6152  ;;  %6168 = vrcp.f32 %v2666_v21 }
 0x909   : > { %6170 = vpow2.f32 %v5172_v12  ;;  %v2563_v48 = vmul.f32 %v6153_v31, %v8327_v3 }
 0x90a   : > { %v6155_v19 = vpop.eup %6154  ;;  %6172 = vpow2.f32 %v5173_v35 }
 0x90b   : > { %6174 = vpow2.f32 %v5174_v37  ;;  %v2564_v55 = vmul.f32 %v6155_v19, %v8330_v43  ;;  %v2585_v8 = vmul.f32 %v8346_v42, %v2563_v48  ;;  %v5880_v19 = vld [vmem:[%s10103_s0] sm:$0xff]  }
 0x90c   : > { %v6157_v46 = vpop.eup %6156  ;;  %5558 = vmatprep.subr.bf16.mxu0 %v5880_v19 }
 0x90d   : > { %v6159_v34 = vpop.eup %6158  ;;  %v2586_v10 = vmul.f32 %v8346_v42, %v2564_v55  ;;  %v8431_v51 = vadd.f32 %v8349_v53, %v2585_v8  ;;  %v2565_v62 = vmul.f32 %v6157_v46, %v8335_v39  ;;  %5559 = vmatpush3.bf16.msra.mxu0 %v5880_v19  ;;  %v5881_v55 = vld [vmem:[%s10103_s0 + $0x8] sm:$0xff]   ;;  %v5882_v8 = vld [vmem:[%s10103_s0 + $0x10] sm:$0xff]   ;;  %v5883_v46 = vld [vmem:[%s10103_s0 + $0x18] sm:$0xff]  }
 0x90e   : > { %v6161_v14 = vpop.eup %6160  ;;  %v2667_v59 = vadd.f32 1.0, %v6159_v34  ;;  %5560 = vmatprep.subr.bf16.mxu0 %v5881_v55  ;;  %v5884_v34 = vld [vmem:[%s10103_s0 + $0x20] sm:$0xff]  }
 0x90f   : > { %v6163_v50 = vpop.eup %6162  ;;  %v8435_v3 = vadd.f32 %v8349_v53, %v2586_v10  ;;  %v5175_v2 = vmul.f32 -1.442695, %v8431_v51  ;;  %v2566_v43 = vmul.f32 %v6161_v14, %v8340_v4  ;;  %v2587_v33 = vmul.f32 %v8346_v42, %v2565_v62  ;;  %v5885_v10 = vld [vmem:[%s10103_s0 + $0x28] sm:$0xff]   ;;  %v5887_v62 = vld [vmem:[%s10103_s0 + $0x38] sm:$0xff]   ;;  %v8478_v14 = vld [vmem:[#allocation26] ss:$0 sm:$0xff] }
 0x910   : > { %v6165_v47 = vpop.eup %6164  ;;  %v2711_v63 = vmul.f32 %v6163_v50, %v8379_v30 }
 0x911   : > { %v6167_v61 = vpop.eup %6166  ;;  %v2712_v13 = vmul.f32 %v6165_v47, %v8383_v52  ;;  %6176 = vpow2.f32 %v5175_v2  ;;  %v5176_v39 = vmul.f32 -1.442695, %v8435_v3  ;;  %v2588_v56 = vmul.f32 %v8346_v42, %v2566_v43  ;;  %5561 = vmatpush3.bf16.msra.mxu0 %v5881_v55 }
 0x912   : > { %v6169_v11 = vpop.eup %6168  ;;  %v2713_v44 = vmul.f32 %v6167_v61, %v8391_v22  ;;  %v2609_v58 = vadd.f32 %v8349_v53, %v2587_v33  ;;  %5562 = vmatprep.subr.bf16.mxu0 %v5882_v8 }
 0x913   : > { %v6171_v4 = vpop.eup %6170  ;;  %v2725_v7 = vpack.c.bf16 %v2712_v13, %v2711_v63  ;;  %v2714_v38 = vmul.f32 %v6169_v11, %v8394_v49  ;;  %6178 = vpow2.f32 %v5176_v39  ;;  %v2610_v30 = vadd.f32 %v8349_v53, %v2588_v56 }
 0x914   : > { %v6173_v18 = vpop.eup %6172  ;;  %v2668_v1 = vadd.f32 1.0, %v6171_v4  ;;  %6180 = vrcp.f32 %v2667_v59  ;;  %v5177_v17 = vmul.f32 -1.442695, %v2609_v58 }
 0x915   : > { %v6175_v52 = vpop.eup %6174  ;;  %5514 = vmatprep.mubr.bf16.mxu0 %v2725_v7  ;;  %5546 = vmatprep.mubr.bf16.mxu1 %v2725_v7  ;;  %v2726_v16 = vpack.c.bf16 %v2714_v38, %v2713_v44  ;;  %v2669_v42 = vadd.f32 1.0, %v6173_v18  ;;  %v5178_v40 = vmul.f32 -1.442695, %v2610_v30 }
 0x916   : > { %6182 = vrcp.f32 %v2668_v1  ;;  %v2670_v22 = vadd.f32 1.0, %v6175_v52  ;;  %5563 = vmatpush3.bf16.msra.mxu0 %v5882_v8 }
 0x917   : > { %5515 = vmatmul.mubr.bf16.gmra.mrb[36].mxu0 %v2726_v16  ;;  %5547 = vmatmul.mubr.bf16.gmra.mrb[36].mxu1 %v2726_v16  ;;  %6184 = vrcp.f32 %v2669_v42 }
 0x918   : > { %6186 = vrcp.f32 %v2670_v22  ;;  %5564 = vmatprep.subr.bf16.mxu0 %v5883_v46 }
 0x919   : > { %6188 = vpow2.f32 %v5177_v17  ;;  %v8496_v17 = vld [vmem:[#allocation23] ss:$0 sm:$0xff] }
 0x91a   : > { %6190 = vpow2.f32 %v5178_v40  ;;  %5565 = vmatpush3.bf16.msra.mxu0 %v5883_v46 }
 0x91b   : > { %v6177_v49 = vpop.eup %6176  ;;  %5566 = vmatprep.subr.bf16.mxu0 %v5884_v34 }
 0x91c   : > { %v2671_v53 = vadd.f32 1.0, %v6177_v49 }
 0x91d   : > { %v6179_v28 = vpop.eup %6178 }
 0x91e   : > { %v6181_v32 = vpop.eup %6180  ;;  %v2672_v45 = vadd.f32 1.0, %v6179_v28  ;;  %6192 = vrcp.f32 %v2671_v53  ;;  %5567 = vmatpush3.bf16.msra.mxu0 %v5884_v34 }
 0x91f   : > { %v2715_v54 = vmul.f32 %v6181_v32, %v8406_v25  ;;  %5568 = vmatprep.subr.bf16.mxu0 %v5885_v10 }
 0x920   : > { %v6183_v9 = vpop.eup %6182  ;;  %6194 = vrcp.f32 %v2672_v45 }
 0x921   : > { %v6185_v36 = vpop.eup %6184  ;;  %v2716_v26 = vmul.f32 %v6183_v9, %v8410_v0 }
 0x922   : > { %v6187_v60 = vpop.eup %6186  ;;  %v2717_v41 = vmul.f32 %v6185_v36, %v8418_v57  ;;  %5569 = vmatpush3.bf16.msra.mxu0 %v5885_v10 }
 0x923   : > { %v6189_v27 = vpop.eup %6188  ;;  %v2727_v20 = vpack.c.bf16 %v2716_v26, %v2715_v54  ;;  %v2718_v15 = vmul.f32 %v6187_v60, %v8422_v24 }
 0x924   : > { %v6191_v29 = vpop.eup %6190  ;;  %v2673_v23 = vadd.f32 1.0, %v6189_v27 }
 0x925   : > { %5518 = vmatprep.mubr.bf16.mxu0 %v2727_v20  ;;  %5550 = vmatprep.mubr.bf16.mxu1 %v2727_v20  ;;  %v2728_v5 = vpack.c.bf16 %v2718_v15, %v2717_v41  ;;  %v2674_v6 = vadd.f32 1.0, %v6191_v29 }
 0x926   : > { %6196 = vrcp.f32 %v2673_v23 }
 0x927   : > { %5519 = vmatmul.mubr.bf16.gmra.mrb[40].mxu0 %v2728_v5  ;;  %5551 = vmatmul.mubr.bf16.gmra.mrb[40].mxu1 %v2728_v5  ;;  %6198 = vrcp.f32 %v2674_v6 }
 0x928   : > { %v6193_v25 = vpop.eup %6192 }
 0x929   : > { %v2719_v0 = vmul.f32 %v6193_v25, %v8431_v51  ;;  %v5886_v51 = vld [vmem:[%s10103_s0 + $0x30] sm:$0xff]  }
 0x92a   : > { %v6195_v21 = vpop.eup %6194  ;;  %5570 = vmatprep.subr.bf16.mxu0 %v5886_v51 }
 0x92b   : > { %v2720_v12 = vmul.f32 %v6195_v21, %v8435_v3  ;;  %5571 = vmatpush3.bf16.msra.mxu0 %v5886_v51 }
 0x92c   : > { %5572 = vmatprep.subr.bf16.mxu0 %v5887_v62 }
 0x92d   : > { %v2729_v35 = vpack.c.bf16 %v2720_v12, %v2719_v0 }
 0x92f   : > { %5522 = vmatprep.mubr.bf16.mxu0 %v2729_v35  ;;  %5554 = vmatprep.mubr.bf16.mxu1 %v2729_v35 }
 0x930   : > { %v6197_v57 = vpop.eup %6196  ;;  %5573 = vmatpush3.bf16.msra.mxu0 %v5887_v62 }
 0x931   : > { %v6199_v24 = vpop.eup %6198  ;;  %v2721_v37 = vmul.f32 %v6197_v57, %v2609_v58 }
 0x932   : > { %v2722_v31 = vmul.f32 %v6199_v24, %v2610_v30 }
 0x934   : > { %v2730_v48 = vpack.c.bf16 %v2722_v31, %v2721_v37 }
 0x936   : > { %5523 = vmatmul.mubr.bf16.gmra.mrb[44].mxu0 %v2730_v48  ;;  %5555 = vmatmul.mubr.bf16.gmra.mrb[44].mxu1 %v2730_v48 }
 0x9d8   : > { %v5512_v50 = vpop.f32.mrb[32].mxu0  ;;  %v5544_v3 = vpop.f32.mrb[32].mxu1 }
 0x9d9   : > { %v8481_v2 = vadd.f32 %v5544_v3, %v8478_v14  ;;  %v2836_v43 = vpop.f32.mrb[33].mxu0  ;;  %v3004_v33 = vpop.f32.mrb[33].mxu1  ;;  %v8499_v22 = vadd.f32 %v5512_v50, %v8496_v17 }
 0x9da   : > { %v8484_v47 = vadd.f32 %v8478_v14, %v3004_v33  ;;  %v5513_v63 = vpop.f32.mrb[34].mxu0  ;;  %v5545_v59 = vpop.f32.mrb[34].mxu1  ;;  %v8502_v28 = vadd.f32 %v8496_v17, %v2836_v43 }
 0x9db   : > { %v3117_v61 = vand.u32 2147483647, %v8481_v2  ;;  %v2839_v13 = vpop.f32.mrb[35].mxu0  ;;  %v3007_v39 = vpop.f32.mrb[35].mxu1  ;;  %v8489_v11 = vadd.f32 %v5545_v59, %v8478_v14  ;;  %v8508_v54 = vadd.f32 %v5513_v63, %v8496_v17  ;;  %v8515_v15 = vmul.f32 %v8499_v22, %v8499_v22 }
 0x9dc   : > { %v3115_v56 = vand.u32 2147483647, %v8484_v47  ;;  %v8492_v58 = vadd.f32 %v8478_v14, %v3007_v39  ;;  %v8518_v29 = vadd.f32 %v8496_v17, %v2839_v13  ;;  %v3069_v6 = vmax.f32 %v8481_v2, 0.0 }
 0x9dd   : > { %10104 = vst [vmem:[#allocation46_spill] sm:$0xff] %v8489_v11  ;;  %v3133_v44 = vsub.f32 0.0, %v3117_v61  ;;  %v3118_v38 = vand.u32 2147483647, %v8489_v11  ;;  %v8526_v25 = vmul.f32 %v8502_v28, %v8502_v28  ;;  %v8534_v12 = vmul.f32 %v8508_v54, %v8508_v54 }
 0x9de   : > { %v3131_v4 = vsub.f32 0.0, %v3115_v56  ;;  %v3116_v30 = vand.u32 2147483647, %v8492_v58  ;;  %v3067_v24 = vmax.f32 %v8484_v47, 0.0  ;;  %v3070_v48 = vmax.f32 %v8489_v11, 0.0 }
 0x9df   : > { %v3151_v7 = vmul.f32 1.442695, %v3133_v44  ;;  %v3134_v18 = vsub.f32 0.0, %v3118_v38  ;;  %10105 = vst [vmem:[#allocation47_spill] sm:$0xff] %v8534_v12  ;;  %v8549_v46 = vmul.f32 %v8518_v29, %v8518_v29  ;;  %v3068_v3 = vmax.f32 %v8492_v58, 0.0 }
 0x9e0   : > { %v3132_v1 = vsub.f32 0.0, %v3116_v30  ;;  %v3147_v52 = vmul.f32 1.442695, %v3131_v4  ;;  %vm3085_vm1 = vcmp.ne.f32.partialorder %v8481_v2, %v8481_v2  ;;  %vm3086_vm2 = vcmp.ne.f32.partialorder %v8489_v11, %v8489_v11 }
 0x9e1   : > { %6200 = vpow2.f32 %v3151_v7  ;;  %v3153_v16 = vmul.f32 1.442695, %v3134_v18  ;;  %vm3083_vm4 = vcmp.ne.f32.partialorder %v8484_v47, %v8484_v47  ;;  %vm3084_vm6 = vcmp.ne.f32.partialorder %v8492_v58, %v8492_v58 }
 0x9e2   : > { %v3149_v42 = vmul.f32 1.442695, %v3132_v1 }
 0x9e3   : > { %6202 = vpow2.f32 %v3153_v16 }
 0x9e4   : > { %6204 = vpow2.f32 %v3147_v52 }
 0x9e5   : > { %6206 = vpow2.f32 %v3149_v42 }
 0x9ea   : > { %v5516_v40 = vpop.f32.mrb[36].mxu0  ;;  %v5548_v49 = vpop.f32.mrb[36].mxu1 }
 0x9eb   : > { %v6201_v53 = vpop.eup %6200  ;;  %v8505_v32 = vadd.f32 %v5548_v49, %v8478_v14  ;;  %v2852_v45 = vpop.f32.mrb[37].mxu0  ;;  %v8538_v57 = vadd.f32 %v5516_v40, %v8496_v17 }
 0x9ec   : > { %v3020_v9 = vpop.f32.mrb[37].mxu1  ;;  %v3197_v36 = vadd.f32 1.0, %v6201_v53  ;;  %v5517_v26 = vpop.f32.mrb[38].mxu0  ;;  %v3200_v31 = vmul.f32 -0.5, %v6201_v53  ;;  %v3203_v51 = vand.u32 2147483647, %v6201_v53  ;;  %v8555_v62 = vadd.f32 %v8496_v17, %v2852_v45 }
 0x9ed   : > { %v5549_v60 = vpop.f32.mrb[38].mxu1  ;;  %v8511_v27 = vadd.f32 %v8478_v14, %v3020_v9  ;;  %v2855_v20 = vpop.f32.mrb[39].mxu0  ;;  %v3121_v23 = vand.u32 2147483647, %v8505_v32  ;;  %v8561_v33 = vmul.f32 %v8538_v57, %v8538_v57  ;;  %v8568_v4 = vadd.f32 %v5517_v26, %v8496_v17 }
 0x9ee   : > { %v3023_v41 = vpop.f32.mrb[39].mxu1  ;;  %6208 = vlog2.f32 %v3197_v36  ;;  %v8521_v5 = vpop.eup %6202  ;;  %v8530_v0 = vadd.f32 %v5549_v60, %v8478_v14  ;;  %v3201_v61 = vadd.f32 1.0, %v3200_v31  ;;  %vm8571_vm0 = vcmp.lt.f32.partialorder %v3203_v51, 0.0004427343 }
 0x9ef   : > { %v3119_v21 = vand.u32 2147483647, %v8511_v27  ;;  %v3206_v35 = vadd.f32 1.0, %v8521_v5  ;;  %v8541_v37 = vpop.eup %6204  ;;  %v3137_v34 = vsub.f32 0.0, %v3121_v23  ;;  %v8552_v10 = vadd.f32 %v8478_v14, %v3023_v41  ;;  %10107 = vst [vmem:[#allocation49_spill] sm:$0xff] %v8561_v33 }
 0x9f0   : > { %v3122_v55 = vand.u32 2147483647, %v8530_v0  ;;  %v8545_v8 = vpop.eup %6206  ;;  %v3209_v43 = vmul.f32 -0.5, %v8521_v5  ;;  %v3179_v59 = vadd.f32 1.0, %v8541_v37  ;;  %v3212_v13 = vand.u32 2147483647, %v8521_v5 }
 0x9f1   : > { %v3135_v19 = vsub.f32 0.0, %v3119_v21  ;;  %6210 = vlog2.f32 %v3206_v35  ;;  %10106 = vst [vmem:[#allocation48_spill] sm:$0xff] %v8552_v10  ;;  %v3120_v63 = vand.u32 2147483647, %v8552_v10  ;;  %v3188_v56 = vadd.f32 1.0, %v8545_v8 }
 0x9f2   : > { %v3138_v39 = vsub.f32 0.0, %v3122_v55  ;;  %v3159_v44 = vmul.f32 1.442695, %v3137_v34  ;;  %6212 = vlog2.f32 %v3179_v59  ;;  %v3182_v7 = vmul.f32 -0.5, %v8541_v37 }
 0x9f3   : > { %v3155_v50 = vmul.f32 1.442695, %v3135_v19  ;;  %v8577_v30 = vmul.f32 %v8555_v62, %v8555_v62  ;;  %v8580_v18 = vadd.f32 %v8496_v17, %v2855_v20  ;;  %v3210_v52 = vadd.f32 1.0, %v3209_v43 }
 0x9f4   : > { %v3136_v16 = vsub.f32 0.0, %v3120_v63  ;;  %v3191_v42 = vmul.f32 -0.5, %v8545_v8  ;;  %v3202_v49 = vmul.f32 %v6201_v53, %v3201_v61  ;;  %vm8587_vm3 = vcmp.lt.f32.partialorder %v3212_v13, 0.0004427343 }
 0x9f5   : > { %10110 = vst [vmem:[#allocation50_spill] sm:$0xff] %v8577_v30  ;;  %6214 = vpow2.f32 %v3155_v50  ;;  %v3161_v9 = vmul.f32 1.442695, %v3138_v39  ;;  %v8593_v36 = vmul.f32 %v8568_v4, %v8568_v4  ;;  %v3183_v20 = vadd.f32 1.0, %v3182_v7 }
 0x9f6   : > { %6216 = vlog2.f32 %v3188_v56  ;;  %v3185_v41 = vand.u32 2147483647, %v8541_v37  ;;  %v8600_v23 = vmul.f32 %v8580_v18, %v8580_v18  ;;  %v3194_v19 = vand.u32 2147483647, %v8545_v8 }
 0x9f7   : > { %6218 = vpow2.f32 %v3159_v44  ;;  %10113 = vst [vmem:[#allocation51_spill] sm:$0xff] %v8593_v36  ;;  %v3211_v34 = vmul.f32 %v8521_v5, %v3210_v52  ;;  %v3157_v51 = vmul.f32 1.442695, %v3136_v16  ;;  %v3192_v59 = vadd.f32 1.0, %v3191_v42  ;;  %v1106_v42 = vld [vmem:[%s7724_s15 + $0x10] sm:$0xff] }
 0x9f8   : > { %v6209_v1 = vpop.eup %6208  ;;  %10114 = vst [vmem:[#allocation52_spill] sm:$0xff] %v8600_v23  ;;  %6220 = vpow2.f32 %v3161_v9  ;;  %v3184_v7 = vmul.f32 %v8541_v37, %v3183_v20  ;;  %vm8621_vm5 = vcmp.lt.f32.partialorder %v3185_v41, 0.0004427343  ;;  %vm8634_vm7 = vcmp.lt.f32.partialorder %v3194_v19, 0.0004427343 }
 0x9f9   : > { %v3199_v40 = vmul.f32 0.6931472, %v6209_v1  ;;  %6222 = vpow2.f32 %v3157_v51  ;;  %vm3087_vm8 = vcmp.ne.f32.partialorder %v8511_v27, %v8511_v27  ;;  %vm3088_vm10 = vcmp.ne.f32.partialorder %v8552_v10, %v8552_v10 }
 0x9fa   : > { %v5520_v26 = vpop.f32.mrb[40].mxu0  ;;  %v5552_v60 = vpop.f32.mrb[40].mxu1  ;;  %vm3089_vm12 = vcmp.ne.f32.partialorder %v8505_v32, %v8505_v32  ;;  %vm3090_vm14 = vcmp.ne.f32.partialorder %v8530_v0, %v8530_v0 }
 0x9fb   : > { %v3205_v53 = vsel %vm8571_vm0, %v3202_v49, %v3199_v40  ;;  %v8603_v21 = vadd.f32 %v5552_v60, %v8478_v14  ;;  %v2868_v35 = vpop.f32.mrb[41].mxu0  ;;  %v3036_v31 = vpop.f32.mrb[41].mxu1 }
 0x9fc   : > { %v6211_v55 = vpop.eup %6210  ;;  %v8608_v50 = vadd.f32 %v8478_v14, %v3036_v31  ;;  %v5521_v43 = vpop.f32.mrb[42].mxu0  ;;  %v3325_v61 = vadd.f32 %v3205_v53, %v3069_v6  ;;  %v3193_v53 = vmul.f32 %v8545_v8, %v3192_v59  ;;  %v1107_v31 = vld [vmem:[%s7724_s15 + $0x18] sm:$0xff] }
 0x9fd   : > { %v5553_v63 = vpop.f32.mrb[42].mxu1  ;;  %v3208_v13 = vmul.f32 0.6931472, %v6211_v55  ;;  %v3125_v39 = vand.u32 2147483647, %v8603_v21  ;;  %v8613_v56 = vpop.f32.mrb[43].mxu0 }
 0x9fe   : > { %v3039_v44 = vpop.f32.mrb[43].mxu1  ;;  %v8618_v5 = vadd.f32 %v5553_v63, %v8478_v14  ;;  %v3123_v52 = vand.u32 2147483647, %v8608_v50  ;;  %v6213_v40 = vpop.eup %6212  ;;  %v8651_v19 = vsel %vm3085_vm1, %v8481_v2, %v3325_v61  ;;  %v8663_v63 = vadd.f32 %v5520_v26, %v8496_v17 }
 0x9ff   : > { %v3214_v1 = vsel %vm8587_vm3, %v3211_v34, %v3208_v13  ;;  %v8630_v16 = vadd.f32 %v8478_v14, %v3039_v44  ;;  %v3141_v45 = vsub.f32 0.0, %v3125_v39  ;;  %v8642_v60 = vpop.eup %6214  ;;  %v3181_v41 = vmul.f32 0.6931472, %v6213_v40  ;;  %v1104_v40 = vld [vmem:[%s7724_s15] sm:$0xff] }
 0xa00   : > { %v3326_v49 = vadd.f32 %v3214_v1, %v3070_v48  ;;  %v3126_v20 = vand.u32 2147483647, %v8618_v5  ;;  %v6217_v48 = vpop.eup %6216  ;;  %v3437_v51 = vmul.f32 %v8651_v19, %v1106_v42  ;;  %v3139_v59 = vsub.f32 0.0, %v3123_v52 }
 0xa01   : > { %v3124_v55 = vand.u32 2147483647, %v8630_v16  ;;  %v3187_v61 = vsel %vm8621_vm5, %v3184_v7, %v3181_v41  ;;  %v3190_v13 = vmul.f32 0.6931472, %v6217_v48  ;;  %v8667_v39 = vpop.eup %6218  ;;  %v3167_v44 = vmul.f32 1.442695, %v3141_v45 }
 0xa02   : > { %v8658_v34 = vsel %vm3086_vm2, %v8489_v11, %v3326_v49  ;;  %v8670_v1 = vadd.f32 %v8496_v17, %v2868_v35  ;;  %v3323_v42 = vadd.f32 %v3187_v61, %v3067_v24  ;;  %v3142_v26 = vsub.f32 0.0, %v3126_v20  ;;  %v1105_v41 = vld [vmem:[%s7724_s15 + $0x8] sm:$0xff]  ;;  %v8692_v37 = vpop.eup %6220 }
 0xa03   : > { %v3438_v49 = vmul.f32 %v8658_v34, %v1107_v31  ;;  %v3196_v52 = vsel %vm8634_vm7, %v3193_v53, %v3190_v13  ;;  %v8679_v7 = vadd.f32 %v3437_v51, %v8499_v22  ;;  %v3215_v38 = vadd.f32 1.0, %v8642_v60 }
 0xa04   : > { %v3140_v45 = vsub.f32 0.0, %v3124_v55  ;;  %v3324_v35 = vadd.f32 %v3196_v52, %v3068_v3  ;;  %v8689_v24 = vsel %vm3083_vm4, %v8484_v47, %v3323_v42  ;;  %v8696_v22 = vmul.f32 %v8663_v63, %v8663_v63  ;;  %v8723_v42 = vpop.eup %6222 }
 0xa05   : > { %v3454_v20 = vadd.f32 %v3438_v49, %v8508_v54  ;;  %v3163_v53 = vmul.f32 1.442695, %v3139_v59  ;;  %v3435_v31 = vmul.f32 %v8689_v24, %v1104_v40  ;;  %3469 = vst [vmem:[%s8701_s5 + $0x10] sm:$0xff] %v8679_v7  ;;  %v8707_v54 = vadd.f32 %v5521_v43, %v8496_v17 }
 0xa06   : > { %10119 = vst [vmem:[#allocation53_spill] sm:$0xff] %v8696_v22  ;;  %v8713_v48 = vsel %vm3084_vm6, %v8492_v58, %v3324_v35  ;;  %6224 = vlog2.f32 %v3215_v38  ;;  %v8719_v51 = vmul.f32 %v8670_v1, %v8670_v1  ;;  %v3169_v59 = vmul.f32 1.442695, %v3142_v26 }
 0xa07   : > { %3470 = vst [vmem:[%s8701_s5 + $0x18] sm:$0xff] %v3454_v20  ;;  %v3484_v55 = vpack.c.bf16 %v3454_v20, %v8679_v7  ;;  %v3436_v43 = vmul.f32 %v8713_v48, %v1105_v41  ;;  %v3451_v40 = vadd.f32 %v3435_v31, %v8502_v28  ;;  %6226 = vpow2.f32 %v3167_v44 }
 0xa08   : > { %10120 = vst [vmem:[#allocation54_spill] sm:$0xff] %v8719_v51  ;;  %v3165_v49 = vmul.f32 1.442695, %v3140_v45  ;;  %6228 = vpow2.f32 %v3163_v53  ;;  %v3218_v44 = vmul.f32 -0.5, %v8642_v60  ;;  %v3371_v53 = vmax.f32 %v8689_v24, 1e-30 }
 0xa09   : > { %v5524_v61 = vpop.f32.mrb[44].mxu0  ;;  %v5556_v13 = vpop.f32.mrb[44].mxu1  ;;  %v3452_v28 = vadd.f32 %v3436_v43, %v8518_v29  ;;  %3467 = vst [vmem:[%s8701_s5] sm:$0xff] %v3451_v40  ;;  %6230 = vpow2.f32 %v3169_v59  ;;  %v3221_v43 = vand.u32 2147483647, %v8642_v60  ;;  %v3372_v6 = vmax.f32 %v8713_v48, 1e-30 }
 0xa0a   : > { %v8726_v52 = vadd.f32 %v5524_v61, %v8496_v17  ;;  %v8729_v7 = vadd.f32 %v5556_v13, %v8478_v14  ;;  %v2884_v38 = vpop.f32.mrb[45].mxu0  ;;  %v3052_v35 = vpop.f32.mrb[45].mxu1  ;;  %6232 = vpow2.f32 %v3165_v49  ;;  %v3219_v59 = vadd.f32 1.0, %v3218_v44 }
 0xa0b   : > { %v8732_v26 = vadd.f32 %v8478_v14, %v3052_v35  ;;  %v5525_v41 = vpop.f32.mrb[46].mxu0  ;;  %v5557_v20 = vpop.f32.mrb[46].mxu1  ;;  %3468 = vst [vmem:[%s8701_s5 + $0x8] sm:$0xff] %v3452_v28  ;;  %v3483_v29 = vpack.c.bf16 %v3452_v28, %v3451_v40  ;;  %v3224_v22 = vadd.f32 1.0, %v8723_v42  ;;  %6234 = vlog2.f32 %v3371_v53 }
 0xa0c   : > { %10121 = vst [vmem:[#allocation55_spill] sm:$0xff] %v8726_v52  ;;  %v3129_v45 = vand.u32 2147483647, %v8729_v7  ;;  %v8739_v31 = vadd.f32 %v5525_v41, %v8496_v17  ;;  %v8742_v61 = vadd.f32 %v5557_v20, %v8478_v14  ;;  %v2887_v13 = vpop.f32.mrb[47].mxu0  ;;  %v3055_v35 = vpop.f32.mrb[47].mxu1  ;;  %v3227_v28 = vmul.f32 -0.5, %v8723_v42 }
 0xa0d   : > { %v3127_v3 = vand.u32 2147483647, %v8732_v26  ;;  %v8750_v41 = vadd.f32 %v8478_v14, %v3055_v35  ;;  %5574 = vmatprep.mubr.bf16.mxu0 %v3483_v29  ;;  %v8760_v14 = vmul.f32 %v8707_v54, %v8707_v54  ;;  %vm8766_vm9 = vcmp.lt.f32.partialorder %v3221_v43, 0.0004427343 }
 0xa0e   : > { %10122 = vst [vmem:[#allocation56_spill] sm:$0xff] %v8739_v31  ;;  %v3145_v8 = vsub.f32 0.0, %v3129_v45  ;;  %v3130_v9 = vand.u32 2147483647, %v8742_v61  ;;  %5575 = vmatmul.mubr.bf16.vlgmr.msra.gmra.mrb[48].mxu0 %v3484_v55  ;;  %6236 = vlog2.f32 %v3224_v22  ;;  %v8771_v53 = vadd.f32 %v8496_v17, %v2884_v38 }
 0xa0f   : > { %v3143_v20 = vsub.f32 0.0, %v3127_v3  ;;  %v3128_v49 = vand.u32 2147483647, %v8750_v41  ;;  %10123 = vst [vmem:[#allocation57_spill] sm:$0xff] %v8760_v14  ;;  %v8764_v3 = vadd.f32 %v8496_v17, %v8613_v56  ;;  %v8774_v55 = vadd.f32 %v8496_v17, %v2887_v13 }
 0xa10   : > { %v3146_v40 = vsub.f32 0.0, %v3130_v9  ;;  %v6225_v9 = vpop.eup %6224  ;;  %v3175_v44 = vmul.f32 1.442695, %v3145_v8  ;;  %v3220_v56 = vmul.f32 %v8642_v60, %v3219_v59  ;;  %v3233_v43 = vadd.f32 1.0, %v8667_v39 }
 0xa11   : > { %v3144_v35 = vsub.f32 0.0, %v3128_v49  ;;  %v3171_v29 = vmul.f32 1.442695, %v3143_v20  ;;  %v3217_v14 = vmul.f32 0.6931472, %v6225_v9  ;;  %v8778_v51 = vpop.eup %6226  ;;  %6238 = vlog2.f32 %v3372_v6  ;;  %v1108_v6 = vld [vmem:[%s7724_s15 + $0x20] sm:$0xff] }
 0xa12   : > { %v3177_v36 = vmul.f32 1.442695, %v3146_v40  ;;  %v3228_v22 = vadd.f32 1.0, %v3227_v28  ;;  %v3230_v8 = vand.u32 2147483647, %v8723_v42  ;;  %v8781_v38 = vpop.eup %6228  ;;  %6240 = vlog2.f32 %v3233_v43 }
 0xa13   : > { %v3223_v17 = vsel %vm8766_vm9, %v3220_v56, %v3217_v14  ;;  %v3236_v13 = vmul.f32 -0.5, %v8667_v39  ;;  %v3242_v20 = vadd.f32 1.0, %v8692_v37  ;;  %v8789_v60 = vmul.f32 %v8764_v3, %v8764_v3  ;;  %v8794_v28 = vpop.eup %6230 }
 0xa14   : > { %6242 = vpow2.f32 %v3175_v44  ;;  %v3173_v59 = vmul.f32 1.442695, %v3144_v35  ;;  %v10127_v40 = vmax.f32 %v8511_v27, 0.0  ;;  %v8798_v14 = vmul.f32 %v8771_v53, %v8771_v53  ;;  %v8805_v56 = vpop.eup %6232 }
 0xa15   : > { %10126 = vst [vmem:[#allocation58_spill] sm:$0xff] %v8789_v60  ;;  %v8802_v45 = vmul.f32 %v8774_v55, %v8774_v55  ;;  %6244 = vlog2.f32 %v3242_v20  ;;  %v3245_v9 = vmul.f32 -0.5, %v8692_v37  ;;  %vm8809_vm11 = vcmp.lt.f32.partialorder %v3230_v8, 0.0004427343 }
 0xa16   : > { %v3327_v49 = vadd.f32 %v3223_v17, %v10127_v40  ;;  %10128 = vst [vmem:[#allocation59_spill] sm:$0xff] %v8798_v14  ;;  %6246 = vpow2.f32 %v3171_v29  ;;  %v3239_v43 = vand.u32 2147483647, %v8667_v39  ;;  %v3229_v17 = vmul.f32 %v8723_v42, %v3228_v22  ;;  %v8822_v40 = vpop.eup %6234 }
 0xa17   : > { %10129 = vst [vmem:[#allocation60_spill] sm:$0xff] %v8802_v45  ;;  %6248 = vpow2.f32 %v3177_v36  ;;  %v3237_v20 = vadd.f32 1.0, %v3236_v13  ;;  %v3248_v8 = vand.u32 2147483647, %v8692_v37  ;;  %v3251_v45 = vadd.f32 1.0, %v8781_v38 }
 0xa18   : > { %v8817_v35 = vsel %vm3087_vm8, %v8511_v27, %v3327_v49  ;;  %6250 = vpow2.f32 %v3173_v59  ;;  %v3254_v14 = vmul.f32 -0.5, %v8781_v38  ;;  %v6237_v49 = vpop.eup %6236  ;;  %v3246_v42 = vadd.f32 1.0, %v3245_v9  ;;  %v1109_v9 = vld [vmem:[%s7724_s15 + $0x28] sm:$0xff] }
 0xa19   : > { %10132 = vst [vmem:[#allocation61_spill] sm:$0xff] %v8817_v35  ;;  %v3439_v29 = vmul.f32 %v8817_v35, %v1108_v6  ;;  %v3375_v60 = vmax.f32 %v8817_v35, 1e-30  ;;  %v3260_v22 = vadd.f32 1.0, %v8805_v56  ;;  %v3226_v13 = vmul.f32 0.6931472, %v6237_v49 }
 0xa1a   : > { %vm8834_vm13 = vcmp.lt.f32.partialorder %v3239_v43, 0.0004427343  ;;  %6252 = vlog2.f32 %v3251_v45  ;;  %v3257_v6 = vand.u32 2147483647, %v8781_v38  ;;  %vm8849_vm15 = vcmp.lt.f32.partialorder %v3248_v8, 0.0004427343 }
 0xa1b   : > { %v8829_v36 = vadd.f32 %v3439_v29, %v8555_v62  ;;  %v3238_v62 = vmul.f32 %v8667_v39, %v3237_v20  ;;  %v3255_v29 = vadd.f32 1.0, %v3254_v14  ;;  %6254 = vlog2.f32 %v3260_v22  ;;  %v8843_v49 = vpop.eup %6238 }
 0xa1c   : > { %v3232_v33 = vsel %vm8809_vm11, %v3229_v17, %v3226_v13  ;;  %v3263_v39 = vmul.f32 -0.5, %v8805_v56  ;;  %v6241_v20 = vpop.eup %6240  ;;  %v10137_v14 = vmax.f32 %v8552_v10, 0.0  ;;  %6256 = vlog2.f32 %v3375_v60 }
 0xa1d   : > { %3471 = vst [vmem:[%s8701_s5 + $0x20] sm:$0xff] %v8829_v36  ;;  %v3247_v44 = vmul.f32 %v8692_v37, %v3246_v42  ;;  %v3266_v17 = vand.u32 2147483647, %v8805_v56  ;;  %v3235_v8 = vmul.f32 0.6931472, %v6241_v20  ;;  %v3269_v31 = vadd.f32 1.0, %v8778_v51 }
 0xa1e   : > { %v3328_v22 = vadd.f32 %v3232_v33, %v10137_v14  ;;  %v8860_v13 = vpop.eup %6242  ;;  %vm8862_vm0 = vcmp.lt.f32.partialorder %v3257_v6, 0.0004427343  ;;  %v3272_v52 = vmul.f32 -0.5, %v8778_v51  ;;  %v3256_v60 = vmul.f32 %v8781_v38, %v3255_v29 }
 0xa1f   : > { %v6245_v33 = vpop.eup %6244  ;;  %v3278_v42 = vadd.f32 1.0, %v8794_v28  ;;  %v3281_v6 = vmul.f32 -0.5, %v8794_v28  ;;  %v3241_v43 = vsel %vm8834_vm13, %v3238_v62, %v3235_v8  ;;  %v3264_v11 = vadd.f32 1.0, %v3263_v39 }
 0xa20   : > { %v8873_v37 = vsel %vm3088_vm10, %v8552_v10, %v3328_v22  ;;  %v8878_v20 = vpop.eup %6246  ;;  %v3244_v30 = vmul.f32 0.6931472, %v6245_v33  ;;  %v1110_v22 = vld [vmem:[%s7724_s15 + $0x30] sm:$0xff]  ;;  %v10140_v10 = vmax.f32 %v8505_v32, 0.0  ;;  %vm3091_vm1 = vcmp.ne.f32.partialorder %v8608_v50, %v8608_v50 }
 0xa21   : > { %v3440_v14 = vmul.f32 %v8873_v37, %v1109_v9  ;;  %v8883_v35 = vpop.eup %6248  ;;  %6258 = vlog2.f32 %v3269_v31  ;;  %v3275_v9 = vand.u32 2147483647, %v8778_v51  ;;  %v3376_v62 = vmax.f32 %v8873_v37, 1e-30 }
 0xa22   : > { %v3329_v38 = vadd.f32 %v3241_v43, %v10140_v10  ;;  %v8892_v59 = vpop.eup %6250  ;;  %v3250_v8 = vsel %vm8849_vm15, %v3247_v44, %v3244_v30  ;;  %v3273_v33 = vadd.f32 1.0, %v3272_v52  ;;  %v1111_v10 = vld [vmem:[%s7724_s15 + $0x38] sm:$0xff]  ;;  %v10141_v43 = vmax.f32 %v8530_v0, 0.0 }
 0xa23   : > { %v3456_v39 = vadd.f32 %v3440_v14, %v8580_v18  ;;  %vm3092_vm2 = vcmp.ne.f32.partialorder %v8630_v16, %v8630_v16  ;;  %6260 = vlog2.f32 %v3278_v42  ;;  %v3282_v29 = vadd.f32 1.0, %v3281_v6 }
 0xa24   : > { %v3330_v12 = vadd.f32 %v3250_v8, %v10141_v43  ;;  %v8905_v31 = vsel %vm3089_vm12, %v8505_v32, %v3329_v38  ;;  %v6253_v18 = vpop.eup %6252  ;;  %v3265_v45 = vmul.f32 %v8805_v56, %v3264_v11  ;;  %vm8913_vm3 = vcmp.lt.f32.partialorder %v3266_v17, 0.0004427343 }
 0xa25   : > { %3472 = vst [vmem:[%s8701_s5 + $0x28] sm:$0xff] %v3456_v39  ;;  %v3485_v30 = vpack.c.bf16 %v3456_v39, %v8829_v36  ;;  %v3441_v52 = vmul.f32 %v8905_v31, %v1110_v22  ;;  %v6255_v14 = vpop.eup %6254  ;;  %v3377_v42 = vmax.f32 %v8905_v31, 1e-30  ;;  %v3253_v36 = vmul.f32 0.6931472, %v6253_v18 }
 0xa26   : > { %v8921_v38 = vsel %vm3090_vm14, %v8530_v0, %v3330_v12  ;;  %vm8924_vm4 = vcmp.lt.f32.partialorder %v3275_v9, 0.0004427343  ;;  %6262 = vlog2.f32 %v3376_v62  ;;  %v3284_v17 = vand.u32 2147483647, %v8794_v28  ;;  %v8931_v22 = vpop.eup %6256 }
 0xa27   : > { %5578 = vmatprep.mubr.bf16.mxu0 %v3485_v30  ;;  %v3442_v11 = vmul.f32 %v8921_v38, %v1111_v10  ;;  %v3457_v56 = vadd.f32 %v3441_v52, %v8538_v57  ;;  %v3259_v12 = vsel %vm8862_vm0, %v3256_v60, %v3253_v36  ;;  %v3262_v39 = vmul.f32 0.6931472, %v6255_v14  ;;  %v1112_v57 = vld [vmem:[%s7724_s15 + $0x40] sm:$0xff] }
 0xa28   : > { %v3274_v9 = vmul.f32 %v8778_v51, %v3273_v33  ;;  %v3283_v8 = vmul.f32 %v8794_v28, %v3282_v29  ;;  %v3378_v62 = vmax.f32 %v8921_v38, 1e-30  ;;  %v10146_v43 = vmax.f32 %v8608_v50, 0.0  ;;  %v1113_v29 = vld [vmem:[%s7724_s15 + $0x48] sm:$0xff] }
 0xa29   : > { %v3458_v10 = vadd.f32 %v3442_v11, %v8568_v4  ;;  %3473 = vst [vmem:[%s8701_s5 + $0x30] sm:$0xff] %v3457_v56  ;;  %vm3093_vm5 = vcmp.ne.f32.partialorder %v8603_v21, %v8603_v21  ;;  %v3079_v23 = vmax.f32 %v8732_v26, 0.0  ;;  %6264 = vlog2.f32 %v3377_v42 }
 0xa2a   : > { %v3331_v18 = vadd.f32 %v3259_v12, %v10146_v43  ;;  %v3268_v51 = vsel %vm8913_vm3, %v3265_v45, %v3262_v39  ;;  %v3287_v28 = vadd.f32 1.0, %v8878_v20  ;;  %v3290_v60 = vmul.f32 -0.5, %v8878_v20 }
 0xa2b   : > { %3474 = vst [vmem:[%s8701_s5 + $0x38] sm:$0xff] %v3458_v10  ;;  %v3486_v4 = vpack.c.bf16 %v3458_v10, %v3457_v56  ;;  %v10147_v33 = vmax.f32 %v8630_v16, 0.0  ;;  %vm3094_vm6 = vcmp.ne.f32.partialorder %v8618_v5, %v8618_v5  ;;  %vm8962_vm7 = vcmp.lt.f32.partialorder %v3284_v17, 0.0004427343  ;;  %v6259_v44 = vpop.eup %6258 }
 0xa2c   : > { %v8958_v52 = vsel %vm3091_vm1, %v8608_v50, %v3331_v18  ;;  %6266 = vlog2.f32 %v3287_v28  ;;  %v3293_v36 = vand.u32 2147483647, %v8878_v20  ;;  %v3271_v56 = vmul.f32 0.6931472, %v6259_v44 }
 0xa2d   : > { %v3332_v30 = vadd.f32 %v3268_v51, %v10147_v33  ;;  %v3379_v14 = vmax.f32 %v8958_v52, 1e-30  ;;  %v3443_v42 = vmul.f32 %v8958_v52, %v1112_v57  ;;  %5579 = vmatmul.mubr.bf16.gmra.mrb[52].mxu0 %v3486_v4  ;;  %v3291_v17 = vadd.f32 1.0, %v3290_v60  ;;  %v6261_v39 = vpop.eup %6260  ;;  %v1114_v4 = vld [vmem:[%s7724_s15 + $0x50] sm:$0xff] }
 0xa2e   : > { %v3296_v12 = vadd.f32 1.0, %v8892_v59  ;;  %6268 = vlog2.f32 %v3378_v62  ;;  %v3277_v18 = vsel %vm8924_vm4, %v3274_v9, %v3271_v56  ;;  %v3280_v51 = vmul.f32 0.6931472, %v6261_v39 }
 0xa2f   : > { %v8973_v11 = vsel %vm3092_vm2, %v8630_v16, %v3332_v30  ;;  %v3459_v43 = vadd.f32 %v3443_v42, %v8670_v1  ;;  %v3080_v28 = vmax.f32 %v8750_v41, 0.0  ;;  %v10150_v62 = vmax.f32 %v8603_v21, 0.0  ;;  %v1115_v42 = vld [vmem:[%s7724_s15 + $0x58] sm:$0xff] }
 0xa30   : > { %v3380_v10 = vmax.f32 %v8973_v11, 1e-30  ;;  %v3444_v57 = vmul.f32 %v8973_v11, %v1113_v29  ;;  %6270 = vlog2.f32 %v3296_v12  ;;  %vm8987_vm8 = vcmp.lt.f32.partialorder %v3293_v36, 0.0004427343  ;;  %v8992_v6 = vpop.eup %6262 }
 0xa31   : > { %3475 = vst [vmem:[%s8701_s5 + $0x40] sm:$0xff] %v3459_v43  ;;  %v3333_v33 = vadd.f32 %v3277_v18, %v10150_v62  ;;  %v3299_v1 = vmul.f32 -0.5, %v8892_v59  ;;  %6272 = vlog2.f32 %v3379_v14  ;;  %v3286_v9 = vsel %vm8962_vm7, %v3283_v8, %v3280_v51 }
 0xa32   : > { %v3460_v60 = vadd.f32 %v3444_v57, %v8764_v3  ;;  %v3292_v30 = vmul.f32 %v8878_v20, %v3291_v17  ;;  %v3302_v3 = vand.u32 2147483647, %v8892_v59  ;;  %6274 = vlog2.f32 %v3380_v10 }
 0xa33   : > { %v10153_v36 = vmax.f32 %v8618_v5, 0.0  ;;  %v9006_v12 = vsel %vm3093_vm5, %v8603_v21, %v3333_v33  ;;  %vm3355_vm9 = vcmp.lt.f32.partialorder %v8484_v47, -10.0  ;;  %vm3095_vm10 = vcmp.ne.f32.partialorder %v8732_v26, %v8732_v26  ;;  %v9015_v17 = vpop.eup %6264 }
 0xa34   : > { %3476 = vst [vmem:[%s8701_s5 + $0x48] sm:$0xff] %v3460_v60  ;;  %v3487_v44 = vpack.c.bf16 %v3460_v60, %v3459_v43  ;;  %v3381_v8 = vmax.f32 %v9006_v12, 1e-30  ;;  %v3445_v20 = vmul.f32 %v9006_v12, %v1114_v4  ;;  %v3081_v45 = vmax.f32 %v8729_v7, 0.0 }
 0xa35   : > { %v3334_v56 = vadd.f32 %v3286_v9, %v10153_v36  ;;  %v3300_v10 = vadd.f32 1.0, %v3299_v1  ;;  %vm9023_vm11 = vcmp.lt.f32.partialorder %v3302_v3, 0.0004427343  ;;  %v3305_v43 = vadd.f32 1.0, %v8860_v13 }
 0xa36   : > { %5582 = vmatprep.mubr.bf16.mxu0 %v3487_v44  ;;  %6276 = vlog2.f32 %v3381_v8  ;;  %v3461_v60 = vadd.f32 %v3445_v20, %v8663_v63  ;;  %vm3356_vm12 = vcmp.lt.f32.partialorder %v8492_v58, -10.0  ;;  %v6267_v4 = vpop.eup %6266  ;;  %vm3096_vm13 = vcmp.ne.f32.partialorder %v8750_v41, %v8750_v41 }
 0xa37   : > { %v9021_v39 = vsel %vm3094_vm6, %v8618_v5, %v3334_v56  ;;  %6278 = vlog2.f32 %v3305_v43  ;;  %v3308_v62 = vmul.f32 -0.5, %v8860_v13  ;;  %v3311_v33 = vand.u32 2147483647, %v8860_v13 }
 0xa38   : > { %v3382_v18 = vmax.f32 %v9021_v39, 1e-30  ;;  %v3446_v51 = vmul.f32 %v9021_v39, %v1115_v42  ;;  %v3314_v1 = vadd.f32 1.0, %v8883_v35  ;;  %3477 = vst [vmem:[%s8701_s5 + $0x50] sm:$0xff] %v3461_v60  ;;  %v3289_v63 = vmul.f32 0.6931472, %v6267_v4  ;;  %v9040_v44 = vpop.eup %6268 }
 0xa39   : > { %v3317_v3 = vmul.f32 -0.5, %v8883_v35  ;;  %v3301_v42 = vmul.f32 %v8892_v59, %v3300_v10  ;;  %v3309_v36 = vadd.f32 1.0, %v3308_v62  ;;  %v3320_v56 = vand.u32 2147483647, %v8883_v35 }
 0xa3a   : > { %6280 = vlog2.f32 %v3382_v18  ;;  %v3462_v9 = vadd.f32 %v3446_v51, %v8707_v54  ;;  %v6271_v8 = vpop.eup %6270  ;;  %v3295_v43 = vsel %vm8987_vm8, %v3292_v30, %v3289_v63  ;;  %v3388_v54 = vmul.f32 0.6931472, %v8822_v40  ;;  %v1116_v51 = vld [vmem:[%s7724_s15 + $0x60] sm:$0xff] }
 0xa3b   : > { %6282 = vlog2.f32 %v3314_v1  ;;  %v3318_v18 = vadd.f32 1.0, %v3317_v3  ;;  %v3298_v4 = vmul.f32 0.6931472, %v6271_v8  ;;  %v3335_v14 = vadd.f32 %v3295_v43, %v3079_v23  ;;  %v9056_v62 = vpop.eup %6272 }
 0xa3c   : > { %3478 = vst [vmem:[%s8701_s5 + $0x58] sm:$0xff] %v3462_v9  ;;  %v3488_v20 = vpack.c.bf16 %v3462_v9, %v3461_v60  ;;  %v3310_v59 = vmul.f32 %v8860_v13, %v3309_v36  ;;  %vm9052_vm14 = vcmp.lt.f32.partialorder %v3311_v33, 0.0004427343  ;;  %v3419_v40 = vsel %vm3355_vm9, %v8484_v47, %v3388_v54  ;;  %v9065_v60 = vpop.eup %6274 }
 0xa3d   : > { %v3319_v29 = vmul.f32 %v8883_v35, %v3318_v18  ;;  %v4305_v30 = vmul.f32 %v8689_v24, %v8689_v24  ;;  %v3390_v23 = vmul.f32 0.6931472, %v8843_v49  ;;  %v3304_v13 = vsel %vm9023_vm11, %v3301_v42, %v3298_v4  ;;  %v1117_v49 = vld [vmem:[%s7724_s15 + $0x68] sm:$0xff] }
 0xa3e   : > { %5583 = vmatmul.mubr.bf16.gmra.mrb[56].mxu0 %v3488_v20  ;;  %v9073_v33 = vsel %vm3095_vm10, %v8732_v26, %v3335_v14  ;;  %vm9075_vm15 = vcmp.lt.f32.partialorder %v3320_v56, 0.0004427343  ;;  %v9079_v47 = vmul.f32 2.0, %v3419_v40  ;;  %v4306_v24 = vmul.f32 %v8713_v48, %v8713_v48 }
 0xa3f   : > { %v3336_v57 = vadd.f32 %v3304_v13, %v3080_v28  ;;  %v3383_v1 = vmax.f32 %v9073_v33, 1e-30  ;;  %v3447_v9 = vmul.f32 %v9073_v33, %v1116_v51  ;;  %vm3097_vm0 = vcmp.ne.f32.partialorder %v8729_v7, %v8729_v7 }
 0xa40   : > { %v4337_v14 = vadd.f32 %v8526_v25, %v4305_v30  ;;  %v3420_v63 = vsel %vm3356_vm12, %v8492_v58, %v3390_v23  ;;  %v4338_v48 = vadd.f32 %v8549_v46, %v4306_v24  ;;  %v3373_v3 = vmax.f32 %v8651_v19, 1e-30  ;;  %v9098_v42 = vpop.eup %6276 }
 0xa41   : > { %v4307_v28 = vmul.f32 %v8651_v19, %v8651_v19  ;;  %v9104_v36 = vsel %vm3096_vm13, %v8750_v41, %v3336_v57  ;;  %6284 = vlog2.f32 %v3383_v1  ;;  %v3463_v25 = vadd.f32 %v3447_v9, %v8771_v53  ;;  %v6279_v46 = vpop.eup %6278  ;;  %v1118_v57 = vld [vmem:[%s7724_s15 + $0x70] sm:$0xff] }
 0xa42   : > { %vm3098_vm1 = vcmp.ne.f32.partialorder %v8742_v61, %v8742_v61  ;;  %v9109_v58 = vadd.f32 -1.0, %v4337_v14  ;;  %v3384_v56 = vmax.f32 %v9104_v36, 1e-30  ;;  %v3448_v19 = vmul.f32 %v9104_v36, %v1117_v49  ;;  %v10161_v14 = vld [vmem:[#allocation61_spill] sm:$0xff] }
 0xa43   : > { %v9113_v8 = vadd.f32 -1.0, %v4338_v48  ;;  %v9115_v20 = vmul.f32 2.0, %v3420_v63  ;;  %3479 = vst [vmem:[%s8701_s5 + $0x60] sm:$0xff] %v3463_v25  ;;  %v3307_v53 = vmul.f32 0.6931472, %v6279_v46  ;;  %6286 = vlog2.f32 %v3373_v3  ;;  %v1119_v63 = vld [vmem:[%s7724_s15 + $0x78] sm:$0xff] }
 0xa44   : > { %v9117_v43 = vpop.eup %6280  ;;  %v4385_v18 = vsub.f32 %v9109_v58, %v9079_v47  ;;  %v4339_v54 = vadd.f32 %v8515_v15, %v4307_v28  ;;  %6288 = vlog2.f32 %v3384_v56  ;;  %v3464_v4 = vadd.f32 %v3448_v19, %v8774_v55  ;;  %v10164_v19 = vld [vmem:[#allocation46_spill] sm:$0xff]  ;;  %v5897_v58 = vld [vmem:[#allocation28 + $0x30] ss:$8 sps:$4 sm:$0xff]  }
 0xa45   : > { %v6283_v51 = vpop.eup %6282  ;;  %v4386_v40 = vsub.f32 %v9113_v8, %v9115_v20  ;;  %v3374_v30 = vmax.f32 %v8658_v34, 1e-30  ;;  %v3313_v23 = vsel %vm9052_vm14, %v3310_v59, %v3307_v53  ;;  %v4308_v49 = vmul.f32 %v8658_v34, %v8658_v34  ;;  %v10160_v59 = vld [vmem:[#allocation47_spill] sm:$0xff]  ;;  %v10165_v53 = vld [vmem:[#allocation50_spill] sm:$0xff] }
 0xa46   : > { %v3316_v13 = vmul.f32 0.6931472, %v6283_v51  ;;  %v9129_v24 = vadd.f32 -1.0, %v4339_v54  ;;  %3480 = vst [vmem:[%s8701_s5 + $0x68] sm:$0xff] %v3464_v4  ;;  %v3489_v15 = vpack.c.bf16 %v3464_v4, %v3463_v25  ;;  %v3337_v55 = vadd.f32 %v3313_v23, %v3081_v45  ;;  %v10166_v23 = vld [vmem:[#allocation55_spill] sm:$0xff] }
 0xa47   : > { %6290 = vlog2.f32 %v3374_v30  ;;  %vm3359_vm2 = vcmp.lt.f32.partialorder %v8511_v27, -10.0  ;;  %vm3357_vm3 = vcmp.lt.f32.partialorder %v8481_v2, -10.0  ;;  %v4340_v1 = vadd.f32 %v10160_v59, %v4308_v49  ;;  %v5900_v20 = vld [vmem:[#allocation28 + $0x40] ss:$8 sps:$4 sm:$0xff]  }
 0xa48   : > { %v3322_v10 = vsel %vm9075_vm15, %v3319_v29, %v3316_v13  ;;  %v3396_v9 = vmul.f32 0.6931472, %v8931_v22  ;;  %v4309_v34 = vmul.f32 %v10161_v14, %v10161_v14  ;;  %5586 = vmatprep.mubr.bf16.mxu0 %v3489_v15  ;;  %v10162_v48 = vmax.f32 %v8742_v61, 0.0  ;;  %v10163_v29 = vld [vmem:[#allocation48_spill] sm:$0xff] }
 0xa49   : > { %v9152_v35 = vsel %vm3097_vm0, %v8729_v7, %v3337_v55  ;;  %vm3360_vm4 = vcmp.lt.f32.partialorder %v10163_v29, -10.0  ;;  %v3398_v3 = vmul.f32 0.6931472, %v8992_v6  ;;  %v9158_v25 = vadd.f32 -1.0, %v4340_v1 }
 0xa4a   : > { %v3338_v45 = vadd.f32 %v3322_v10, %v10162_v48  ;;  %v3385_v22 = vmax.f32 %v9152_v35, 1e-30  ;;  %v3449_v28 = vmul.f32 %v9152_v35, %v1118_v57  ;;  %v3423_v46 = vsel %vm3359_vm2, %v8511_v27, %v3396_v9  ;;  %v10167_v10 = vld [vmem:[#allocation56_spill] sm:$0xff] }
 0xa4b   : > { %vm3358_vm5 = vcmp.lt.f32.partialorder %v10164_v19, -10.0  ;;  %v4341_v54 = vadd.f32 %v10165_v53, %v4309_v34  ;;  %v9169_v6 = vmul.f32 2.0, %v3423_v46  ;;  %v3424_v51 = vsel %vm3360_vm4, %v10163_v29, %v3398_v3  ;;  %v9172_v4 = vpop.eup %6284  ;;  %v10169_v3 = vld [vmem:[#allocation49_spill] sm:$0xff] }
 0xa4c   : > { %v9165_v56 = vsel %vm3098_vm1, %v8742_v61, %v3338_v45  ;;  %6292 = vlog2.f32 %v3385_v22  ;;  %v3465_v13 = vadd.f32 %v3449_v28, %v10166_v23  ;;  %v4310_v15 = vmul.f32 %v8873_v37, %v8873_v37 }
 0xa4d   : > { %v3386_v30 = vmax.f32 %v9165_v56, 1e-30  ;;  %v3450_v27 = vmul.f32 %v9165_v56, %v1119_v63  ;;  %v9177_v49 = vadd.f32 -1.0, %v4341_v54  ;;  %v9181_v57 = vmul.f32 2.0, %v3424_v51  ;;  %v6287_v55 = vpop.eup %6286  ;;  %v10168_v63 = vld [vmem:[#allocation52_spill] sm:$0xff] }
 0xa4e   : > { %vm3361_vm6 = vcmp.lt.f32.partialorder %v8505_v32, -10.0  ;;  %3481 = vst [vmem:[%s8701_s5 + $0x70] sm:$0xff] %v3465_v13  ;;  %v3400_v1 = vmul.f32 0.6931472, %v9015_v17  ;;  %v4311_v9 = vmul.f32 %v8905_v31, %v8905_v31  ;;  %v9189_v14 = vpop.eup %6288  ;;  %v3392_v34 = vmul.f32 0.6931472, %v6287_v55 }
 0xa4f   : > { %6294 = vlog2.f32 %v3386_v30  ;;  %v3466_v59 = vadd.f32 %v3450_v27, %v10167_v10  ;;  %v4342_v48 = vadd.f32 %v10168_v63, %v4310_v15  ;;  %vm3362_vm7 = vcmp.lt.f32.partialorder %v8530_v0, -10.0 }
 0xa50   : > { %v3425_v29 = vsel %vm3361_vm6, %v8505_v32, %v3400_v1  ;;  %v4343_v22 = vadd.f32 %v10169_v3, %v4311_v9  ;;  %v3402_v17 = vmul.f32 0.6931472, %v9040_v44  ;;  %v3421_v31 = vsel %vm3357_vm3, %v8481_v2, %v3392_v34  ;;  %v10171_v3 = vld [vmem:[#allocation54_spill] sm:$0xff] }
 0xa51   : > { %3482 = vst [vmem:[%s8701_s5 + $0x78] sm:$0xff] %v3466_v59  ;;  %v3490_v45 = vpack.c.bf16 %v3466_v59, %v3465_v13  ;;  %v6291_v28 = vpop.eup %6290  ;;  %v9202_v46 = vadd.f32 -1.0, %v4342_v48  ;;  %v9204_v53 = vmul.f32 2.0, %v3425_v29  ;;  %v4312_v54 = vmul.f32 %v8921_v38, %v8921_v38  ;;  %v10170_v13 = vld [vmem:[#allocation51_spill] sm:$0xff] }
 0xa52   : > { %v9208_v51 = vmul.f32 2.0, %v3421_v31  ;;  %v3394_v32 = vmul.f32 0.6931472, %v6291_v28  ;;  %v9210_v30 = vadd.f32 -1.0, %v4343_v22  ;;  %v3426_v44 = vsel %vm3362_vm7, %v8530_v0, %v3402_v17  ;;  %v10172_v28 = vld [vmem:[#allocation58_spill] sm:$0xff] }
 0xa53   : > { %5587 = vmatmul.mubr.bf16.gmra.mrb[60].mxu0 %v3490_v45  ;;  %v4344_v2 = vadd.f32 %v10170_v13, %v4312_v54  ;;  %v9216_v15 = vmul.f32 2.0, %v3426_v44  ;;  %vm3363_vm8 = vcmp.lt.f32.partialorder %v8608_v50, -10.0  ;;  %v3404_v0 = vmul.f32 0.6931472, %v9056_v62 }
 0xa54   : > { %v3422_v55 = vsel %vm3358_vm5, %v10164_v19, %v3394_v32  ;;  %v4313_v34 = vmul.f32 %v8958_v52, %v8958_v52  ;;  %vm3364_vm9 = vcmp.lt.f32.partialorder %v8630_v16, -10.0  ;;  %v3406_v45 = vmul.f32 0.6931472, %v9065_v60 }
 0xa55   : > { %v9227_v1 = vmul.f32 2.0, %v3422_v55  ;;  %v9229_v9 = vadd.f32 -1.0, %v4344_v2  ;;  %v3427_v48 = vsel %vm3363_vm8, %v8608_v50, %v3404_v0  ;;  %v4314_v19 = vmul.f32 %v8973_v11, %v8973_v11 }
 0xa56   : > { %v6293_v63 = vpop.eup %6292  ;;  %vm3365_vm10 = vcmp.lt.f32.partialorder %v8603_v21, -10.0  ;;  %v4345_v52 = vadd.f32 %v10171_v3, %v4313_v34  ;;  %v9244_v22 = vmul.f32 2.0, %v3427_v48  ;;  %v3428_v50 = vsel %vm3364_vm9, %v8630_v16, %v3406_v45  ;;  %v10173_v16 = vld [vmem:[#allocation53_spill] sm:$0xff] }
 0xa57   : > { %v4346_v60 = vadd.f32 %v10172_v28, %v4314_v19  ;;  %v3408_v31 = vmul.f32 0.6931472, %v9098_v42  ;;  %v4315_v11 = vmul.f32 %v9006_v12, %v9006_v12  ;;  %v9253_v32 = vmul.f32 2.0, %v3428_v50 }
 0xa58   : > { %v9251_v54 = vadd.f32 -1.0, %v4345_v52  ;;  %vm3366_vm11 = vcmp.lt.f32.partialorder %v8618_v5, -10.0  ;;  %v3410_v44 = vmul.f32 0.6931472, %v9117_v43  ;;  %v4316_v42 = vmul.f32 %v9021_v39, %v9021_v39 }
 0xa59   : > { %v6295_v17 = vpop.eup %6294  ;;  %v9257_v13 = vadd.f32 -1.0, %v4346_v60  ;;  %v3429_v2 = vsel %vm3365_vm10, %v8603_v21, %v3408_v31  ;;  %v4347_v55 = vadd.f32 %v10173_v16, %v4315_v11  ;;  %vm3367_vm12 = vcmp.lt.f32.partialorder %v8732_v26, -10.0  ;;  %v10174_v21 = vld [vmem:[#allocation57_spill] sm:$0xff] }
 0xa5a   : > { %v9265_v0 = vmul.f32 2.0, %v3429_v2  ;;  %v3430_v34 = vsel %vm3366_vm11, %v8618_v5, %v3410_v44  ;;  %v4348_v45 = vadd.f32 %v10174_v21, %v4316_v42  ;;  %v3412_v39 = vmul.f32 0.6931472, %v9172_v4  ;;  %v10175_v4 = vld [vmem:[#allocation59_spill] sm:$0xff]  ;;  %v10176_v2 = vld [vmem:[#allocation60_spill] sm:$0xff] }
 0xa5b   : > { %v9271_v48 = vadd.f32 -1.0, %v4347_v55  ;;  %v9274_v19 = vmul.f32 2.0, %v3430_v34  ;;  %v4317_v3 = vmul.f32 %v9073_v33, %v9073_v33  ;;  %vm3368_vm13 = vcmp.lt.f32.partialorder %v8750_v41, -10.0 }
 0xa5c   : > { %v3414_v5 = vmul.f32 0.6931472, %v9189_v14  ;;  %v9283_v50 = vadd.f32 -1.0, %v4348_v45  ;;  %v4318_v28 = vmul.f32 %v9104_v36, %v9104_v36  ;;  %vm3369_vm14 = vcmp.lt.f32.partialorder %v8729_v7, -10.0 }
 0xa5d   : > { %v3431_v60 = vsel %vm3367_vm12, %v8732_v26, %v3412_v39  ;;  %v4349_v31 = vadd.f32 %v10175_v4, %v4317_v3  ;;  %v3416_v11 = vmul.f32 0.6931472, %v6293_v63  ;;  %v4335_v36 = vmul.f32 %v10166_v23, %v10166_v23 }
 0xa5e   : > { %v3432_v33 = vsel %vm3368_vm13, %v8750_v41, %v3414_v5  ;;  %v9293_v44 = vmul.f32 2.0, %v3431_v60  ;;  %v4350_v16 = vadd.f32 %v10176_v2, %v4318_v28  ;;  %v4319_v41 = vmul.f32 %v9152_v35, %v9152_v35 }
 0xa5f   : > { %v9296_v55 = vmul.f32 2.0, %v3432_v33  ;;  %v9300_v42 = vadd.f32 -1.0, %v4349_v31  ;;  %v3433_v26 = vsel %vm3369_vm14, %v8729_v7, %v3416_v11  ;;  %v4336_v63 = vmul.f32 %v10167_v10, %v10167_v10 }
 0xa60   : > { %v9307_v34 = vadd.f32 -1.0, %v4350_v16  ;;  %v3418_v21 = vmul.f32 0.6931472, %v6295_v17  ;;  %v4320_v45 = vmul.f32 %v9165_v56, %v9165_v56  ;;  %v4351_v23 = vadd.f32 %v4335_v36, %v4319_v41 }
 0xa61   : > { %v9313_v3 = vmul.f32 2.0, %v3433_v26  ;;  %vm3370_vm15 = vcmp.lt.f32.partialorder %v8742_v61, -10.0  ;;  %v10179_v47 = vsub.f32 %v9158_v25, %v9227_v1  ;;  %v10180_v8 = vsub.f32 %v9177_v49, %v9169_v6  ;;  %v5903_v25 = vld [vmem:[#allocation28 + $0x50] ss:$8 sps:$4 sm:$0xff]   ;;  %v5906_v49 = vld [vmem:[#allocation28 + $0x60] ss:$8 sps:$4 sm:$0xff]  }
 0xa62   : > { %v3434_v35 = vsel %vm3370_vm15, %v8742_v61, %v3418_v21  ;;  %v4352_v10 = vadd.f32 %v4336_v63, %v4320_v45  ;;  %v9319_v5 = vadd.f32 -1.0, %v4351_v23  ;;  %v5197_v61 = vld [vmem:[%s10177_s24] ss:$0 sm:$0xff]  ;;  %v10182_v6 = vsub.f32 %v9210_v30, %v9204_v53  ;;  %s10195_s24 = sld [smem:[#allocation85_spill]] }
 0xa63   : > { %v9321_v17 = vmul.f32 2.0, %v3434_v35  ;;  %v5908_v1 = vld [vmem:[#allocation28 + $0x64] ss:$8 sps:$4 sm:$0xff]   ;;  %v10184_v53 = vsub.f32 %v9251_v54, %v9244_v22  ;;  %v7091_v30 = vmov 0   ;;  %vm4465_vm6 = vcmask 7168  }
 0xa64   : > { %v9323_v28 = vadd.f32 -1.0, %v4352_v10  ;;  %4161 = vmatprep.mubr.bf16.mxu1 %v7091_v30  ;;  %4141 = vmatprep.mubr.bf16.mxu0 %v7091_v30 }
 0xae1   : > { %v5576_v4 = vpop.f32.mrb[48].mxu0 }
 0xae2   : > { %v3596_v31 = vpop.f32.mrb[49].mxu0  ;;  %v3605_v10 = vadd.f32 %v5576_v4, %v5197_v61 }
 0xae3   : > { %v5577_v33 = vpop.f32.mrb[50].mxu0  ;;  %v3597_v21 = vadd.f32 %v5197_v61, %v3596_v31 }
 0xae4   : > { %v3599_v11 = vpop.f32.mrb[51].mxu0  ;;  %v3608_v7 = vadd.f32 %v5577_v33, %v5197_v61 }
 0xae5   : > { %v3600_v45 = vadd.f32 %v5197_v61, %v3599_v11 }
 0xb00   : > { %v5580_v2 = vpop.f32.mrb[52].mxu0 }
 0xb01   : > { %v3612_v16 = vpop.f32.mrb[53].mxu0  ;;  %v3621_v23 = vadd.f32 %v5580_v2, %v5197_v61 }
 0xb02   : > { %v3613_v36 = vadd.f32 %v5197_v61, %v3612_v16  ;;  %v5581_v26 = vpop.f32.mrb[54].mxu0 }
 0xb03   : > { %v3615_v41 = vpop.f32.mrb[55].mxu0  ;;  %v3624_v35 = vadd.f32 %v5581_v26, %v5197_v61 }
 0xb04   : > { %v3616_v63 = vadd.f32 %v5197_v61, %v3615_v41  ;;  %3669 = vadd.xlane.f32.xlu0 %v3613_v36 }
 0xb06   : > { %3671 = vadd.xlane.f32.xlu1 %v3616_v63 }
 0xb08   : > { %3661 = vadd.xlane.f32.xlu0 %v3597_v21 }
 0xb0a   : > { %3663 = vadd.xlane.f32.xlu1 %v3600_v45 }
 0xb0c   : > { %3673 = vadd.xlane.f32.xlu0 %v3621_v23 }
 0xb0e   : > { %3675 = vadd.xlane.f32.xlu1 %v3624_v35 }
 0xb10   : > { %3665 = vadd.xlane.f32.xlu0 %v3605_v10 }
 0xb11   : > { %v5584_v60 = vpop.f32.mrb[56].mxu0 }
 0xb12   : > { %v3628_v56 = vpop.f32.mrb[57].mxu0  ;;  %3667 = vadd.xlane.f32.xlu1 %v3608_v7  ;;  %v9337_v31 = vadd.f32 %v5584_v60, %v5197_v61 }
 0xb13   : > { %v9332_v39 = vadd.f32 %v5197_v61, %v3628_v56  ;;  %v5585_v16 = vpop.f32.mrb[58].mxu0 }
 0xb14   : > { %v3631_v14 = vpop.f32.mrb[59].mxu0  ;;  %v9340_v11 = vadd.f32 %v5585_v16, %v5197_v61 }
 0xb15   : > { %v9334_v41 = vadd.f32 %v5197_v61, %v3631_v14  ;;  %3677 = vadd.xlane.f32.xlu0 %v9332_v39 }
 0xb17   : > { %3679 = vadd.xlane.f32.xlu1 %v9334_v41 }
 0xb19   : > { %3681 = vadd.xlane.f32.xlu0 %v9337_v31 }
 0xb1b   : > { %3683 = vadd.xlane.f32.xlu1 %v9340_v11 }
 0xb26   : > { %v5588_v4 = vpop.f32.mrb[60].mxu0 }
 0xb27   : > { %v3644_v56 = vpop.f32.mrb[61].mxu0  ;;  %v9349_v60 = vadd.f32 %v5588_v4, %v5197_v61 }
 0xb28   : > { %v9344_v33 = vadd.f32 %v5197_v61, %v3644_v56  ;;  %v5589_v2 = vpop.f32.mrb[62].mxu0 }
 0xb29   : > { %v3647_v26 = vpop.f32.mrb[63].mxu0  ;;  %v9352_v16 = vadd.f32 %v5589_v2, %v5197_v61 }
 0xb2a   : > { %v9346_v14 = vadd.f32 %v5197_v61, %v3647_v26  ;;  %3685 = vadd.xlane.f32.xlu0 %v9344_v33 }
 0xb2c   : > { %3687 = vadd.xlane.f32.xlu1 %v9346_v14 }
 0xb2e   : > { %3689 = vadd.xlane.f32.xlu0 %v9349_v60 }
 0xb30   : > { %3691 = vadd.xlane.f32.xlu1 %v9352_v16 }
 0xb91   : > { %v3670_v52 = vpop.xlane.xlu0 %3669 }
 0xb92   : > { %v3697_v43 = vmul.f32 0.0078125, %v3670_v52 }
 0xb93   : > { %v3672_v56 = vpop.xlane.xlu1 %3671 }
 0xb94   : > { %v9356_v12 = vsub.f32 %v3613_v36, %v3697_v43  ;;  %v3698_v29 = vmul.f32 0.0078125, %v3672_v56 }
 0xb95   : > { %v3662_v26 = vpop.xlane.xlu0 %3661 }
 0xb96   : > { %v9358_v59 = vsub.f32 %v3616_v63, %v3698_v29  ;;  %v3693_v27 = vmul.f32 0.0078125, %v3662_v26  ;;  %v3729_v4 = vmul.f32 %v9356_v12, %v9356_v12 }
 0xb97   : > { %v3664_v37 = vpop.xlane.xlu1 %3663 }
 0xb98   : > { %v9362_v61 = vsub.f32 %v3597_v21, %v3693_v27  ;;  %v3694_v2 = vmul.f32 0.0078125, %v3664_v37  ;;  %3749 = vadd.xlane.f32.xlu0 %v3729_v4  ;;  %v3730_v62 = vmul.f32 %v9358_v59, %v9358_v59 }
 0xb99   : > { %v3674_v52 = vpop.xlane.xlu0 %3673 }
 0xb9a   : > { %v9366_v38 = vsub.f32 %v3600_v45, %v3694_v2  ;;  %v3699_v43 = vmul.f32 0.0078125, %v3674_v52  ;;  %3751 = vadd.xlane.f32.xlu1 %v3730_v62  ;;  %v3725_v29 = vmul.f32 %v9362_v61, %v9362_v61 }
 0xb9b   : > { %v3676_v36 = vpop.xlane.xlu1 %3675 }
 0xb9c   : > { %v9370_v63 = vsub.f32 %v3621_v23, %v3699_v43  ;;  %v3700_v56 = vmul.f32 0.0078125, %v3676_v36  ;;  %3741 = vadd.xlane.f32.xlu0 %v3725_v29  ;;  %v3726_v37 = vmul.f32 %v9366_v38, %v9366_v38 }
 0xb9d   : > { %v3666_v27 = vpop.xlane.xlu0 %3665 }
 0xb9e   : > { %v9374_v21 = vsub.f32 %v3624_v35, %v3700_v56  ;;  %v3695_v26 = vmul.f32 0.0078125, %v3666_v27  ;;  %3743 = vadd.xlane.f32.xlu1 %v3726_v37  ;;  %v3731_v45 = vmul.f32 %v9370_v63, %v9370_v63 }
 0xb9f   : > { %v3668_v62 = vpop.xlane.xlu1 %3667 }
 0xba0   : > { %v9378_v4 = vsub.f32 %v3605_v10, %v3695_v26  ;;  %v3696_v2 = vmul.f32 0.0078125, %v3668_v62  ;;  %3753 = vadd.xlane.f32.xlu0 %v3731_v45  ;;  %v3732_v23 = vmul.f32 %v9374_v21, %v9374_v21 }
 0xba2   : > { %v3678_v52 = vpop.xlane.xlu0 %3677  ;;  %v9382_v43 = vsub.f32 %v3608_v7, %v3696_v2  ;;  %3755 = vadd.xlane.f32.xlu1 %v3732_v23  ;;  %v3727_v35 = vmul.f32 %v9378_v4, %v9378_v4 }
 0xba3   : > { %v3701_v29 = vmul.f32 0.0078125, %v3678_v52 }
 0xba4   : > { %v3680_v36 = vpop.xlane.xlu1 %3679  ;;  %3745 = vadd.xlane.f32.xlu0 %v3727_v35  ;;  %v3728_v10 = vmul.f32 %v9382_v43, %v9382_v43 }
 0xba5   : > { %v9387_v56 = vsub.f32 %v9332_v39, %v3701_v29  ;;  %v3702_v37 = vmul.f32 0.0078125, %v3680_v36 }
 0xba6   : > { %v3682_v27 = vpop.xlane.xlu0 %3681  ;;  %3747 = vadd.xlane.f32.xlu1 %v3728_v10 }
 0xba7   : > { %v9392_v26 = vsub.f32 %v9334_v41, %v3702_v37  ;;  %v3703_v7 = vmul.f32 0.0078125, %v3682_v27  ;;  %v3733_v45 = vmul.f32 %v9387_v56, %v9387_v56 }
 0xba8   : > { %v3684_v62 = vpop.xlane.xlu1 %3683 }
 0xba9   : > { %v9397_v2 = vsub.f32 %v9337_v31, %v3703_v7  ;;  %v3704_v39 = vmul.f32 0.0078125, %v3684_v62  ;;  %3757 = vadd.xlane.f32.xlu0 %v3733_v45  ;;  %v3734_v23 = vmul.f32 %v9392_v26, %v9392_v26 }
 0xbab   : > { %v9402_v52 = vsub.f32 %v9340_v11, %v3704_v39  ;;  %3759 = vadd.xlane.f32.xlu1 %v3734_v23  ;;  %v3735_v41 = vmul.f32 %v9397_v2, %v9397_v2 }
 0xbad   : > { %3761 = vadd.xlane.f32.xlu0 %v3735_v41  ;;  %v3736_v29 = vmul.f32 %v9402_v52, %v9402_v52 }
 0xbaf   : > { %3763 = vadd.xlane.f32.xlu1 %v3736_v29 }
 0xbb7   : > { %v3686_v35 = vpop.xlane.xlu0 %3685 }
 0xbb8   : > { %v3705_v31 = vmul.f32 0.0078125, %v3686_v35  ;;  %v5888_v35 = vld [vmem:[#allocation28] ss:$8 sps:$4 sm:$0xff]  }
 0xbb9   : > { %v3688_v36 = vpop.xlane.xlu1 %3687 }
 0xbba   : > { %v9409_v37 = vsub.f32 %v9344_v33, %v3705_v31  ;;  %v3706_v10 = vmul.f32 0.0078125, %v3688_v36  ;;  %v5890_v31 = vld [vmem:[#allocation28 + $0x4] ss:$8 sps:$4 sm:$0xff]   ;;  %v5891_v36 = vld [vmem:[#allocation28 + $0x10] ss:$8 sps:$4 sm:$0xff]  }
 0xbbb   : > { %v3690_v27 = vpop.xlane.xlu0 %3689  ;;  %5590 = vmatprep.subr.bf16.mxu1 %v5890_v31  ;;  %4109 = vmatprep.subr.bf16.mxu0 %v5890_v31 }
 0xbbc   : > { %v9412_v11 = vsub.f32 %v9346_v14, %v3706_v10  ;;  %v3707_v7 = vmul.f32 0.0078125, %v3690_v27  ;;  %v3737_v45 = vmul.f32 %v9409_v37, %v9409_v37  ;;  %5598 = vmatpush1.bf16.msra.mxu1 %v5888_v35  ;;  %4110 = vmatpush1.bf16.msra.mxu0 %v5888_v35  ;;  %v5894_v10 = vld [vmem:[#allocation28 + $0x20] ss:$8 sps:$4 sm:$0xff]   ;;  %v10178_v27 = vsub.f32 %v9129_v24, %v9208_v51  ;;  %v5905_v51 = vld [vmem:[#allocation28 + $0x54] ss:$8 sps:$4 sm:$0xff]  }
 0xbbd   : > { %v3692_v62 = vpop.xlane.xlu1 %3691  ;;  %v10181_v24 = vsub.f32 %v9202_v46, %v9181_v57  ;;  %v10183_v57 = vsub.f32 %v9229_v9, %v9216_v15  ;;  %v5909_v46 = vld [vmem:[#allocation28 + $0x70] ss:$8 sps:$4 sm:$0xff]  }
 0xbbe   : > { %v9417_v39 = vsub.f32 %v9349_v60, %v3707_v7  ;;  %v3708_v23 = vmul.f32 0.0078125, %v3692_v62  ;;  %3765 = vadd.xlane.f32.xlu0 %v3737_v45  ;;  %v3738_v41 = vmul.f32 %v9412_v11, %v9412_v11  ;;  %v5893_v60 = vld [vmem:[#allocation28 + $0x14] ss:$8 sps:$4 sm:$0xff]  }
 0xbbf   : > { %5591 = vmatprep.subr.bf16.mxu1 %v5893_v60  ;;  %4111 = vmatprep.subr.bf16.mxu0 %v5893_v60  ;;  %v5911_v7 = vld [vmem:[#allocation28 + $0x74] ss:$8 sps:$4 sm:$0xff]  }
 0xbc0   : > { %v9422_v33 = vsub.f32 %v9352_v16, %v3708_v23  ;;  %3767 = vadd.xlane.f32.xlu1 %v3738_v41  ;;  %v3739_v14 = vmul.f32 %v9417_v39, %v9417_v39  ;;  %v5896_v16 = vld [vmem:[#allocation28 + $0x24] ss:$8 sps:$4 sm:$0xff]   ;;  %5599 = vmatpush1.bf16.msra.mxu1 %v5891_v36 }
 0xbc1   : > { %4112 = vmatpush1.bf16.msra.mxu0 %v5891_v36  ;;  %5592 = vmatprep.subr.bf16.mxu1 %v5896_v16 }
 0xbc2   : > { %3769 = vadd.xlane.f32.xlu0 %v3739_v14  ;;  %v3740_v29 = vmul.f32 %v9422_v33, %v9422_v33  ;;  %4113 = vmatprep.subr.bf16.mxu0 %v5896_v16 }
 0xbc4   : > { %3771 = vadd.xlane.f32.xlu1 %v3740_v29  ;;  %5600 = vmatpush1.bf16.msra.mxu1 %v5894_v10 }
 0xbc5   : > { %4114 = vmatpush1.bf16.msra.mxu0 %v5894_v10 }
 0xbc6   : > { %4401 = vadd.xlane.f32.xlu0 %v4385_v18  ;;  %v5899_v18 = vld [vmem:[#allocation28 + $0x34] ss:$8 sps:$4 sm:$0xff]  }
 0xbc7   : > { %5593 = vmatprep.subr.bf16.mxu1 %v5899_v18  ;;  %4115 = vmatprep.subr.bf16.mxu0 %v5899_v18 }
 0xbc8   : > { %4403 = vadd.xlane.f32.xlu1 %v4386_v40  ;;  %5601 = vmatpush1.bf16.msra.mxu1 %v5897_v58  ;;  %v5902_v40 = vld [vmem:[#allocation28 + $0x44] ss:$8 sps:$4 sm:$0xff]  }
 0xbc9   : > { %4116 = vmatpush1.bf16.msra.mxu0 %v5897_v58  ;;  %5594 = vmatprep.subr.bf16.mxu1 %v5902_v40 }
 0xbca   : > { %4405 = vadd.xlane.f32.xlu0 %v10178_v27  ;;  %4117 = vmatprep.subr.bf16.mxu0 %v5902_v40  ;;  %v9460_v40 = vld [vmem:[%s10185_s6] ss:$0 sm:$0xff]  ;;  %s4696_s6 = scalar_lea.sflag [#allocation4], %s7708_s19 }
 0xbcc   : > { %5602 = vmatpush1.bf16.msra.mxu1 %v5900_v20 }
 0xbcd   : > { %4118 = vmatpush1.bf16.msra.mxu0 %v5900_v20  ;;  %5595 = vmatprep.subr.bf16.mxu1 %v5905_v51 }
 0xbce   : > { %4407 = vadd.xlane.f32.xlu0 %v10179_v47  ;;  %4119 = vmatprep.subr.bf16.mxu0 %v5905_v51 }
 0xbd0   : > { %5603 = vmatpush1.bf16.msra.mxu1 %v5903_v25 }
 0xbd1   : > { %4120 = vmatpush1.bf16.msra.mxu0 %v5903_v25  ;;  %5596 = vmatprep.subr.bf16.mxu1 %v5908_v1 }
 0xbd2   : > { %4409 = vadd.xlane.f32.xlu0 %v10180_v8  ;;  %4121 = vmatprep.subr.bf16.mxu0 %v5908_v1 }
 0xbd4   : > { %5604 = vmatpush1.bf16.msra.mxu1 %v5906_v49 }
 0xbd5   : > { %4122 = vmatpush1.bf16.msra.mxu0 %v5906_v49  ;;  %5597 = vmatprep.subr.bf16.mxu1 %v5911_v7 }
 0xbd6   : > { %4411 = vadd.xlane.f32.xlu0 %v10181_v24  ;;  %4123 = vmatprep.subr.bf16.mxu0 %v5911_v7 }
 0xbd8   : > { %5605 = vmatpush1.bf16.msra.mxu1 %v5909_v46 }
 0xbd9   : > { %4124 = vmatpush1.bf16.msra.mxu0 %v5909_v46  ;;  %v9466_v46 = vld [vmem:[%s10186_s8] ss:$0 sm:$0xff]  ;;  %s6908_s8 = sshll.u32 %s7093_s9, 4  ;;  %s6909_s8 = int_to_ptr.vmem [resolvable:$false] %s6908_s8 }
 0xbda   : > { %4413 = vadd.xlane.f32.xlu0 %v10182_v6  ;;  %s6910_s13 = scalar_lea.vmem %s6909_s8, 4096  ;;  %p6911_p7 = scmp.lt.s32.totalorder %s9852_s10, %s6909_s8 }
 0xbdb   : > { %p6912_p2 = scmp.lt.s32.totalorder %s6910_s13, %s6904_s1 }
 0xbdd   : > { %p6913_p6 = por %p6912_p2, %p6911_p7 }
 0xbde   : > { %4415 = vadd.xlane.f32.xlu0 %v10183_v57 }
 0xbdf   : > { %p6914_p10 = pnand %p6913_p6, %p6907_p3 }
 0xbe2   : > { %4417 = vadd.xlane.f32.xlu0 %v10184_v53 }
 0xc25   : > { %v3750_v15 = vpop.xlane.xlu0 %3749 }
 0xc26   : > { %v3777_v9 = vmul.f32 0.0078125, %v3750_v15 }
 0xc27   : > { %v3752_v45 = vpop.xlane.xlu1 %3751 }
 0xc28   : > { %v3793_v62 = vadd.f32 1e-05, %v3777_v9  ;;  %v3778_v23 = vmul.f32 0.0078125, %v3752_v45 }
 0xc29   : > { %v3742_v41 = vpop.xlane.xlu0 %3741 }
 0xc2a   : > { %6296 = vrsqrt.f32 %v3793_v62  ;;  %v3794_v14 = vadd.f32 1e-05, %v3778_v23  ;;  %v3773_v29 = vmul.f32 0.0078125, %v3742_v41 }
 0xc2b   : > { %v3744_v22 = vpop.xlane.xlu1 %3743 }
 0xc2c   : > { %6298 = vrsqrt.f32 %v3794_v14  ;;  %v3789_v54 = vadd.f32 1e-05, %v3773_v29  ;;  %v3774_v35 = vmul.f32 0.0078125, %v3744_v22 }
 0xc2d   : > { %v3754_v31 = vpop.xlane.xlu0 %3753 }
 0xc2e   : > { %6300 = vrsqrt.f32 %v3789_v54  ;;  %v3790_v60 = vadd.f32 1e-05, %v3774_v35  ;;  %v3779_v36 = vmul.f32 0.0078125, %v3754_v31 }
 0xc2f   : > { %v3756_v16 = vpop.xlane.xlu1 %3755 }
 0xc30   : > { %6302 = vrsqrt.f32 %v3790_v60  ;;  %v3795_v10 = vadd.f32 1e-05, %v3779_v36  ;;  %v3780_v27 = vmul.f32 0.0078125, %v3756_v16 }
 0xc31   : > { %v3746_v47 = vpop.xlane.xlu0 %3745 }
 0xc32   : > { %6304 = vrsqrt.f32 %v3795_v10  ;;  %v3796_v58 = vadd.f32 1e-05, %v3780_v27  ;;  %v3775_v18 = vmul.f32 0.0078125, %v3746_v47 }
 0xc33   : > { %v3748_v8 = vpop.xlane.xlu1 %3747 }
 0xc34   : > { %v6297_v20 = vpop.eup %6296  ;;  %6306 = vrsqrt.f32 %v3796_v58  ;;  %v3791_v24 = vadd.f32 1e-05, %v3775_v18  ;;  %v3776_v25 = vmul.f32 0.0078125, %v3748_v8 }
 0xc35   : > { %v3825_v51 = vmul.f32 %v6297_v20, %v9356_v12 }
 0xc36   : > { %v3758_v6 = vpop.xlane.xlu0 %3757  ;;  %v6299_v49 = vpop.eup %6298  ;;  %6308 = vrsqrt.f32 %v3791_v24  ;;  %v3792_v1 = vadd.f32 1e-05, %v3776_v25 }
 0xc37   : > { %v3781_v57 = vmul.f32 0.0078125, %v3758_v6  ;;  %v3847_v7 = vmul.f32 %v9460_v40, %v3825_v51  ;;  %v3826_v53 = vmul.f32 %v6299_v49, %v9358_v59 }
 0xc38   : > { %v3760_v15 = vpop.xlane.xlu1 %3759  ;;  %v6301_v9 = vpop.eup %6300  ;;  %6310 = vrsqrt.f32 %v3792_v1 }
 0xc39   : > { %v3797_v45 = vadd.f32 1e-05, %v3781_v57  ;;  %v3782_v62 = vmul.f32 0.0078125, %v3760_v15  ;;  %v3848_v12 = vmul.f32 %v9460_v40, %v3826_v53  ;;  %v3821_v23 = vmul.f32 %v6301_v9, %v9362_v61 }
 0xc3a   : > { %v3762_v41 = vpop.xlane.xlu0 %3761  ;;  %v9473_v14 = vadd.f32 %v9466_v46, %v3847_v7  ;;  %v6303_v29 = vpop.eup %6302 }
 0xc3b   : > { %6312 = vrsqrt.f32 %v3797_v45  ;;  %v3798_v22 = vadd.f32 1e-05, %v3782_v62  ;;  %v3783_v54 = vmul.f32 0.0078125, %v3762_v41  ;;  %v3843_v35 = vmul.f32 %v9460_v40, %v3821_v23 }
 0xc3c   : > { %v3822_v59 = vmul.f32 %v6303_v29, %v9366_v38  ;;  %v3764_v31 = vpop.xlane.xlu1 %3763  ;;  %v9478_v60 = vadd.f32 %v9466_v46, %v3848_v12  ;;  %v5212_v36 = vmul.f32 -1.442695, %v9473_v14  ;;  %v6305_v16 = vpop.eup %6304 }
 0xc3d   : > { %6314 = vrsqrt.f32 %v3798_v22  ;;  %v3799_v61 = vadd.f32 1e-05, %v3783_v54  ;;  %v3784_v10 = vmul.f32 0.0078125, %v3764_v31  ;;  %v9484_v58 = vadd.f32 %v9466_v46, %v3843_v35 }
 0xc3e   : > { %v3844_v27 = vmul.f32 %v9460_v40, %v3822_v59  ;;  %6316 = vpow2.f32 %v5212_v36  ;;  %v5213_v47 = vmul.f32 -1.442695, %v9478_v60  ;;  %v6307_v18 = vpop.eup %6306  ;;  %v3827_v8 = vmul.f32 %v6305_v16, %v9370_v63 }
 0xc3f   : > { %6318 = vrsqrt.f32 %v3799_v61  ;;  %v3800_v38 = vadd.f32 1e-05, %v3784_v10  ;;  %v5208_v24 = vmul.f32 -1.442695, %v9484_v58  ;;  %v3828_v25 = vmul.f32 %v6307_v18, %v9374_v21 }
 0xc40   : > { %6320 = vpow2.f32 %v5213_v47  ;;  %v9488_v20 = vadd.f32 %v9466_v46, %v3844_v27  ;;  %v6309_v51 = vpop.eup %6308  ;;  %v3849_v6 = vmul.f32 %v9460_v40, %v3827_v8 }
 0xc41   : > { %6322 = vrsqrt.f32 %v3800_v38  ;;  %v3850_v1 = vmul.f32 %v9460_v40, %v3828_v25  ;;  %v3823_v57 = vmul.f32 %v6309_v51, %v9378_v4 }
 0xc42   : > { %6324 = vpow2.f32 %v5208_v24  ;;  %v5209_v49 = vmul.f32 -1.442695, %v9488_v20  ;;  %v6311_v63 = vpop.eup %6310  ;;  %v9497_v7 = vadd.f32 %v9466_v46, %v3849_v6 }
 0xc43   : > { %v9500_v53 = vadd.f32 %v9466_v46, %v3850_v1  ;;  %v3824_v21 = vmul.f32 %v6311_v63, %v9382_v43  ;;  %v3845_v15 = vmul.f32 %v9460_v40, %v3823_v57 }
 0xc44   : > { %6326 = vpow2.f32 %v5209_v49  ;;  %v5214_v45 = vmul.f32 -1.442695, %v9497_v7 }
 0xc45   : > { %v6313_v9 = vpop.eup %6312  ;;  %v5215_v62 = vmul.f32 -1.442695, %v9500_v53  ;;  %v3846_v12 = vmul.f32 %v9460_v40, %v3824_v21  ;;  %v9508_v4 = vadd.f32 %v9466_v46, %v3845_v15 }
 0xc46   : > { %v3829_v23 = vmul.f32 %v6313_v9, %v9387_v56  ;;  %6328 = vpow2.f32 %v5214_v45 }
 0xc47   : > { %v6315_v41 = vpop.eup %6314  ;;  %6330 = vpow2.f32 %v5215_v62  ;;  %v9512_v43 = vadd.f32 %v9466_v46, %v3846_v12  ;;  %v5210_v54 = vmul.f32 -1.442695, %v9508_v4 }
 0xc48   : > { %v6317_v29 = vpop.eup %6316  ;;  %v3830_v35 = vmul.f32 %v6315_v41, %v9392_v26  ;;  %v3851_v16 = vmul.f32 %v9460_v40, %v3829_v23 }
 0xc49   : > { %v6319_v59 = vpop.eup %6318  ;;  %v3933_v36 = vadd.f32 1.0, %v6317_v29  ;;  %6332 = vpow2.f32 %v5210_v54  ;;  %v5211_v56 = vmul.f32 -1.442695, %v9512_v43 }
 0xc4a   : > { %v6321_v61 = vpop.eup %6320  ;;  %v3852_v27 = vmul.f32 %v9460_v40, %v3830_v35  ;;  %v3831_v47 = vmul.f32 %v6319_v59, %v9397_v2  ;;  %v9522_v21 = vadd.f32 %v9466_v46, %v3851_v16 }
 0xc4b   : > { %v3766_v22 = vpop.xlane.xlu0 %3765  ;;  %v6323_v18 = vpop.eup %6322  ;;  %v3934_v24 = vadd.f32 1.0, %v6321_v61  ;;  %6334 = vrcp.f32 %v3933_v36 }
 0xc4c   : > { %v3785_v31 = vmul.f32 0.0078125, %v3766_v22  ;;  %v6325_v26 = vpop.eup %6324  ;;  %6336 = vpow2.f32 %v5211_v56  ;;  %v3832_v51 = vmul.f32 %v6323_v18, %v9402_v52  ;;  %v9525_v2 = vadd.f32 %v9466_v46, %v3852_v27 }
 0xc4d   : > { %v3768_v10 = vpop.xlane.xlu1 %3767  ;;  %v3929_v1 = vadd.f32 1.0, %v6325_v26  ;;  %v3853_v15 = vmul.f32 %v9460_v40, %v3831_v47  ;;  %v5216_v22 = vmul.f32 -1.442695, %v9522_v21 }
 0xc4e   : > { %v3801_v38 = vadd.f32 1e-05, %v3785_v31  ;;  %v3786_v8 = vmul.f32 0.0078125, %v3768_v10  ;;  %v6327_v57 = vpop.eup %6326  ;;  %v3854_v52 = vmul.f32 %v9460_v40, %v3832_v51  ;;  %v5217_v59 = vmul.f32 -1.442695, %v9525_v2 }
 0xc4f   : > { %v3770_v25 = vpop.xlane.xlu0 %3769  ;;  %v3930_v62 = vadd.f32 1.0, %v6327_v57  ;;  %v9531_v54 = vadd.f32 %v9466_v46, %v3853_v15 }
 0xc50   : > { %6338 = vrsqrt.f32 %v3801_v38  ;;  %v3802_v6 = vadd.f32 1e-05, %v3786_v8  ;;  %v3787_v49 = vmul.f32 0.0078125, %v3770_v25  ;;  %v6329_v12 = vpop.eup %6328  ;;  %v9535_v31 = vadd.f32 %v9466_v46, %v3854_v52 }
 0xc51   : > { %v3772_v63 = vpop.xlane.xlu1 %3771  ;;  %6340 = vrcp.f32 %v3934_v24  ;;  %v6331_v41 = vpop.eup %6330  ;;  %v3935_v29 = vadd.f32 1.0, %v6329_v12  ;;  %v5218_v56 = vmul.f32 -1.442695, %v9531_v54 }
 0xc52   : > { %6342 = vrsqrt.f32 %v3802_v6  ;;  %v3803_v9 = vadd.f32 1e-05, %v3787_v49  ;;  %v3788_v45 = vmul.f32 0.0078125, %v3772_v63  ;;  %v3936_v35 = vadd.f32 1.0, %v6331_v41 }
 0xc53   : > { %6344 = vrcp.f32 %v3929_v1  ;;  %v6333_v36 = vpop.eup %6332  ;;  %v5219_v18 = vmul.f32 -1.442695, %v9535_v31 }
 0xc54   : > { %6346 = vrsqrt.f32 %v3803_v9  ;;  %v3804_v23 = vadd.f32 1e-05, %v3788_v45  ;;  %v3931_v10 = vadd.f32 1.0, %v6333_v36 }
 0xc55   : > { %6348 = vrcp.f32 %v3930_v62  ;;  %v6335_v16 = vpop.eup %6334 }
 0xc56   : > { %6350 = vrsqrt.f32 %v3804_v23  ;;  %v6337_v61 = vpop.eup %6336  ;;  %v3981_v26 = vmul.f32 %v6335_v16, %v9473_v14 }
 0xc57   : > { %6352 = vrcp.f32 %v3935_v29  ;;  %v3932_v47 = vadd.f32 1.0, %v6337_v61 }
 0xc58   : > { %6354 = vrcp.f32 %v3936_v35 }
 0xc59   : > { %6356 = vpow2.f32 %v5216_v22 }
 0xc5a   : > { %v6339_v27 = vpop.eup %6338  ;;  %6358 = vpow2.f32 %v5217_v59 }
 0xc5b   : > { %v6341_v38 = vpop.eup %6340  ;;  %6360 = vrcp.f32 %v3931_v10  ;;  %v3833_v8 = vmul.f32 %v6339_v27, %v9409_v37 }
 0xc5c   : > { %v6343_v24 = vpop.eup %6342  ;;  %v3982_v25 = vmul.f32 %v6341_v38, %v9478_v60  ;;  %6362 = vrcp.f32 %v3932_v47 }
 0xc5d   : > { %v6345_v51 = vpop.eup %6344  ;;  %6364 = vpow2.f32 %v5218_v56  ;;  %v3834_v6 = vmul.f32 %v6343_v24, %v9412_v11  ;;  %v3855_v49 = vmul.f32 %v9460_v40, %v3833_v8 }
 0xc5e   : > { %v6347_v1 = vpop.eup %6346  ;;  %v3995_v57 = vpack.c.bf16 %v3982_v25, %v3981_v26  ;;  %6366 = vpow2.f32 %v5219_v18  ;;  %v3977_v60 = vmul.f32 %v6345_v51, %v9484_v58 }
 0xc5f   : > { %v6349_v63 = vpop.eup %6348  ;;  %v3856_v15 = vmul.f32 %v9460_v40, %v3834_v6  ;;  %v9546_v37 = vadd.f32 %v9466_v46, %v3855_v49  ;;  %v3835_v14 = vmul.f32 %v6347_v1, %v9417_v39 }
 0xc60   : > { %v6351_v9 = vpop.eup %6350  ;;  %4162 = vmatmul.mubr.bf16.vlgmr.msra.gmra.mrb[48].mxu1 %v3995_v57  ;;  %v3978_v45 = vmul.f32 %v6349_v63, %v9488_v20 }
 0xc61   : > { %v6353_v11 = vpop.eup %6352  ;;  %4171 = vmatprep.mubr.bf16.mxu1 %v7091_v30  ;;  %v9553_v62 = vadd.f32 %v9466_v46, %v3856_v15  ;;  %v5220_v52 = vmul.f32 -1.442695, %v9546_v37  ;;  %v3836_v12 = vmul.f32 %v6351_v9, %v9422_v33  ;;  %v3857_v29 = vmul.f32 %v9460_v40, %v3835_v14 }
 0xc62   : > { %v6355_v23 = vpop.eup %6354  ;;  %v3993_v41 = vpack.c.bf16 %v3978_v45, %v3977_v60  ;;  %v3983_v39 = vmul.f32 %v6353_v11, %v9497_v7 }
 0xc63   : > { %v6357_v22 = vpop.eup %6356  ;;  %v3984_v58 = vmul.f32 %v6355_v23, %v9500_v53  ;;  %6368 = vpow2.f32 %v5220_v52  ;;  %v5221_v20 = vmul.f32 -1.442695, %v9553_v62  ;;  %v3858_v35 = vmul.f32 %v9460_v40, %v3836_v12 }
 0xc64   : > { %v6359_v59 = vpop.eup %6358  ;;  %4142 = vmatmul.mubr.bf16.vlgmr.msra.gmra.mrb[64].mxu0 %v3993_v41  ;;  %v3937_v36 = vadd.f32 1.0, %v6357_v22  ;;  %v3879_v16 = vadd.f32 %v9466_v46, %v3857_v29 }
 0xc65   : > { %v6361_v33 = vpop.eup %6360  ;;  %v3996_v61 = vpack.c.bf16 %v3984_v58, %v3983_v39  ;;  %4151 = vmatprep.mubr.bf16.mxu0 %v7091_v30  ;;  %v3938_v7 = vadd.f32 1.0, %v6359_v59  ;;  %6370 = vpow2.f32 %v5221_v20  ;;  %v3880_v53 = vadd.f32 %v9466_v46, %v3858_v35 }
 0xc66   : > { %v6363_v10 = vpop.eup %6362  ;;  %6372 = vrcp.f32 %v3937_v36  ;;  %v3979_v27 = vmul.f32 %v6361_v33, %v9508_v4  ;;  %v5222_v47 = vmul.f32 -1.442695, %v3879_v16  ;;  %v4019_v20 = vlaneseq }
 0xc67   : > { %v6365_v56 = vpop.eup %6364  ;;  %v3980_v40 = vmul.f32 %v6363_v10, %v9512_v43  ;;  %6374 = vrcp.f32 %v3938_v7  ;;  %v5223_v38 = vmul.f32 -1.442695, %v3880_v53 }
 0xc68   : > { %v6367_v18 = vpop.eup %6366  ;;  %4172 = vmatmul.mubr.bf16.gmra.mrb[52].mxu1 %v3996_v61  ;;  %v3939_v24 = vadd.f32 1.0, %v6365_v56  ;;  %6376 = vpow2.f32 %v5222_v47  ;;  %v9577_v35 = vshrl.u32 %v4019_v20, 7  ;;  %v6393_v47 = vld [vmem:[%s7712_s12 + $0x48] sm:$0xff] }
 0xc69   : > { %v3994_v8 = vpack.c.bf16 %v3980_v40, %v3979_v27  ;;  %4181 = vmatprep.mubr.bf16.mxu1 %v7091_v30  ;;  %v3940_v26 = vadd.f32 1.0, %v6367_v18 }
 0xc6a   : > { %v4025_v59 = vsub.s32 1, %v9577_v35 }
 0xc6b   : > { %6378 = vrcp.f32 %v3940_v26  ;;  %v6394_v26 = vld [vmem:[%s7712_s12 + $0x50] sm:$0xff] }
 0xc6c   : > { %4152 = vmatmul.mubr.bf16.gmra.mrb[68].mxu0 %v3994_v8  ;;  %6380 = vpow2.f32 %v5223_v38 }
 0xc6d   : > { %v6369_v46 = vpop.eup %6368  ;;  %6382 = vrcp.f32 %v3939_v24 }
 0xc6e   : > { %v3941_v4 = vadd.f32 1.0, %v6369_v46 }
 0xc6f   : > { %v6371_v25 = vpop.eup %6370 }
 0xc70   : > { %v6373_v51 = vpop.eup %6372  ;;  %v3942_v43 = vadd.f32 1.0, %v6371_v25 }
 0xc71   : > { %v6375_v6 = vpop.eup %6374  ;;  %v3985_v49 = vmul.f32 %v6373_v51, %v9522_v21 }
 0xc72   : > { %v3986_v1 = vmul.f32 %v6375_v6, %v9525_v2  ;;  %6384 = vrcp.f32 %v3942_v43  ;;  %v6377_v57 = vpop.eup %6376  ;;  %v6395_v43 = vld [vmem:[%s7712_s12 + $0x58] sm:$0xff] }
 0xc73   : > { %6386 = vrcp.f32 %v3941_v4  ;;  %v3943_v11 = vadd.f32 1.0, %v6377_v57 }
 0xc74   : > { %v3997_v63 = vpack.c.bf16 %v3986_v1, %v3985_v49 }
 0xc75   : > { %v6379_v15 = vpop.eup %6378 }
 0xc76   : > { %v6381_v14 = vpop.eup %6380  ;;  %4182 = vmatmul.mubr.bf16.gmra.mrb[56].mxu1 %v3997_v63  ;;  %v3988_v45 = vmul.f32 %v6379_v15, %v9535_v31  ;;  %v6396_v63 = vld [vmem:[%s7712_s12] sm:$0xff] }
 0xc77   : > { %v6383_v9 = vpop.eup %6382  ;;  %4191 = vmatprep.mubr.bf16.mxu1 %v7091_v30  ;;  %v3944_v60 = vadd.f32 1.0, %v6381_v14 }
 0xc78   : > { %v3987_v52 = vmul.f32 %v6383_v9, %v9531_v54 }
 0xc79   : > { %6388 = vrcp.f32 %v3944_v60 }
 0xc7a   : > { %v3998_v12 = vpack.c.bf16 %v3988_v45, %v3987_v52  ;;  %6390 = vrcp.f32 %v3943_v11  ;;  %v6397_v45 = vld [vmem:[%s7712_s12 + $0x8] sm:$0xff] }
 0xc7c   : > { %v6385_v21 = vpop.eup %6384 }
 0xc7d   : > { %v6387_v2 = vpop.eup %6386  ;;  %v3990_v23 = vmul.f32 %v6385_v21, %v9553_v62  ;;  %v4021_v62 = vsub.s32 0, %v9577_v35 }
 0xc7e   : > { %4192 = vmatmul.mubr.bf16.gmra.mrb[60].mxu1 %v3998_v12  ;;  %v3989_v41 = vmul.f32 %v6387_v2, %v9546_v37  ;;  %v4017_v37 = vld [vmem:[%s10187_s20] sm:$0x3] }
 0xc7f   : > { %4201 = vmatprep.mubr.bf16.mxu1 %v7091_v30  ;;  %v9584_v36 = vrot.slane %v4017_v37, %v4021_v62 }
 0xc80   : > { %v3999_v39 = vpack.c.bf16 %v3990_v23, %v3989_v41  ;;  %v6398_v23 = vld [vmem:[%s7712_s12 + $0x10] sm:$0xff] }
 0xc83   : > { %v6389_v29 = vpop.eup %6388 }
 0xc84   : > { %v6391_v22 = vpop.eup %6390  ;;  %v3992_v31 = vmul.f32 %v6389_v29, %v3880_v53  ;;  %v6392_v53 = vld [vmem:[%s7712_s12 + $0x40] sm:$0xff] }
 0xc85   : > { %v3991_v54 = vmul.f32 %v6391_v22, %v3879_v16 }
 0xc86   : > { %4202 = vmatmul.mubr.bf16.gmra.mrb[64].mxu1 %v3999_v39 }
 0xc87   : > { %4211 = vmatprep.mubr.bf16.mxu1 %v7091_v30  ;;  %v4000_v58 = vpack.c.bf16 %v3992_v31, %v3991_v54  ;;  %v9586_v30 = vrot.slane %v4017_v37, %v4025_v59  ;;  %v6399_v31 = vld [vmem:[%s7712_s12 + $0x18] sm:$0xff]  ;;  %v6400_v59 = vld [vmem:[%s7712_s12 + $0x60] sm:$0xff] }
 0xc8e   : > { %4212 = vmatmul.mubr.bf16.gmra.mrb[68].mxu1 %v4000_v58 }
 0xd33   : > { %v4163_v16 = vpop.f32.mrb[48].mxu1 }
 0xd34   : > { %v4164_v33 = vadd.f32 %v4163_v16, %v9584_v36  ;;  %v4165_v61 = vpop.f32.mrb[49].mxu1 }
 0xd35   : > { %v4166_v7 = vadd.f32 %v4165_v61, %v9586_v30  ;;  %v4167_v10 = vpop.f32.mrb[50].mxu1 }
 0xd36   : > { %v4514_v56 = vsub.f32 %v6392_v53, %v4164_v33  ;;  %v4168_v27 = vadd.f32 %v4167_v10, %v9584_v36  ;;  %v4169_v40 = vpop.f32.mrb[51].mxu1  ;;  %v6401_v10 = vld [vmem:[%s7712_s12 + $0x68] sm:$0xff] }
 0xd37   : > { %v4515_v18 = vsub.f32 %v6393_v47, %v4166_v7  ;;  %v4170_v38 = vadd.f32 %v4169_v40, %v9586_v30  ;;  %v4143_v8 = vpop.f32.mrb[64].mxu0 }
 0xd38   : > { %v4546_v24 = vmul.f32 %v4514_v56, %v4514_v56  ;;  %v4516_v46 = vsub.f32 %v6394_v26, %v4168_v27  ;;  %v4144_v25 = vadd.f32 %v4143_v8, %v9584_v36  ;;  %v4145_v4 = vpop.f32.mrb[65].mxu0 }
 0xd39   : > { %v4547_v51 = vmul.f32 %v4515_v18, %v4515_v18  ;;  %v4517_v6 = vsub.f32 %v6395_v43, %v4170_v38  ;;  %v4146_v49 = vadd.f32 %v4145_v4, %v9586_v30  ;;  %v4147_v1 = vpop.f32.mrb[66].mxu0  ;;  %v6402_v18 = vld [vmem:[%s7712_s12 + $0x70] sm:$0xff] }
 0xd3a   : > { %v4548_v57 = vmul.f32 %v4516_v46, %v4516_v46  ;;  %v4506_v15 = vsub.f32 %v6396_v63, %v4144_v25  ;;  %v4148_v14 = vadd.f32 %v4147_v1, %v9584_v36  ;;  %v4149_v9 = vpop.f32.mrb[67].mxu0  ;;  %v6403_v46 = vld [vmem:[%s7712_s12 + $0x78] sm:$0xff] }
 0xd3b   : > { %v4549_v60 = vmul.f32 %v4517_v6, %v4517_v6  ;;  %v4507_v11 = vsub.f32 %v6397_v45, %v4146_v49  ;;  %v4150_v52 = vadd.f32 %v4149_v9, %v9586_v30  ;;  %v4173_v21 = vpop.f32.mrb[52].mxu1  ;;  %v9602_v12 = vadd.f32 %v4547_v51, %v4546_v24  ;;  %v6404_v49 = vld [vmem:[%s7712_s12 + $0x20] sm:$0xff] }
 0xd3c   : > { %v4538_v2 = vmul.f32 %v4506_v15, %v4506_v15  ;;  %v4508_v41 = vsub.f32 %v6398_v23, %v4148_v14  ;;  %v4174_v39 = vadd.f32 %v4173_v21, %v9584_v36  ;;  %v4175_v29 = vpop.f32.mrb[53].mxu1  ;;  %v6405_v14 = vld [vmem:[%s7712_s12 + $0x28] sm:$0xff]  ;;  %v6407_v23 = vld [vmem:[%s7712_s12 + $0x38] sm:$0xff] }
 0xd3d   : > { %v4539_v22 = vmul.f32 %v4507_v11, %v4507_v11  ;;  %v4509_v54 = vsub.f32 %v6399_v31, %v4150_v52  ;;  %v4176_v58 = vadd.f32 %v4175_v29, %v9586_v30  ;;  %v4177_v20 = vpop.f32.mrb[54].mxu1  ;;  %v9608_v62 = vadd.f32 %v4549_v60, %v4548_v57  ;;  %v6406_v52 = vld [vmem:[%s7712_s12 + $0x30] sm:$0xff] }
 0xd3e   : > { %v4540_v37 = vmul.f32 %v4508_v41, %v4508_v41  ;;  %v4518_v16 = vsub.f32 %v6400_v59, %v4174_v39  ;;  %v4178_v33 = vadd.f32 %v4177_v20, %v9584_v36  ;;  %v4179_v61 = vpop.f32.mrb[55].mxu1  ;;  %v10188_v39 = vsub.f32 %v9257_v13, %v9253_v32 }
 0xd3f   : > { %v4541_v7 = vmul.f32 %v4509_v54, %v4509_v54  ;;  %v4519_v53 = vsub.f32 %v6401_v10, %v4176_v58  ;;  %v4180_v56 = vadd.f32 %v4179_v61, %v9586_v30  ;;  %v4153_v27 = vpop.f32.mrb[68].mxu0  ;;  %v4570_v40 = vadd.f32 %v4539_v22, %v4538_v2 }
 0xd40   : > { %v4550_v47 = vmul.f32 %v4518_v16, %v4518_v16  ;;  %v4520_v38 = vsub.f32 %v6402_v18, %v4178_v33  ;;  %v4154_v8 = vadd.f32 %v4153_v27, %v9584_v36  ;;  %v4155_v24 = vpop.f32.mrb[69].mxu0  ;;  %v10189_v20 = vsub.f32 %v9271_v48, %v9265_v0  ;;  %v6408_v33 = vld [vmem:[%s7712_s12 + $0x80] sm:$0xff] }
 0xd41   : > { %v4551_v26 = vmul.f32 %v4519_v53, %v4519_v53  ;;  %v4521_v25 = vsub.f32 %v6403_v46, %v4180_v56  ;;  %v4156_v4 = vadd.f32 %v4155_v24, %v9586_v30  ;;  %4571 = vadd.xlane.f32.xlu0 %v4570_v40  ;;  %v4157_v51 = vpop.f32.mrb[70].mxu0  ;;  %v4573_v43 = vadd.f32 %v4541_v7, %v4540_v37  ;;  %v6409_v53 = vld [vmem:[%s7712_s12 + $0x88] sm:$0xff]  ;;  %v6410_v40 = vld [vmem:[%s7712_s12 + $0x90] sm:$0xff] }
 0xd42   : > { %v4552_v6 = vmul.f32 %v4520_v38, %v4520_v38  ;;  %v4510_v1 = vsub.f32 %v6404_v49, %v4154_v8  ;;  %v4158_v57 = vadd.f32 %v4157_v51, %v9584_v36  ;;  %v4159_v63 = vpop.f32.mrb[71].mxu0  ;;  %v10190_v48 = vsub.f32 %v9283_v50, %v9274_v19  ;;  %v6411_v38 = vld [vmem:[%s7712_s12 + $0x98] sm:$0xff]  ;;  %v6412_v49 = vld [vmem:[%s7712_s12 + $0xa0] sm:$0xff] }
 0xd43   : > { %v4553_v15 = vmul.f32 %v4521_v25, %v4521_v25  ;;  %v4511_v9 = vsub.f32 %v6405_v14, %v4156_v4  ;;  %v4160_v60 = vadd.f32 %v4159_v63, %v9586_v30  ;;  %4574 = vadd.xlane.f32.xlu1 %v4573_v43  ;;  %v9622_v45 = vadd.f32 %v4551_v26, %v4550_v47 }
 0xd44   : > { %v4542_v11 = vmul.f32 %v4510_v1, %v4510_v1  ;;  %v4512_v21 = vsub.f32 %v6406_v52, %v4158_v57  ;;  %v10191_v25 = vsub.f32 %v9300_v42, %v9293_v44  ;;  %v6415_v52 = vld [vmem:[%s7712_s12 + $0xb8] sm:$0xff] }
 0xd45   : > { %v4543_v2 = vmul.f32 %v4511_v9, %v4511_v9  ;;  %v4513_v41 = vsub.f32 %v6407_v23, %v4160_v60  ;;  %4419 = vadd.xlane.f32.xlu0 %v10188_v39  ;;  %v9629_v29 = vadd.f32 %v4553_v15, %v4552_v6  ;;  %v6413_v15 = vld [vmem:[%s7712_s12 + $0xa8] sm:$0xff]  ;;  %v6414_v9 = vld [vmem:[%s7712_s12 + $0xb0] sm:$0xff]  ;;  %v10193_v39 = vsub.f32 %v9319_v5, %v9313_v3 }
 0xd46   : > { %v4544_v22 = vmul.f32 %v4512_v21, %v4512_v21 }
 0xd47   : > { %v4545_v31 = vmul.f32 %v4513_v41, %v4513_v41  ;;  %v4576_v54 = vadd.f32 %v4543_v2, %v4542_v11 }
 0xd49   : > { %v4183_v58 = vpop.f32.mrb[56].mxu1  ;;  %4421 = vadd.xlane.f32.xlu0 %v10189_v20  ;;  %4577 = vadd.xlane.f32.xlu1 %v4576_v54  ;;  %v4579_v37 = vadd.f32 %v4545_v31, %v4544_v22 }
 0xd4a   : > { %v4184_v59 = vadd.f32 %v4183_v58, %v9584_v36  ;;  %v4185_v16 = vpop.f32.mrb[57].mxu1  ;;  %v6416_v58 = vld [vmem:[%s7712_s12 + $0xc0] sm:$0xff] }
 0xd4b   : > { %v4186_v32 = vadd.f32 %v4185_v16, %v9586_v30  ;;  %v4187_v13 = vpop.f32.mrb[58].mxu1  ;;  %v6417_v16 = vld [vmem:[%s7712_s12 + $0xc8] sm:$0xff] }
 0xd4c   : > { %v4522_v61 = vsub.f32 %v6408_v33, %v4184_v59  ;;  %v4188_v7 = vadd.f32 %v4187_v13, %v9584_v36  ;;  %v4189_v10 = vpop.f32.mrb[59].mxu1  ;;  %v6418_v13 = vld [vmem:[%s7712_s12 + $0xd0] sm:$0xff] }
 0xd4d   : > { %v4523_v56 = vsub.f32 %v6409_v53, %v4186_v32  ;;  %v4190_v0 = vadd.f32 %v4189_v10, %v9586_v30  ;;  %4423 = vadd.xlane.f32.xlu0 %v10190_v48  ;;  %4580 = vadd.xlane.f32.xlu1 %v4579_v37 }
 0xd4e   : > { %v4554_v27 = vmul.f32 %v4522_v61, %v4522_v61  ;;  %v4524_v47 = vsub.f32 %v6410_v40, %v4188_v7  ;;  %v6419_v7 = vld [vmem:[%s7712_s12 + $0xd8] sm:$0xff] }
 0xd4f   : > { %v4555_v18 = vmul.f32 %v4523_v56, %v4523_v56  ;;  %v4525_v8 = vsub.f32 %v6411_v38, %v4190_v0 }
 0xd50   : > { %v4556_v24 = vmul.f32 %v4524_v47, %v4524_v47  ;;  %v6420_v47 = vld [vmem:[%s7712_s12 + $0xe0] sm:$0xff] }
 0xd51   : > { %v4557_v26 = vmul.f32 %v4525_v8, %v4525_v8  ;;  %v4193_v46 = vpop.f32.mrb[60].mxu1  ;;  %4425 = vadd.xlane.f32.xlu0 %v10191_v25  ;;  %4583 = vadd.xlane.f32.xlu1 %v9602_v12  ;;  %v4594_v19 = vadd.f32 %v4555_v18, %v4554_v27  ;;  %v10192_v12 = vsub.f32 %v9307_v34, %v9296_v55 }
 0xd52   : > { %v4194_v50 = vadd.f32 %v4193_v46, %v9584_v36  ;;  %v4195_v4 = vpop.f32.mrb[61].mxu1 }
 0xd53   : > { %v4196_v51 = vadd.f32 %v4195_v4, %v9586_v30  ;;  %v4197_v43 = vpop.f32.mrb[62].mxu1  ;;  %v4597_v6 = vadd.f32 %v4557_v26, %v4556_v24  ;;  %v6421_v24 = vld [vmem:[%s7712_s12 + $0xe8] sm:$0xff] }
 0xd54   : > { %v4526_v1 = vsub.f32 %v6412_v49, %v4194_v50  ;;  %v4198_v57 = vadd.f32 %v4197_v43, %v9584_v36  ;;  %v4199_v63 = vpop.f32.mrb[63].mxu1 }
 0xd55   : > { %v4527_v44 = vsub.f32 %v6413_v15, %v4196_v51  ;;  %v4200_v42 = vadd.f32 %v4199_v63, %v9586_v30  ;;  %4427 = vadd.xlane.f32.xlu0 %v10192_v12  ;;  %4586 = vadd.xlane.f32.xlu1 %v9608_v62  ;;  %v6423_v51 = vld [vmem:[%s7712_s12 + $0xf8] sm:$0xff] }
 0xd56   : > { %v4558_v14 = vmul.f32 %v4526_v1, %v4526_v1  ;;  %v4528_v60 = vsub.f32 %v6414_v9, %v4198_v57 }
 0xd57   : > { %v4559_v11 = vmul.f32 %v4527_v44, %v4527_v44  ;;  %v4529_v21 = vsub.f32 %v6415_v52, %v4200_v42  ;;  %v4225_v42 = vadd.s32 8, %v9577_v35  ;;  %v4227_v52 = vadd.s32 24, %v9577_v35 }
 0xd58   : > { %v4560_v2 = vmul.f32 %v4528_v60, %v4528_v60  ;;  %v4226_v60 = vadd.s32 16, %v9577_v35 }
 0xd59   : > { %v4561_v23 = vmul.f32 %v4529_v21, %v4529_v21  ;;  %v4203_v41 = vpop.f32.mrb[64].mxu1  ;;  %4429 = vadd.xlane.f32.xlu0 %v10193_v39  ;;  %4589 = vadd.xlane.f32.xlu1 %v9622_v45  ;;  %v4600_v55 = vadd.f32 %v4559_v11, %v4558_v14  ;;  %v10194_v45 = vsub.f32 %v9323_v28, %v9321_v17  ;;  %v9690_v14 = vstv %s9686_s30  ;;  %v4404_v21 = vpop.xlane.xlu1 %4403 }
 0xd5a   : > { %v4204_v34 = vadd.f32 %v4203_v41, %v9584_v36  ;;  %v4205_v62 = vpop.f32.mrb[65].mxu1  ;;  %v4242_v9 = vadd.s32 %v9690_v14, %v4225_v42  ;;  %v4241_v11 = vadd.s32 %v9690_v14, %v9577_v35  ;;  %v4243_v41 = vadd.s32 %v9690_v14, %v4226_v60 }
 0xd5b   : > { %v4206_v22 = vadd.f32 %v4205_v62, %v9586_v30  ;;  %v4207_v31 = vpop.f32.mrb[66].mxu1  ;;  %v4603_v54 = vadd.f32 %v4561_v23, %v4560_v2  ;;  %v4228_v2 = vadd.s32 32, %v9577_v35  ;;  %v4229_v39 = vadd.s32 40, %v9577_v35 }
 0xd5c   : > { %v4530_v20 = vsub.f32 %v6416_v58, %v4204_v34  ;;  %v4208_v37 = vadd.f32 %v4207_v31, %v9584_v36  ;;  %v4209_v59 = vpop.f32.mrb[67].mxu1  ;;  %vm4258_vm0 = vcmp.lt.s32.totalorder %v4242_v9, 256  ;;  %vm4257_vm1 = vcmp.lt.s32.totalorder %v4241_v11, 256 }
 0xd5d   : > { %v4531_v3 = vsub.f32 %v6417_v16, %v4206_v22  ;;  %v4210_v5 = vadd.f32 %v4209_v59, %v9586_v30  ;;  %4431 = vadd.xlane.f32.xlu0 %v10194_v45  ;;  %4592 = vadd.xlane.f32.xlu1 %v9629_v29  ;;  %v4244_v34 = vadd.s32 %v9690_v14, %v4227_v52  ;;  %v7092_v62 = vmov 0.0  }
 0xd5e   : > { %v4562_v32 = vmul.f32 %v4530_v20, %v4530_v20  ;;  %v4532_v33 = vsub.f32 %v6418_v13, %v4208_v37  ;;  %v9702_v22 = vsel %vm4258_vm0, 1.0, %v7092_v62  ;;  %v4245_v31 = vadd.s32 %v9690_v14, %v4228_v2 }
 0xd5f   : > { %v4563_v61 = vmul.f32 %v4531_v3, %v4531_v3  ;;  %v4533_v10 = vsub.f32 %v6419_v7, %v4210_v5  ;;  %vm4259_vm2 = vcmp.lt.s32.totalorder %v4243_v41, 256  ;;  %v4246_v20 = vadd.s32 %v9690_v14, %v4229_v39 }
 0xd60   : > { %v4564_v53 = vmul.f32 %v4532_v33, %v4532_v33  ;;  %v4231_v37 = vadd.s32 56, %v9577_v35  ;;  %v9709_v59 = vsel %vm4257_vm1, 1.0, %v7092_v62  ;;  %v4232_v16 = vadd.s32 64, %v9577_v35 }
 0xd61   : > { %v4565_v56 = vmul.f32 %v4533_v10, %v4533_v10  ;;  %v4213_v0 = vpop.f32.mrb[68].mxu1  ;;  %4595 = vadd.xlane.f32.xlu1 %v4594_v19  ;;  %v4606_v48 = vadd.f32 %v4563_v61, %v4562_v32  ;;  %v6422_v19 = vld [vmem:[%s7712_s12 + $0xf0] sm:$0xff]  ;;  %vm4260_vm3 = vcmp.lt.s32.totalorder %v4244_v34, 256  ;;  %v9714_v32 = vsel %vm4259_vm2, 1.0, %v7092_v62  ;;  %s5285_s12 = sshll.u32 %s7254_s29, 11 }
 0xd62   : > { %v4214_v27 = vadd.f32 %v4213_v0, %v9584_v36  ;;  %v4215_v17 = vpop.f32.mrb[69].mxu1  ;;  %vm4261_vm4 = vcmp.lt.s32.totalorder %v4245_v31, 256  ;;  %vm4262_vm5 = vcmp.lt.s32.totalorder %v4246_v20, 256  ;;  %v4248_v7 = vadd.s32 %v9690_v14, %v4231_v37  ;;  %s9849_s4 = scalar_lea.hbm %s10195_s24, %s5285_s12 }
 0xd63   : > { %v4216_v28 = vadd.f32 %v4215_v17, %v9586_v30  ;;  %v4217_v29 = vpop.f32.mrb[70].mxu1  ;;  %v4609_v40 = vadd.f32 %v4565_v56, %v4564_v53  ;;  %v9720_v10 = vsel %vm4260_vm3, 1.0, %v7092_v62  ;;  %v4249_v56 = vadd.s32 %v9690_v14, %v4232_v16 }
 0xd64   : > { %v4534_v18 = vsub.f32 %v6420_v47, %v4214_v27  ;;  %v4218_v38 = vadd.f32 %v4217_v29, %v9584_v36  ;;  %v4219_v8 = vpop.f32.mrb[71].mxu1  ;;  %v4402_v36 = vpop.xlane.xlu0 %4401  ;;  %v9728_v17 = vsel %vm4261_vm4, 1.0, %v7092_v62  ;;  %v9732_v29 = vsel %vm4262_vm5, 1.0, %v7092_v62 }
 0xd65   : > { %v4535_v26 = vsub.f32 %v6421_v24, %v4216_v28  ;;  %v4220_v46 = vadd.f32 %v4219_v8, %v9586_v30  ;;  %4598 = vadd.xlane.f32.xlu1 %v4597_v6  ;;  %v4433_v58 = vmul.f32 0.5, %v4402_v36  ;;  %v4233_v28 = vadd.s32 72, %v9577_v35 }
 0xd66   : > { %v4566_v25 = vmul.f32 %v4534_v18, %v4534_v18  ;;  %v4536_v50 = vsub.f32 %v6422_v19, %v4218_v38  ;;  %vm4264_vm8 = vcmp.lt.s32.totalorder %v4248_v7, 256  ;;  %v4234_v38 = vadd.s32 80, %v9577_v35 }
 0xd67   : > { %v4567_v4 = vmul.f32 %v4535_v26, %v4535_v26  ;;  %v4537_v43 = vsub.f32 %v6423_v51, %v4220_v46  ;;  %v4449_v33 = vmul.f32 %v9709_v59, %v4433_v58  ;;  %vm4265_vm9 = vcmp.lt.s32.totalorder %v4249_v56, 256 }
 0xd68   : > { %v4568_v49 = vmul.f32 %v4536_v50, %v4536_v50  ;;  %v4406_v30 = vpop.xlane.xlu0 %4405  ;;  %v4250_v50 = vadd.s32 %v9690_v14, %v4233_v28  ;;  %v4236_v36 = vadd.s32 96, %v9577_v35  ;;  %v4237_v11 = vadd.s32 104, %v9577_v35 }
 0xd69   : > { %v4569_v1 = vmul.f32 %v4537_v43, %v4537_v43  ;;  %4601 = vadd.xlane.f32.xlu1 %v4600_v55  ;;  %v4612_v57 = vadd.f32 %v4567_v4, %v4566_v25  ;;  %v4434_v55 = vmul.f32 0.5, %v4404_v21  ;;  %v4435_v45 = vmul.f32 0.5, %v4406_v30 }
 0xd6a   : > { %v4466_v47 = vsel %vm4465_vm6, %v4449_v33, 0.0  ;;  %v4235_v4 = vadd.s32 88, %v9577_v35  ;;  %vm4266_vm10 = vcmp.lt.s32.totalorder %v4250_v50, 256  ;;  %v4253_v41 = vadd.s32 %v9690_v14, %v4236_v36 }
 0xd6b   : > { %v4615_v63 = vadd.f32 %v4569_v1, %v4568_v49  ;;  %v4450_v5 = vmul.f32 %v9702_v22, %v4434_v55  ;;  %v4451_v27 = vmul.f32 %v9714_v32, %v4435_v45  ;;  %v9748_v49 = vsel %vm4264_vm8, 1.0, %v7092_v62 }
 0xd6c   : > { %v4408_v6 = vpop.xlane.xlu0 %4407  ;;  %v4252_v60 = vadd.s32 %v9690_v14, %v4235_v4  ;;  %v9768_v34 = vsel %vm4266_vm10, 1.0, %v7092_v62  ;;  %v4238_v58 = vadd.s32 112, %v9577_v35  ;;  %v4254_v16 = vadd.s32 %v9690_v14, %v4237_v11 }
 0xd6d   : > { %4604 = vadd.xlane.f32.xlu1 %v4603_v54  ;;  %v4230_v54 = vadd.s32 48, %v9577_v35  ;;  %v4436_v61 = vmul.f32 0.5, %v4408_v6  ;;  %v4469_v25 = vsel %vm4465_vm6, %v4451_v27, 0.0  ;;  %vm4269_vm13 = vcmp.lt.s32.totalorder %v4253_v41, 256 }
 0xd6e   : > { %vm4268_vm12 = vcmp.lt.s32.totalorder %v4252_v60, 256  ;;  %v4255_v27 = vadd.s32 %v9690_v14, %v4238_v58  ;;  %vm4270_vm14 = vcmp.lt.s32.totalorder %v4254_v16, 256 }
 0xd6f   : > { %v4247_v13 = vadd.s32 %v9690_v14, %v4230_v54  ;;  %v4452_v18 = vmul.f32 %v9720_v10, %v4436_v61 }
 0xd70   : > { %v4410_v15 = vpop.xlane.xlu0 %4409  ;;  %vm4271_vm15 = vcmp.lt.s32.totalorder %v4255_v27, 256 }
 0xd71   : > { %4607 = vadd.xlane.f32.xlu1 %v4606_v48  ;;  %v4437_v53 = vmul.f32 0.5, %v4410_v15  ;;  %v4467_v48 = vsel %vm4465_vm6, %v4450_v5, 0.0  ;;  %vm4263_vm7 = vcmp.lt.s32.totalorder %v4247_v13, 256  ;;  %v4471_v1 = vsel %vm4465_vm6, %v4452_v18, 0.0 }
 0xd72   : > { %v4468_v8 = vadd.f32 %v4467_v48, %v4466_v47  ;;  %v9745_v43 = vsel %vm4263_vm7, 1.0, %v7092_v62  ;;  %v9756_v15 = vsel %vm4265_vm9, 1.0, %v7092_v62  ;;  %v4239_v47 = vadd.s32 120, %v9577_v35 }
 0xd73   : > { %v4453_v24 = vmul.f32 %v9728_v17, %v4437_v53  ;;  %v9780_v53 = vsel %vm4268_vm12, 1.0, %v7092_v62 }
 0xd74   : > { %v4412_v44 = vpop.xlane.xlu0 %4411  ;;  %v4470_v30 = vadd.f32 %v4469_v25, %v4468_v8 }
 0xd75   : > { %4610 = vadd.xlane.f32.xlu1 %v4609_v40  ;;  %v4438_v40 = vmul.f32 0.5, %v4412_v44  ;;  %v4473_v6 = vsel %vm4465_vm6, %v4453_v24, 0.0 }
 0xd76   : > { %v4472_v52 = vadd.f32 %v4471_v1, %v4470_v30  ;;  %v4256_v1 = vadd.s32 %v9690_v14, %v4239_v47 }
 0xd77   : > { %v4454_v51 = vmul.f32 %v9732_v29, %v4438_v40 }
 0xd78   : > { %v4414_v12 = vpop.xlane.xlu0 %4413  ;;  %v4474_v39 = vadd.f32 %v4473_v6, %v4472_v52  ;;  %vm4272_vm0 = vcmp.lt.s32.totalorder %v4256_v1, 256 }
 0xd79   : > { %4613 = vadd.xlane.f32.xlu1 %v4612_v57  ;;  %v4439_v19 = vmul.f32 0.5, %v4414_v12  ;;  %v4475_v21 = vsel %vm4465_vm6, %v4454_v51, 0.0  ;;  %v9806_v41 = vsel %vm4272_vm0, 1.0, %v7092_v62 }
 0xd7b   : > { %v4455_v9 = vmul.f32 %v9745_v43, %v4439_v19  ;;  %v9791_v19 = vsel %vm4270_vm14, 1.0, %v7092_v62 }
 0xd7c   : > { %v4416_v23 = vpop.xlane.xlu0 %4415 }
 0xd7d   : > { %4616 = vadd.xlane.f32.xlu1 %v4615_v63  ;;  %v4440_v57 = vmul.f32 0.5, %v4416_v23  ;;  %v4251_v63 = vadd.s32 %v9690_v14, %v4234_v38  ;;  %v4477_v20 = vsel %vm4465_vm6, %v4455_v9, 0.0  ;;  %v9786_v38 = vsel %vm4269_vm13, 1.0, %v7092_v62 }
 0xd7f   : > { %v4456_v2 = vmul.f32 %v9748_v49, %v4440_v57  ;;  %vm4267_vm11 = vcmp.lt.s32.totalorder %v4251_v63, 256 }
 0xd80   : > { %v4418_v3 = vpop.xlane.xlu0 %4417  ;;  %v9774_v5 = vsel %vm4267_vm11, 1.0, %v7092_v62 }
 0xd81   : > { %v4441_v44 = vmul.f32 0.5, %v4418_v3  ;;  %v4476_v3 = vadd.f32 %v4475_v21, %v4474_v39  ;;  %v4479_v45 = vsel %vm4465_vm6, %v4456_v2, 0.0 }
 0xd83   : > { %v4457_v55 = vmul.f32 %v9756_v15, %v4441_v44  ;;  %v4478_v61 = vadd.f32 %v4477_v20, %v4476_v3  ;;  %v9799_v44 = vsel %vm4271_vm15, 1.0, %v7092_v62 }
 0xd85   : > { %v4481_v7 = vsel %vm4465_vm6, %v4457_v55, 0.0  ;;  %v4480_v18 = vadd.f32 %v4479_v45, %v4478_v61 }
 0xdce   : > { %v9723_v0 = vpop.xlane.xlu0 %4571 }
 0xdcf   : > { %v4619_v55 = vmul.f32 0.00390625, %v9723_v0 }
 0xdd0   : > { %v9738_v26 = vpop.xlane.xlu1 %4574 }
 0xdd1   : > { %v4620_v52 = vmul.f32 0.00390625, %v9738_v26 }
 0xdd2   : > { %v4420_v46 = vpop.xlane.xlu0 %4419 }
 0xdd3   : > { %v4442_v23 = vmul.f32 0.5, %v4420_v46  ;;  %v4482_v46 = vadd.f32 %v4481_v7, %v4480_v18  ;;  %v4636_v26 = vmul.f32 %v9702_v22, %v4620_v52 }
 0xdd5   : > { %v4458_v13 = vmul.f32 %v9768_v34, %v4442_v23 }
 0xdd6   : > { %v9758_v42 = vpop.xlane.xlu1 %4577  ;;  %v4422_v12 = vpop.xlane.xlu0 %4421 }
 0xdd7   : > { %v4443_v37 = vmul.f32 0.5, %v4422_v12  ;;  %v4483_v8 = vsel %vm4465_vm6, %v4458_v13, 0.0 }
 0xdd8   : > { %v4484_v57 = vadd.f32 %v4483_v8, %v4482_v46 }
 0xdd9   : > { %v4459_v28 = vmul.f32 %v9774_v5, %v4443_v37 }
 0xdda   : > { %v4581_v31 = vpop.xlane.xlu1 %4580  ;;  %v4424_v54 = vpop.xlane.xlu0 %4423 }
 0xddb   : > { %v4444_v33 = vmul.f32 0.5, %v4424_v54  ;;  %v4485_v4 = vsel %vm4465_vm6, %v4459_v28, 0.0  ;;  %v4621_v54 = vmul.f32 0.00390625, %v9758_v42  ;;  %v4622_v16 = vmul.f32 0.00390625, %v4581_v31 }
 0xddc   : > { %v4486_v30 = vadd.f32 %v4485_v4, %v4484_v57  ;;  %v4652_v42 = vsel %vm4465_vm6, %v4636_v26, 0.0 }
 0xddd   : > { %v4460_v24 = vmul.f32 %v9780_v53, %v4444_v33  ;;  %v4635_v33 = vmul.f32 %v9709_v59, %v4619_v55  ;;  %v4637_v62 = vmul.f32 %v9714_v32, %v4621_v54 }
 0xdde   : > { %v4584_v56 = vpop.xlane.xlu1 %4583  ;;  %v4426_v48 = vpop.xlane.xlu0 %4425 }
 0xddf   : > { %v4445_v40 = vmul.f32 0.5, %v4426_v48  ;;  %v4487_v63 = vsel %vm4465_vm6, %v4460_v24, 0.0  ;;  %v4623_v61 = vmul.f32 0.00390625, %v4584_v56  ;;  %v4638_v48 = vmul.f32 %v9720_v10, %v4622_v16 }
 0xde0   : > { %v4488_v11 = vadd.f32 %v4487_v63, %v4486_v30  ;;  %v4651_v22 = vsel %vm4465_vm6, %v4635_v33, 0.0  ;;  %v4654_v31 = vsel %vm4465_vm6, %v4637_v62, 0.0 }
 0xde1   : > { %v4461_v51 = vmul.f32 %v9786_v38, %v4445_v40  ;;  %v4639_v40 = vmul.f32 %v9728_v17, %v4623_v61  ;;  %v4653_v47 = vadd.f32 %v4652_v42, %v4651_v22  ;;  %v4656_v32 = vsel %vm4465_vm6, %v4638_v48, 0.0 }
 0xde2   : > { %v4587_v25 = vpop.xlane.xlu1 %4586  ;;  %v4428_v50 = vpop.xlane.xlu0 %4427 }
 0xde3   : > { %v4446_v35 = vmul.f32 0.5, %v4428_v50  ;;  %v4489_v9 = vsel %vm4465_vm6, %v4461_v51, 0.0  ;;  %v4624_v27 = vmul.f32 0.00390625, %v4587_v25  ;;  %v4655_v8 = vadd.f32 %v4654_v31, %v4653_v47 }
 0xde4   : > { %v4490_v2 = vadd.f32 %v4489_v9, %v4488_v11  ;;  %v4658_v10 = vsel %vm4465_vm6, %v4639_v40, 0.0 }
 0xde5   : > { %v4462_v36 = vmul.f32 %v9791_v19, %v4446_v35  ;;  %v4640_v56 = vmul.f32 %v9732_v29, %v4624_v27  ;;  %v4657_v50 = vadd.f32 %v4656_v32, %v4655_v8 }
 0xde6   : > { %v4590_v6 = vpop.xlane.xlu1 %4589  ;;  %v4430_v12 = vpop.xlane.xlu0 %4429 }
 0xde7   : > { %v4447_v60 = vmul.f32 0.5, %v4430_v12  ;;  %v4491_v14 = vsel %vm4465_vm6, %v4462_v36, 0.0  ;;  %v4625_v59 = vmul.f32 0.00390625, %v4590_v6  ;;  %v4660_v4 = vsel %vm4465_vm6, %v4640_v56, 0.0 }
 0xde8   : > { %v4492_v37 = vadd.f32 %v4491_v14, %v4490_v2  ;;  %v4659_v35 = vadd.f32 %v4658_v10, %v4657_v50 }
 0xde9   : > { %v4463_v21 = vmul.f32 %v9799_v44, %v4447_v60  ;;  %v4641_v46 = vmul.f32 %v9745_v43, %v4625_v59 }
 0xdea   : > { %v4593_v23 = vpop.xlane.xlu1 %4592  ;;  %v4432_v39 = vpop.xlane.xlu0 %4431  ;;  %v4661_v36 = vadd.f32 %v4660_v4, %v4659_v35 }
 0xdeb   : > { %v4493_v58 = vsel %vm4465_vm6, %v4463_v21, 0.0  ;;  %v4448_v20 = vmul.f32 0.5, %v4432_v39  ;;  %v4626_v18 = vmul.f32 0.00390625, %v4593_v23  ;;  %v4662_v57 = vsel %vm4465_vm6, %v4641_v46, 0.0 }
 0xdec   : > { %v4494_v45 = vadd.f32 %v4493_v58, %v4492_v37  ;;  %v4663_v12 = vadd.f32 %v4662_v57, %v4661_v36 }
 0xded   : > { %v4464_v3 = vmul.f32 %v9806_v41, %v4448_v20  ;;  %v4642_v51 = vmul.f32 %v9748_v49, %v4626_v18 }
 0xdee   : > { %v4596_v13 = vpop.xlane.xlu1 %4595 }
 0xdef   : > { %v4495_v0 = vsel %vm4465_vm6, %v4464_v3, 0.0  ;;  %v4627_v25 = vmul.f32 0.00390625, %v4596_v13  ;;  %v4664_v30 = vsel %vm4465_vm6, %v4642_v51, 0.0 }
 0xdf0   : > { %v4496_v7 = vadd.f32 %v4495_v0, %v4494_v45  ;;  %v4665_v52 = vadd.f32 %v4664_v30, %v4663_v12 }
 0xdf1   : > { %v4643_v29 = vmul.f32 %v9756_v15, %v4627_v25 }
 0xdf2   : > { %v4599_v28 = vpop.xlane.xlu1 %4598  ;;  %4497 = vadd.xlane.f32.xlu0 %v4496_v7 }
 0xdf3   : > { %v4628_v17 = vmul.f32 0.00390625, %v4599_v28  ;;  %v4666_v60 = vsel %vm4465_vm6, %v4643_v29, 0.0 }
 0xdf4   : > { %v4667_v15 = vadd.f32 %v4666_v60, %v4665_v52 }
 0xdf5   : > { %v4644_v6 = vmul.f32 %v9768_v34, %v4628_v17 }
 0xdf6   : > { %v4602_v24 = vpop.xlane.xlu1 %4601 }
 0xdf7   : > { %v4629_v63 = vmul.f32 0.00390625, %v4602_v24  ;;  %v4668_v14 = vsel %vm4465_vm6, %v4644_v6, 0.0 }
 0xdf8   : > { %v4669_v55 = vadd.f32 %v4668_v14, %v4667_v15 }
 0xdf9   : > { %v4645_v49 = vmul.f32 %v9774_v5, %v4629_v63 }
 0xdfa   : > { %v4605_v1 = vpop.xlane.xlu1 %4604 }
 0xdfb   : > { %v4630_v43 = vmul.f32 0.00390625, %v4605_v1  ;;  %v4670_v23 = vsel %vm4465_vm6, %v4645_v49, 0.0 }
 0xdfc   : > { %v4671_v20 = vadd.f32 %v4670_v23, %v4669_v55 }
 0xdfd   : > { %v4646_v21 = vmul.f32 %v9780_v53, %v4630_v43 }
 0xdfe   : > { %v4608_v9 = vpop.xlane.xlu1 %4607 }
 0xdff   : > { %v4631_v11 = vmul.f32 0.00390625, %v4608_v9  ;;  %v4672_v54 = vsel %vm4465_vm6, %v4646_v21, 0.0 }
 0xe00   : > { %v4673_v53 = vadd.f32 %v4672_v54, %v4671_v20 }
 0xe01   : > { %v4647_v39 = vmul.f32 %v9786_v38, %v4631_v11 }
 0xe02   : > { %v4611_v2 = vpop.xlane.xlu1 %4610 }
 0xe03   : > { %v4632_v34 = vmul.f32 0.00390625, %v4611_v2  ;;  %v4674_v37 = vsel %vm4465_vm6, %v4647_v39, 0.0 }
 0xe04   : > { %v4675_v38 = vadd.f32 %v4674_v37, %v4673_v53 }
 0xe05   : > { %v4648_v58 = vmul.f32 %v9791_v19, %v4632_v34 }
 0xe06   : > { %v4614_v5 = vpop.xlane.xlu1 %4613 }
 0xe07   : > { %v4633_v26 = vmul.f32 0.00390625, %v4614_v5  ;;  %v4676_v16 = vsel %vm4465_vm6, %v4648_v58, 0.0 }
 0xe08   : > { %v4677_v19 = vadd.f32 %v4676_v16, %v4675_v38 }
 0xe09   : > { %v4649_v3 = vmul.f32 %v9799_v44, %v4633_v26 }
 0xe0a   : > { %v4617_v45 = vpop.xlane.xlu1 %4616 }
 0xe0b   : > { %v4678_v13 = vsel %vm4465_vm6, %v4649_v3, 0.0  ;;  %v4634_v33 = vmul.f32 0.00390625, %v4617_v45 }
 0xe0c   : > { %v4679_v61 = vadd.f32 %v4678_v13, %v4677_v19 }
 0xe0d   : > { %v4650_v62 = vmul.f32 %v9806_v41, %v4634_v33 }
 0xe0f   : > { %v4680_v0 = vsel %vm4465_vm6, %v4650_v62, 0.0 }
 0xe10   : > { %v4681_v7 = vadd.f32 %v4680_v0, %v4679_v61 }
 0xe12   : > { %4682 = vadd.xlane.f32.xlu1 %v4681_v7 }
 0xe13   : > { %6917 = shalt.err (!%p6914_p10)
}
 0xe14   : > { %s6918_s5 = scalar_lea.hbm %s9849_s4, 2048  ;;  %s6922_s12 = scalar_lea.hbm %s10195_s24, 4096 }
 0xe15   : > { %p6919_p5 = scmp.ne.s32.totalorder %s9849_s4, %s6918_s5  ;;  %p6923_p8 = scmp.lt.u32.totalorder %s9849_s4, %s10195_s24 }
 0xe16   : > { %p6924_p11 = scmp.lt.u32.totalorder %s6922_s12, %s6918_s5  ;;  %p6926_p12 = scmp.lt.u32.totalorder %s6918_s5, %s9849_s4 }
 0xe17   : > { %p6920_p9 = pnand %p6919_p5, %p10196_p13 }
 0xe18   : > { %p6925_p0 = por %p6924_p11, %p6923_p8 }
 0xe19   : > { %p6921_p4 = pneg %p6920_p9 }
 0xe1a   : > { %p6927_p1 = por %p6926_p12, %p6925_p0 }
 0xe1c   : > { %p6928_p3 = pnand %p6927_p1, %p6921_p4 }
 0xe1e   : > { %6931 = shalt.err (!%p6928_p3)
}
 0xe1f   : > { %s7094_s1 = smov 128   ;;  %s7095_s9 = smov 8  }
 0xe20   : > { %5674 = dma.vmem_to_hbm [thread:$0]  (%p10196_p13), %s9852_s10, 2048, %s9849_s4, %s4696_s6, %s7094_s1, %s7094_s1, %s7095_s9  }
 0xe21   : > { %s5088_s4 = sshll.u32 %s7708_s19, 3  ;;  %s10197_s17 = sld [smem:[#allocation86_spill]] }
 0xe22   : > { %s1067_s6 = scalar_lea.vmem [#allocation32], %s5088_s4  ;;  %s1060_s8 = scalar_lea.vmem [#allocation30], %s5088_s4 }
 0xe23   : > { %s4735_s13 = sshll.u32 %s1060_s8, 4  ;;  %s4748_s5 = sshll.u32 %s1067_s6, 4  ;;  %s9879_s13 = int_to_ptr.vmem [resolvable:$true] %s4735_s13  ;;  %s9887_s5 = int_to_ptr.vmem [resolvable:$true] %s4748_s5 }
 0xe24   : > { %s10198_s9 = sld [smem:[#allocation87_spill]]  ;;  %s7096_s20 = smov [#allocation30]  }
 0xe25   : > { %s6936_s12 = sshll.u32 %s7096_s20, 4  ;;  %s6937_s12 = int_to_ptr.vmem [resolvable:$false] %s6936_s12 }
 0xe26   : > { %s6938_s0 = scalar_lea.vmem %s6937_s12, 256  ;;  %p6939_p10 = scmp.lt.s32.totalorder %s9879_s13, %s6937_s12 }
 0xe27   : > { %s9885_s15 = scalar_lea.hbm %s10197_s17, %s9686_s30 }
 0xe2a   : > { %s9893_s4 = scalar_lea.hbm %s10198_s9, %s9686_s30 }
 0xe7f   : > { %v4498_v44 = vpop.xlane.xlu0 %4497 }
 0xe80   : > { %v4499_v41 = vrot.slane %v4498_v44, 4 }
 0xe82   : > { %v4500_v42 = vadd.f32 %v4499_v41, %v4498_v44 }
 0xe84   : > { %v4501_v48 = vrot.slane %v4500_v42, 2 }
 0xe86   : > { %v4502_v27 = vadd.f32 %v4501_v48, %v4500_v42 }
 0xe88   : > { %v4503_v28 = vrot.slane %v4502_v27, 1 }
 0xe8a   : > { %v4504_v22 = vadd.f32 %v4503_v28, %v4502_v27 }
 0xe8c   : > { %5606 = vpush %v4504_v22 }
 0xe9f   : > { %v4683_v31 = vpop.xlane.xlu1 %4682 }
 0xea0   : > { %v4684_v40 = vrot.slane %v4683_v31, 4 }
 0xea2   : > { %v4685_v59 = vadd.f32 %v4684_v40, %v4683_v31 }
 0xea4   : > { %v4686_v47 = vrot.slane %v4685_v59, 2 }
 0xea6   : > { %v4687_v32 = vadd.f32 %v4686_v47, %v4685_v59 }
 0xea8   : > { %v4688_v56 = vrot.slane %v4687_v32, 1 }
 0xeaa   : > { %v4689_v18 = vadd.f32 %v4688_v56, %v4687_v32 }
 0xeac   : > { %5608 = vpush %v4689_v18 }
 0xebd   : > { %s5607_s10 = spop %5606 }
 0xebe   : > { %v4693_v8 = vstv %s5607_s10  ;;  %s9897_s10 = scalar_lea.sflag [#allocation31], %s920_s16 }
 0xebf   : > { %4694 = vst [vmem:[%s1067_s6] sm:$0xff] %v4693_v8  ;;  %s6932_s6 = scalar_lea.vmem %s9879_s13, 128 }
 0xec0   : > { %p6933_p7 = scmp.ne.s32.totalorder %s9879_s13, %s6932_s6  ;;  %p6940_p5 = scmp.lt.s32.totalorder %s6938_s0, %s6932_s6 }
 0xec2   : > { %p6934_p2 = pnand %p6933_p7, %p10196_p13  ;;  %p6941_p9 = por %p6940_p5, %p6939_p10 }
 0xec4   : > { %p6935_p6 = pneg %p6934_p2 }
 0xec6   : > { %p6942_p4 = pnand %p6941_p9, %p6935_p6 }
 0xedd   : > { %s5609_s21 = spop %5608 }
 0xede   : > { %v4691_v24 = vstv %s5609_s21 }
 0xedf   : > { %4692 = vst [vmem:[%s1060_s8] sm:$0xff] %v4691_v24 }
 0xee0   : > { %6945 = shalt.err (!%p6942_p4)
}
 0xee1   : > { %s6946_s29 = scalar_lea.hbm %s9885_s15, 128  ;;  %s6950_s8 = scalar_lea.hbm %s10197_s17, 256 }
 0xee2   : > { %p6947_p8 = scmp.ne.s32.totalorder %s9885_s15, %s6946_s29  ;;  %p6951_p12 = scmp.lt.u32.totalorder %s9885_s15, %s10197_s17 }
 0xee3   : > { %p6952_p1 = scmp.lt.u32.totalorder %s6950_s8, %s6946_s29  ;;  %p6954_p7 = scmp.lt.u32.totalorder %s6946_s29, %s9885_s15 }
 0xee4   : > { %p6948_p11 = pnand %p6947_p8, %p10196_p13 }
 0xee5   : > { %p6953_p3 = por %p6952_p1, %p6951_p12 }
 0xee6   : > { %p6949_p0 = pneg %p6948_p11 }
 0xee7   : > { %p6955_p2 = por %p6954_p7, %p6953_p3 }
 0xee9   : > { %p6956_p6 = pnand %p6955_p2, %p6949_p0 }
 0xeeb   : > { %6959 = shalt.err (!%p6956_p6)
}
 0xeec   : > { %5675 = dma.vmem_to_hbm [thread:$0]  (%p10196_p13), %s9879_s13, 128, %s9885_s15, %s9897_s10  }
 0xeed   : > { %s6960_s0 = scalar_lea.vmem %s9887_s5, 128  ;;  %s7097_s1 = smov [#allocation32]  }
 0xeee   : > { %p6961_p10 = scmp.ne.s32.totalorder %s9887_s5, %s6960_s0  ;;  %s6964_s6 = sshll.u32 %s7097_s1, 4  ;;  %s6965_s6 = int_to_ptr.vmem [resolvable:$false] %s6964_s6 }
 0xeef   : > { %s6966_s20 = scalar_lea.vmem %s6965_s6, 256  ;;  %p6967_p4 = scmp.lt.s32.totalorder %s9887_s5, %s6965_s6 }
 0xef0   : > { %p6962_p5 = pnand %p6961_p10, %p10196_p13  ;;  %p6968_p8 = scmp.lt.s32.totalorder %s6966_s20, %s6960_s0 }
 0xef2   : > { %p6963_p9 = pneg %p6962_p5  ;;  %p6969_p11 = por %p6968_p8, %p6967_p4 }
 0xef4   : > { %p6970_p0 = pnand %p6969_p11, %p6963_p9 }
 0xef6   : > { %6973 = shalt.err (!%p6970_p0)
}
 0xef7   : > { %s6974_s13 = scalar_lea.hbm %s9893_s4, 128  ;;  %s6978_s29 = scalar_lea.hbm %s10198_s9, 256 }
 0xef8   : > { %p6975_p12 = scmp.ne.s32.totalorder %s9893_s4, %s6974_s13  ;;  %p6979_p7 = scmp.lt.u32.totalorder %s9893_s4, %s10198_s9 }
 0xef9   : > { %p6980_p2 = scmp.lt.u32.totalorder %s6978_s29, %s6974_s13  ;;  %p6982_p10 = scmp.lt.u32.totalorder %s6974_s13, %s9893_s4 }
 0xefa   : > { %p6976_p1 = pnand %p6975_p12, %p10196_p13 }
 0xefb   : > { %p6981_p6 = por %p6980_p2, %p6979_p7 }
 0xefc   : > { %p6977_p3 = pneg %p6976_p1 }
 0xefd   : > { %p6983_p5 = por %p6982_p10, %p6981_p6 }
 0xeff   : > { %p6984_p9 = pnand %p6983_p5, %p6977_p3 }
 0xf01   : > { %6987 = shalt.err (!%p6984_p9)
}
 0xf02   : > { %5676 = dma.vmem_to_hbm [thread:$0]  (%p10196_p13), %s9887_s5, 128, %s9893_s4, %s9897_s10  }
 0xf03 PF: > { %s4760_s8 = sand.u32 1, %s7054_s27   ;;  %p10199_p4 = scmp.ne.s32.totalorder %s10077_s18, 0 }
 0xf04   : > { %p10200_p8 = scmp.ge.s32.totalorder %s7066_s28, 2  ;;  %s4761_s21 = scalar_lea.sflag [#allocation4], %s4760_s8 }
 0xf06   : > { %p5734_p11 = pnand %p10200_p8, %p10199_p4 }
 0xf08   : > { %7045 = dma.done.wait (!%p5734_p11), %s4761_s21, 2048  }
 0xf09   : > { %7047 = vsyncadd (!%p5734_p11), %s4761_s21, 4294965248  ;;  %s10201_s19 = sadd.s32 4294967294, %s7066_s28  }
 0xf0a   : > { %s4769_s0 = sand.u32 1, %s10201_s19  }
 0xf0b   : > { %s4770_s1 = scalar_lea.sflag [#allocation31], %s4769_s0 }
 0xf0c   : > { %7049 = dma.done.wait (!%p5734_p11), %s4770_s1, 256  }
 0xf0d   : > { %7051 = vsyncadd (!%p5734_p11), %s4770_s1, 4294967040  ;;  %p53_p13 = scmp.ge.s32.totalorder %s7591_s11, 4   ;;  %s10202_s27 = smov %s7058_s3 }
 0xf0e   : > { %s10203_s3 = smov %s7062_s7  ;;  %s10204_s7 = smov %s7603_s2 }
 0xf0f   : > { %s10205_s28 = smov %s7591_s11  ;;  %55 = sbr.rel (!%p53_p13) target bundleno = 43 (0x2b), region = 266 }
 0xf16   :  { %4784 = vsyncpa [#allocation3], 1 }
 0xf17   :  { %4786 = vsyncpa [#allocation3 + $0x1], 1 }
 0xf18   :  { %4787 = vsyncpa [#allocation6], 1 }
 0xf19   :  { %4789 = vsyncpa [#allocation6 + $0x1], 1 }
 0xf1a   :  { %4790 = vsyncpa [#allocation9], 1 }
 0xf1b   :  { %4791 = vsyncpa [#allocation12], 1 }
 0xf1c   :  { %4792 = vsyncpa [#allocation15], 1 }
 0xf1d   :  { %4793 = vsyncpa [#allocation18], 1 }
 0xf1e   :  { %4794 = vsyncpa [#allocation21], 1 }
 0xf1f   :  { %4795 = vsyncpa [#allocation24], 1 }
 0xf20   :  { %4796 = vsyncpa [#allocation27], 1 }
 0xf21   :  { %4797 = vsyncpa [#allocation4], 1 }
 0xf22   :  { %4799 = vsyncpa [#allocation4 + $0x1], 1 }
 0xf23   :  { %4800 = vsyncpa [#allocation31], 1 }
 0xf24   :  { %4802 = vsyncpa [#allocation31 + $0x1], 1 }

</bundles_post_ra>
